<compile_context>
chip_gen: v5e
topology: v5e:2x2
jax: 0.10.0
libtpu: 0.0.40
codegen_flags: <defaults>
</compile_context>

<pallas_src>
import jax
import jax.numpy as jnp
from jax.experimental import pallas as pl
from jax.experimental.pallas import tpu as pltpu

KN_CELLS = 50
DAN_CELLS = 10
MBON_CELLS = 10
PN_CELLS = 3


def _r8(n):
    return ((n + 7) // 8) * 8


def _r128(n):
    return ((n + 127) // 128) * 128


# ---- stacked-row layouts (all offsets multiples of 8 -> tile-aligned slices) ----
# external-input block (odor + context), rebuilt from batch-major data every step
R_ODOR = 0
R_CTX = _r8(PN_CELLS)
IO_ROWS = R_CTX + _r8(1)                        # 16

# recurrent-state block, kept in kernel layout across steps (aliased in place)
R_KC = 0
R_APL = R_KC + _r8(KN_CELLS)                    # 56
R_MBON = R_APL + _r8(1)                         # 64
R_DAN = R_MBON + _r8(MBON_CELLS)                # 80
R_LKC = R_DAN + _r8(DAN_CELLS)                  # 96
R_LDAN = R_LKC + _r8(KN_CELLS)                  # 152
STATE_ROWS = R_LDAN + _r8(DAN_CELLS)            # 168

# decoder-output block (2 valid rows)
DEC_ROWS = _r8(2)                               # 8

# packed shared-parameter block: each parameter starts at column 0 of its own
# 8-row-aligned segment (fetched once; constant index_map)
S_KN_B = 0
S_KN_APLW = S_KN_B + _r8(KN_CELLS)
S_APL_KCW = S_KN_APLW + _r8(KN_CELLS)
S_MBON_B = S_APL_KCW + _r8(KN_CELLS)
S_DAN_CTXW = S_MBON_B + _r8(MBON_CELLS)
S_DAN_B = S_DAN_CTXW + _r8(DAN_CELLS)
S_DEC_B = S_DAN_B + _r8(DAN_CELLS)
S_APL_B = S_DEC_B + _r8(2)
S_MBON_DANW = S_APL_B + _r8(1)
S_DAN_MBONW = S_MBON_DANW + _r8(MBON_CELLS)
S_DAN_DANW = S_DAN_MBONW + _r8(DAN_CELLS)
S_DEC_W = S_DAN_DANW + _r8(DAN_CELLS)
SHARED_ROWS = S_DEC_W + _r8(2)                  # 288
SHARED_COLS = 16


def make_fly_kernel(dt):
    # hyper-parameters from simpleFly.__init__
    tau_kc, rc_kc = 1.0, 5.0
    tau_apl = 1.0
    tau_mbon, tau_weights = 1.0, 2.0
    tau_dan, rc_dan = 1.0, 5.0

    dt = float(dt)
    dt_kc = dt / tau_kc
    dt_apl = dt / tau_apl
    dt_mbon = dt / tau_mbon
    dt_dan = dt / tau_dan
    dt_w = dt / tau_weights
    a_kc = dt / (dt + rc_kc)
    a_dan = dt / (dt + rc_dan)

    def kernel(io_ref, st_ref, wact_ref, kcw_ref, pnw_ref, sh_ref,
               dec_o, st_o, kcw_o, wact_o):
        relu = lambda x: jnp.maximum(x, 0.0)
        f32 = jnp.float32

        # ---- unpack the stacked per-batch blocks (batch = lane axis) --------
        odor = io_ref[R_ODOR:R_ODOR + PN_CELLS, :]          # (PN, TB)
        ctx = io_ref[R_CTX:R_CTX + 1, :]                    # (1, TB)
        kc = st_ref[R_KC:R_KC + KN_CELLS, :]                # (KN, TB)
        apl = st_ref[R_APL:R_APL + 1, :]                    # (1, TB)
        mbon = st_ref[R_MBON:R_MBON + MBON_CELLS, :]        # (MBON, TB)
        dan = st_ref[R_DAN:R_DAN + DAN_CELLS, :]            # (DAN, TB)
        low_kc = st_ref[R_LKC:R_LKC + KN_CELLS, :]          # (KN, TB)
        low_dan = st_ref[R_LDAN:R_LDAN + DAN_CELLS, :]      # (DAN, TB)
        wact = wact_ref[...]                                # (MBON, KN, TB)
        kcw = kcw_ref[...]                                  # (MBON, KN, TB)

        # ---- unpack the packed shared parameters ---------------------------
        kn_b = sh_ref[S_KN_B:S_KN_B + KN_CELLS, 0:1]              # (KN, 1)
        kn_aplw = sh_ref[S_KN_APLW:S_KN_APLW + KN_CELLS, 0:1]     # (KN, 1)
        apl_kcw = sh_ref[S_APL_KCW:S_APL_KCW + KN_CELLS, 0:1]     # (KN, 1)
        mbon_b = sh_ref[S_MBON_B:S_MBON_B + MBON_CELLS, 0:1]      # (MBON, 1)
        dan_ctxw = sh_ref[S_DAN_CTXW:S_DAN_CTXW + DAN_CELLS, 0:1]  # (DAN, 1)
        dan_b = sh_ref[S_DAN_B:S_DAN_B + DAN_CELLS, 0:1]          # (DAN, 1)
        dec_b = sh_ref[S_DEC_B:S_DEC_B + 2, 0:1]                  # (2, 1)
        apl_b = sh_ref[S_APL_B:S_APL_B + 1, 0:1]                  # (1, 1)
        mbon_danw = sh_ref[S_MBON_DANW:S_MBON_DANW + MBON_CELLS, 0:DAN_CELLS]
        dan_mbonw = sh_ref[S_DAN_MBONW:S_DAN_MBONW + DAN_CELLS, 0:MBON_CELLS]
        dan_danw = sh_ref[S_DAN_DANW:S_DAN_DANW + DAN_CELLS, 0:DAN_CELLS]
        dec_w = sh_ref[S_DEC_W:S_DEC_W + 2, 0:MBON_CELLS]         # (2, MBON)

        # ---------------- KenyonCell.forward ----------------
        apl_value = kn_aplw * apl                                     # (KN, TB)
        pn_value = jnp.sum(odor[:, None, :] * pnw_ref[...], axis=0)   # (KN, TB)
        kc_new = kc * (1.0 - dt_kc) + dt_kc * relu(pn_value - apl_value + kn_b)

        # ---------------- APLCell.forward --------------------
        apl_kc_val = jnp.sum(kc_new * apl_kcw, axis=0, keepdims=True)  # (1, TB)
        apl_new = apl * (1.0 - dt_apl) + dt_apl * relu(apl_kc_val + apl_b)

        # ---------------- MBONCell.forward -------------------
        # per-batch weights, (MBON, KN, TB) layout -> per-MBON sublane reduce (XLU)
        kc_value = jnp.sum(kc_new[None, :, :] * kcw, axis=1)           # (MBON, TB)
        dan_value = jnp.dot(mbon_danw, dan, preferred_element_type=f32)  # (MBON, TB)
        dan_mod = 0.5 * (jnp.tanh(0.5 * dan_value) + 1.0)   # sigmoid via EUP tanh
        mbon_new = mbon * (1.0 - dt_mbon) + dt_mbon * dan_mod * relu(kc_value + mbon_b)

        # ---------------- DANCell.forward --------------------
        mbon_value = jnp.dot(dan_mbonw, mbon_new, preferred_element_type=f32)
        context_value = dan_ctxw * ctx
        dan_rec = jnp.dot(dan_danw, dan, preferred_element_type=f32)
        dan_new = dan * (1.0 - dt_dan) + dt_dan * relu(
            dan_rec + mbon_value + context_value + dan_b)

        # ---------------- low-pass filters -------------------
        low_kc_new = a_kc * kc_new + (1.0 - a_kc) * low_kc
        low_dan_new = a_dan * dan_new + (1.0 - a_dan) * low_dan

        # ---------------- MBONCell.changeWeights -------------
        # syn[m,k,b] = kc[k,b]*low_dan[m,b] - low_kc[k,b]*dan[m,b]
        syn = (low_dan_new[:, None, :] * kc_new[None, :, :]
               - dan_new[:, None, :] * low_kc_new[None, :, :])      # (MBON, KN, TB)
        wact_o[...] = wact + dt * syn
        kcw_o[...] = kcw * (1.0 - dt_w) + dt_w * wact               # uses OLD wact

        # ---------------- decoder (Linear) --------------------
        out = jnp.dot(dec_w, mbon_new, preferred_element_type=f32) + dec_b  # (2, TB)

        # ---------------- stores (lane-dense; segment starts 8-aligned) -------
        dec_o[0:2, :] = out
        st_o[R_KC:R_KC + KN_CELLS, :] = kc_new
        st_o[R_APL:R_APL + 1, :] = apl_new
        st_o[R_MBON:R_MBON + MBON_CELLS, :] = mbon_new
        st_o[R_DAN:R_DAN + DAN_CELLS, :] = dan_new
        st_o[R_LKC:R_LKC + KN_CELLS, :] = low_kc_new
        st_o[R_LDAN:R_LDAN + DAN_CELLS, :] = low_dan_new

    return kernel


def _pick_tiling(batch, block_b, vmem_limit_bytes):
    """Generation-aware batch-tile / VMEM-limit selection.

    The lane (batch) axis is always padded to a multiple of 128 so every store /
    DMA is lane-dense.  v7x gets >=2 grid steps (2 TensorCores) and a <=48 MiB
    per-core VMEM budget; v5e/v6e get large tiles under a raised scoped-VMEM
    limit (128 MiB physical); unknown chips fall back to a tile that fits the
    default scoped VMEM.
    """
    kind = ""
    try:
        kind = jax.devices()[0].device_kind.lower()
    except Exception:
        pass
    if "v7" in kind or "7x" in kind:
        def_bb, def_vmem, min_tiles = 1024, 48 * 1024 * 1024, 2
    elif "v6" in kind or "v5" in kind:
        def_bb, def_vmem, min_tiles = 1024, 80 * 1024 * 1024, 1
    else:
        def_bb, def_vmem, min_tiles = 256, None, 1
    block_b = def_bb if block_b is None else block_b
    vmem_limit_bytes = def_vmem if vmem_limit_bytes is None else vmem_limit_bytes
    block_b = max(128, (block_b // 128) * 128)

    Bp = _r128(batch)
    n128 = Bp // 128
    nb = min(max(min_tiles, -(-Bp // block_b)), n128)
    tb = -(-n128 // nb) * 128
    Bp = -(-Bp // tb) * tb
    nb = Bp // tb
    return tb, Bp, nb, vmem_limit_bytes


def pack_shared(p):
    """Pack the 13 tiny shared parameters into one (SHARED_ROWS, 16) block."""
    f32 = jnp.float32
    sh = jnp.zeros((SHARED_ROWS, SHARED_COLS), f32)

    def col(s, r0, v):
        v = jnp.asarray(v, f32).reshape(-1)
        return s.at[r0:r0 + v.shape[0], 0].set(v)

    def mat(s, r0, v):
        v = jnp.asarray(v, f32)
        return s.at[r0:r0 + v.shape[0], 0:v.shape[1]].set(v)

    sh = col(sh, S_KN_B, p["kenyon_bias"])
    sh = col(sh, S_KN_APLW, p["kenyon_apl_weight"])
    sh = col(sh, S_APL_KCW, p["apl_kc_weight"])
    sh = col(sh, S_MBON_B, p["mbon_bias"])
    sh = col(sh, S_DAN_CTXW, p["dan_context_weight"])
    sh = col(sh, S_DAN_B, p["dan_bias"])
    sh = col(sh, S_DEC_B, p["decoder_bias"])
    sh = col(sh, S_APL_B, p["apl_bias"])
    sh = mat(sh, S_MBON_DANW, p["mbon_dan_weight"].T)   # (MBON, DAN)
    sh = mat(sh, S_DAN_MBONW, p["dan_mbon_weight"].T)   # (DAN, MBON)
    sh = mat(sh, S_DAN_DANW, p["dan_dan_weight"].T)     # (DAN, DAN)
    sh = mat(sh, S_DEC_W, p["decoder_weight"].T)        # (2, MBON)
    return sh


def build_kernel_state(p, Bp):
    """Pack batch-major (torch-convention) params/state into the kernel's lane-dense
    (features..., Bp) layout.  Done once; the per-step wrapper never relayouts the
    big tensors again."""
    f32 = jnp.float32
    B = p["odor"].shape[0]
    padB = Bp - B

    def lanes2(x):                      # (B, N) -> (N, Bp)
        x = jnp.asarray(x, f32).T
        return jnp.pad(x, ((0, 0), (0, padB)))

    def heb(x):                         # (B, KN, MBON) -> (MBON, KN, Bp)
        x = jnp.transpose(jnp.asarray(x, f32), (2, 1, 0))
        return jnp.pad(x, ((0, 0), (0, 0), (0, padB)))

    st = jnp.zeros((STATE_ROWS, Bp), f32)
    st = st.at[R_KC:R_KC + KN_CELLS].set(lanes2(p["state_kc"]))
    st = st.at[R_APL:R_APL + 1].set(lanes2(p["state_apl"]))
    st = st.at[R_MBON:R_MBON + MBON_CELLS].set(lanes2(p["state_mbon"]))
    st = st.at[R_DAN:R_DAN + DAN_CELLS].set(lanes2(p["state_dan"]))
    st = st.at[R_LKC:R_LKC + KN_CELLS].set(lanes2(p["state_low_kc"]))
    st = st.at[R_LDAN:R_LDAN + DAN_CELLS].set(lanes2(p["state_low_dan"]))

    pn_w = jnp.pad(jnp.transpose(jnp.asarray(p["pn_weight"], f32), (1, 2, 0)),
                   ((0, 0), (0, 0), (0, padB)))          # (PN, KN, Bp)

    return {
        "st": st,
        "wact": heb(p["state_weight_activation"]),
        "kcw": heb(p["kc_weight"]),
        "pn_w": pn_w,
        "shared": pack_shared(p),
    }


def state_to_batch_major(state, B):
    """Extract batch-major (torch-convention) views of the kernel-layout state."""
    st = state["st"]
    seg = lambda r0, n: st[r0:r0 + n, 0:B].T
    kc = seg(R_KC, KN_CELLS)
    apl = seg(R_APL, 1)
    mbon = seg(R_MBON, MBON_CELLS)
    dan = seg(R_DAN, DAN_CELLS)
    low_kc = seg(R_LKC, KN_CELLS)
    low_dan = seg(R_LDAN, DAN_CELLS)
    kcw = jnp.transpose(state["kcw"][:, :, 0:B], (2, 1, 0))     # (B, KN, MBON)
    wact = jnp.transpose(state["wact"][:, :, 0:B], (2, 1, 0))   # (B, KN, MBON)
    return kc, apl, mbon, dan, low_kc, low_dan, kcw, wact


def make_fly_step(dt, batch, *, block_b=None, vmem_limit_bytes=None):
    """Build a jitted one-step function: (state, odor(B,PN), ctx(B,1)) -> (out(B,2), state)."""
    tb, Bp, nb, vmem = _pick_tiling(batch, block_b, vmem_limit_bytes)
    kernel = make_fly_kernel(dt)

    row2 = lambda r: pl.BlockSpec((r, tb), lambda i: (0, i))
    row3 = lambda d0, d1: pl.BlockSpec((d0, d1, tb), lambda i: (0, 0, i))

    call = pl.pallas_call(
        kernel,
        grid=(nb,),
        in_specs=[
            row2(IO_ROWS),                                    # odor + context
            row2(STATE_ROWS),                                 # stacked recurrent state
            row3(MBON_CELLS, KN_CELLS),                       # weight_activation
            row3(MBON_CELLS, KN_CELLS),                       # kc_weight
            row3(PN_CELLS, KN_CELLS),                         # pn_weight
            pl.BlockSpec((SHARED_ROWS, SHARED_COLS), lambda i: (0, 0)),  # shared params
        ],
        out_shape=(
            jax.ShapeDtypeStruct((DEC_ROWS, Bp), jnp.float32),
            jax.ShapeDtypeStruct((STATE_ROWS, Bp), jnp.float32),
            jax.ShapeDtypeStruct((MBON_CELLS, KN_CELLS, Bp), jnp.float32),
            jax.ShapeDtypeStruct((MBON_CELLS, KN_CELLS, Bp), jnp.float32),
        ),
        out_specs=(
            row2(DEC_ROWS), row2(STATE_ROWS),
            row3(MBON_CELLS, KN_CELLS), row3(MBON_CELLS, KN_CELLS),
        ),
        # in-place HBM update: state -> state, weight_activation -> weight_activation,
        # kc_weight -> kc_weight
        input_output_aliases={1: 1, 2: 3, 3: 2},
        compiler_params=pltpu.CompilerParams(
            dimension_semantics=("parallel",),
            vmem_limit_bytes=vmem,
        ),
    )

    def step(state, odor, context):
        f32 = jnp.float32
        io = jnp.zeros((IO_ROWS, Bp), f32)
        io = io.at[R_ODOR:R_ODOR + PN_CELLS, 0:batch].set(jnp.asarray(odor, f32).T)
        io = io.at[R_CTX:R_CTX + 1, 0:batch].set(jnp.asarray(context, f32).T)
        dec, st, kcw, wact = call(io, state["st"], state["wact"], state["kcw"],
                                  state["pn_w"], state["shared"])
        out = dec[0:2, 0:batch].T                            # (B, 2)
        new_state = dict(state, st=st, wact=wact, kcw=kcw)
        return out, new_state

    return jax.jit(step, donate_argnums=(0,)), (tb, Bp, nb)


def fly_forward_reference(dt, p):
    """Pure-JAX reference mirroring simpleFly.forward (batch-major, torch layout)."""
    relu = lambda x: jnp.maximum(x, 0.0)
    dt = float(dt)
    kc, apl, mbon, dan = p["state_kc"], p["state_apl"], p["state_mbon"], p["state_dan"]
    low_kc, low_dan = p["state_low_kc"], p["state_low_dan"]
    wact, kcw = p["state_weight_activation"], p["kc_weight"]

    apl_value = apl @ p["kenyon_apl_weight"]
    pn_value = jnp.einsum("bp,bpk->bk", p["odor"], p["pn_weight"])
    kc_new = kc * (1 - dt) + dt * relu(pn_value - apl_value + p["kenyon_bias"])

    apl_kc_val = kc_new @ p["apl_kc_weight"].T
    apl_new = apl * (1 - dt) + dt * relu(apl_kc_val + p["apl_bias"])

    kc_value = jnp.einsum("bk,bkm->bm", kc_new, kcw)
    dan_value = dan @ p["mbon_dan_weight"]
    dan_mod = jax.nn.sigmoid(dan_value)
    mbon_new = mbon * (1 - dt) + dt * dan_mod * relu(kc_value + p["mbon_bias"])

    mbon_value = mbon_new @ p["dan_mbon_weight"]
    context_value = p["context"] @ p["dan_context_weight"]
    dan_rec = dan @ p["dan_dan_weight"]
    dan_new = dan * (1 - dt) + dt * relu(dan_rec + mbon_value + context_value
                                         + p["dan_bias"])

    a_kc = dt / (dt + 5.0)
    a_dan = dt / (dt + 5.0)
    low_kc_new = a_kc * kc_new + (1 - a_kc) * low_kc
    low_dan_new = a_dan * dan_new + (1 - a_dan) * low_dan

    syn = (kc_new[:, :, None] * low_dan_new[:, None, :]
           - low_kc_new[:, :, None] * dan_new[:, None, :])
    wact_new = wact + dt * syn
    dt_tw = dt / 2.0
    kcw_new = kcw * (1 - dt_tw) + dt_tw * wact

    out = mbon_new @ p["decoder_weight"] + p["decoder_bias"]
    return (out, kc_new, apl_new, mbon_new, dan_new, low_kc_new, low_dan_new,
            kcw_new, wact_new)


def build_params_and_state(key, batch):
    f32 = jnp.float32
    keys = jax.random.split(key, 12)
    n = lambda k, shape: (0.5 * jax.random.normal(k, shape)).astype(f32)
    p = {
        # external inputs (odor is torch's (B,1,PN) squeezed to (B,PN))
        "odor": jax.random.uniform(keys[0], (batch, PN_CELLS), dtype=f32),
        "context": jax.random.uniform(keys[1], (batch, 1), dtype=f32),
        # initial states (all zeros in simpleFly.__init__)
        "state_kc": jnp.zeros((batch, KN_CELLS), f32),
        "state_apl": jnp.zeros((batch, 1), f32),
        "state_mbon": jnp.zeros((batch, MBON_CELLS), f32),
        "state_dan": jnp.zeros((batch, DAN_CELLS), f32),
        "state_low_kc": jnp.zeros((batch, KN_CELLS), f32),
        "state_low_dan": jnp.zeros((batch, DAN_CELLS), f32),
        "state_weight_activation": jnp.zeros((batch, KN_CELLS, MBON_CELLS), f32),
        "kc_weight": n(keys[2], (batch, KN_CELLS, MBON_CELLS)),
        # KenyonCell params
        "pn_weight": n(keys[3], (batch, PN_CELLS, KN_CELLS)),
        "kenyon_bias": n(keys[4], (1, KN_CELLS)),
        "kenyon_apl_weight": jnp.ones((1, KN_CELLS), f32),
        # APLCell params (torch kc_weight is ones(KN,1); stored transposed (1,KN))
        "apl_kc_weight": jnp.ones((1, KN_CELLS), f32),
        "apl_bias": jnp.full((1, 1), -0.5, f32),
        # MBONCell params
        "mbon_dan_weight": n(keys[5], (DAN_CELLS, MBON_CELLS)),
        "mbon_bias": n(keys[6], (1, MBON_CELLS)),
        # DANCell params
        "dan_mbon_weight": n(keys[7], (MBON_CELLS, DAN_CELLS)),
        "dan_dan_weight": n(keys[8], (DAN_CELLS, DAN_CELLS)),
        "dan_context_weight": n(keys[9], (1, DAN_CELLS)),
        "dan_bias": n(keys[10], (1, DAN_CELLS)),
        # decoder: nn.Linear(MBON, 2); stored as (MBON, 2) = torch weight.T
        "decoder_weight": n(keys[11], (MBON_CELLS, 2)),
        "decoder_bias": jnp.zeros((1, 2), f32),
    }
    return p


if __name__ == "__main__":
    batch = 8
    dt = 0.5
    p = dict(build_params_and_state(jax.random.PRNGKey(0), batch))

    step_fn, (tb, Bp, nb) = make_fly_step(dt, batch)
    state = build_kernel_state(p, Bp)

    names = ["decoder_out", "kc", "apl", "mbon", "dan", "low_kc", "low_dan",
             "kc_weight", "weight_activation"]

    # two recurrent steps so the DAN/MBON recurrences and Hebbian update are
    # exercised with non-zero state
    for it in range(2):
        refs = fly_forward_reference(dt, p)
        out, state = step_fn(state, p["odor"], p["context"])
        jax.block_until_ready((out, state))

        kc, apl, mbon, dan, low_kc, low_dan, kcw, wact = state_to_batch_major(state, batch)
        got = (out, kc, apl, mbon, dan, low_kc, low_dan, kcw, wact)
        for name, o, r in zip(names, got, refs):
            assert o.shape == r.shape, (name, o.shape, r.shape)
            # small tolerance covers f32 MXU rounding and the tanh-form sigmoid
            assert jnp.allclose(o, r, atol=2e-5, rtol=2e-4), \
                f"step {it}: mismatch vs reference: {name}"

        # feed the kernel results back into the batch-major mirror so both the
        # reference and the kernel start the next step from identical state
        p.update(state_kc=kc, state_apl=apl, state_mbon=mbon, state_dan=dan,
                 state_low_kc=low_kc, state_low_dan=low_dan,
                 state_weight_activation=wact, kc_weight=kcw)

    assert out.shape == (batch, 2)
    print("KERNEL_OK")
</pallas_src>

<mosaic_0001>
module attributes {stable_mosaic.version = 11 : i64} {
  func.func @kernel(%arg0: i32, %arg1: memref<16x128xf32, #tpu.memory_space<vmem>>, %arg2: memref<168x128xf32, #tpu.memory_space<vmem>>, %arg3: memref<10x50x128xf32, #tpu.memory_space<vmem>>, %arg4: memref<10x50x128xf32, #tpu.memory_space<vmem>>, %arg5: memref<3x50x128xf32, #tpu.memory_space<vmem>>, %arg6: memref<288x16xf32, #tpu.memory_space<vmem>>, %arg7: memref<8x128xf32, #tpu.memory_space<vmem>>, %arg8: memref<168x128xf32, #tpu.memory_space<vmem>>, %arg9: memref<10x50x128xf32, #tpu.memory_space<vmem>>, %arg10: memref<10x50x128xf32, #tpu.memory_space<vmem>>) attributes {dimension_semantics = [#tpu.dimension_semantics<parallel>], iteration_bounds = array<i64: 1>, scalar_prefetch = 0 : i64, scratch_operands = 0 : i64, tpu.core_type = #tpu.core_type<tc>, window_params = [{transform_indices = @transform_0, window_bounds = array<i64: 16, 128>}, {transform_indices = @transform_1, window_bounds = array<i64: 168, 128>}, {transform_indices = @transform_2, window_bounds = array<i64: 10, 50, 128>}, {transform_indices = @transform_3, window_bounds = array<i64: 10, 50, 128>}, {transform_indices = @transform_4, window_bounds = array<i64: 3, 50, 128>}, {pipeline_mode = #tpu.pipeline_mode<synchronous>, transform_indices = @transform_5, window_bounds = array<i64: 288, 16>}, {transform_indices = @transform_6, window_bounds = array<i64: 8, 128>}, {transform_indices = @transform_7, window_bounds = array<i64: 168, 128>}, {transform_indices = @transform_8, window_bounds = array<i64: 10, 50, 128>}, {transform_indices = @transform_9, window_bounds = array<i64: 10, 50, 128>}]} {
    %c0 = arith.constant 0 : index
    %c0_0 = arith.constant 0 : index
    %0 = vector.load %arg1[%c0, %c0_0] : memref<16x128xf32, #tpu.memory_space<vmem>>, vector<3x128xf32>
    %c8 = arith.constant 8 : index
    %c0_1 = arith.constant 0 : index
    %1 = vector.load %arg1[%c8, %c0_1] : memref<16x128xf32, #tpu.memory_space<vmem>>, vector<1x128xf32>
    %c0_2 = arith.constant 0 : index
    %c0_3 = arith.constant 0 : index
    %2 = vector.load %arg2[%c0_2, %c0_3] : memref<168x128xf32, #tpu.memory_space<vmem>>, vector<50x128xf32>
    %c56 = arith.constant 56 : index
    %c0_4 = arith.constant 0 : index
    %3 = vector.load %arg2[%c56, %c0_4] : memref<168x128xf32, #tpu.memory_space<vmem>>, vector<1x128xf32>
    %c64 = arith.constant 64 : index
    %c0_5 = arith.constant 0 : index
    %4 = vector.load %arg2[%c64, %c0_5] : memref<168x128xf32, #tpu.memory_space<vmem>>, vector<10x128xf32>
    %c80 = arith.constant 80 : index
    %c0_6 = arith.constant 0 : index
    %5 = vector.load %arg2[%c80, %c0_6] : memref<168x128xf32, #tpu.memory_space<vmem>>, vector<10x128xf32>
    %c96 = arith.constant 96 : index
    %c0_7 = arith.constant 0 : index
    %6 = vector.load %arg2[%c96, %c0_7] : memref<168x128xf32, #tpu.memory_space<vmem>>, vector<50x128xf32>
    %c152 = arith.constant 152 : index
    %c0_8 = arith.constant 0 : index
    %7 = vector.load %arg2[%c152, %c0_8] : memref<168x128xf32, #tpu.memory_space<vmem>>, vector<10x128xf32>
    %c0_9 = arith.constant 0 : index
    %c0_10 = arith.constant 0 : index
    %c0_11 = arith.constant 0 : index
    %8 = vector.load %arg3[%c0_9, %c0_10, %c0_11] : memref<10x50x128xf32, #tpu.memory_space<vmem>>, vector<10x50x128xf32>
    %c0_12 = arith.constant 0 : index
    %c0_13 = arith.constant 0 : index
    %c0_14 = arith.constant 0 : index
    %9 = vector.load %arg4[%c0_12, %c0_13, %c0_14] : memref<10x50x128xf32, #tpu.memory_space<vmem>>, vector<10x50x128xf32>
    %c0_15 = arith.constant 0 : index
    %c0_16 = arith.constant 0 : index
    %10 = vector.load %arg6[%c0_15, %c0_16] : memref<288x16xf32, #tpu.memory_space<vmem>>, vector<50x1xf32>
    %c56_17 = arith.constant 56 : index
    %c0_18 = arith.constant 0 : index
    %11 = vector.load %arg6[%c56_17, %c0_18] : memref<288x16xf32, #tpu.memory_space<vmem>>, vector<50x1xf32>
    %c112 = arith.constant 112 : index
    %c0_19 = arith.constant 0 : index
    %12 = vector.load %arg6[%c112, %c0_19] : memref<288x16xf32, #tpu.memory_space<vmem>>, vector<50x1xf32>
    %c168 = arith.constant 168 : index
    %c0_20 = arith.constant 0 : index
    %13 = vector.load %arg6[%c168, %c0_20] : memref<288x16xf32, #tpu.memory_space<vmem>>, vector<10x1xf32>
    %c184 = arith.constant 184 : index
    %c0_21 = arith.constant 0 : index
    %14 = vector.load %arg6[%c184, %c0_21] : memref<288x16xf32, #tpu.memory_space<vmem>>, vector<10x1xf32>
    %c200 = arith.constant 200 : index
    %c0_22 = arith.constant 0 : index
    %15 = vector.load %arg6[%c200, %c0_22] : memref<288x16xf32, #tpu.memory_space<vmem>>, vector<10x1xf32>
    %c216 = arith.constant 216 : index
    %c0_23 = arith.constant 0 : index
    %16 = vector.load %arg6[%c216, %c0_23] : memref<288x16xf32, #tpu.memory_space<vmem>>, vector<2x1xf32>
    %c224 = arith.constant 224 : index
    %c0_24 = arith.constant 0 : index
    %17 = vector.load %arg6[%c224, %c0_24] : memref<288x16xf32, #tpu.memory_space<vmem>>, vector<1x1xf32>
    %c232 = arith.constant 232 : index
    %c0_25 = arith.constant 0 : index
    %18 = vector.load %arg6[%c232, %c0_25] : memref<288x16xf32, #tpu.memory_space<vmem>>, vector<10x10xf32>
    %c248 = arith.constant 248 : index
    %c0_26 = arith.constant 0 : index
    %19 = vector.load %arg6[%c248, %c0_26] : memref<288x16xf32, #tpu.memory_space<vmem>>, vector<10x10xf32>
    %c264 = arith.constant 264 : index
    %c0_27 = arith.constant 0 : index
    %20 = vector.load %arg6[%c264, %c0_27] : memref<288x16xf32, #tpu.memory_space<vmem>>, vector<10x10xf32>
    %c280 = arith.constant 280 : index
    %c0_28 = arith.constant 0 : index
    %21 = vector.load %arg6[%c280, %c0_28] : memref<288x16xf32, #tpu.memory_space<vmem>>, vector<2x10xf32>
    %22 = vector.broadcast %11 : vector<50x1xf32> to vector<50x128xf32>
    %23 = vector.broadcast %3 : vector<1x128xf32> to vector<50x128xf32>
    %24 = arith.mulf %22, %23 : vector<50x128xf32>
    %25 = vector.shape_cast %0 : vector<3x128xf32> to vector<3x1x128xf32>
    %c0_29 = arith.constant 0 : index
    %c0_30 = arith.constant 0 : index
    %c0_31 = arith.constant 0 : index
    %26 = vector.load %arg5[%c0_29, %c0_30, %c0_31] : memref<3x50x128xf32, #tpu.memory_space<vmem>>, vector<3x50x128xf32>
    %27 = vector.broadcast %25 : vector<3x1x128xf32> to vector<3x50x128xf32>
    %28 = arith.mulf %27, %26 : vector<3x50x128xf32>
    %cst = arith.constant dense<0.000000e+00> : vector<50x128xf32>
    %29 = vector.multi_reduction <add>, %28, %cst [0] : vector<3x50x128xf32> to vector<50x128xf32>
    %cst_32 = arith.constant 5.000000e-01 : f32
    %30 = vector.broadcast %cst_32 : f32 to vector<50x128xf32>
    %31 = arith.mulf %2, %30 : vector<50x128xf32>
    %32 = arith.subf %29, %24 : vector<50x128xf32>
    %33 = vector.broadcast %10 : vector<50x1xf32> to vector<50x128xf32>
    %34 = arith.addf %32, %33 : vector<50x128xf32>
    %cst_33 = arith.constant 0.000000e+00 : f32
    %35 = vector.broadcast %cst_33 : f32 to vector<50x128xf32>
    %36 = arith.maximumf %34, %35 : vector<50x128xf32>
    %cst_34 = arith.constant 5.000000e-01 : f32
    %37 = vector.broadcast %cst_34 : f32 to vector<50x128xf32>
    %38 = arith.mulf %37, %36 : vector<50x128xf32>
    %39 = arith.addf %31, %38 : vector<50x128xf32>
    %40 = vector.broadcast %12 : vector<50x1xf32> to vector<50x128xf32>
    %41 = arith.mulf %39, %40 : vector<50x128xf32>
    %cst_35 = arith.constant dense<0.000000e+00> : vector<128xf32>
    %42 = vector.multi_reduction <add>, %41, %cst_35 [0] : vector<50x128xf32> to vector<128xf32>
    %43 = vector.shape_cast %42 : vector<128xf32> to vector<1x128xf32>
    %cst_36 = arith.constant 5.000000e-01 : f32
    %44 = vector.broadcast %cst_36 : f32 to vector<1x128xf32>
    %45 = arith.mulf %3, %44 : vector<1x128xf32>
    %46 = vector.broadcast %17 : vector<1x1xf32> to vector<1x128xf32>
    %47 = arith.addf %43, %46 : vector<1x128xf32>
    %cst_37 = arith.constant 0.000000e+00 : f32
    %48 = vector.broadcast %cst_37 : f32 to vector<1x128xf32>
    %49 = arith.maximumf %47, %48 : vector<1x128xf32>
    %cst_38 = arith.constant 5.000000e-01 : f32
    %50 = vector.broadcast %cst_38 : f32 to vector<1x128xf32>
    %51 = arith.mulf %50, %49 : vector<1x128xf32>
    %52 = arith.addf %45, %51 : vector<1x128xf32>
    %53 = vector.shape_cast %39 : vector<50x128xf32> to vector<1x50x128xf32>
    %54 = vector.broadcast %53 : vector<1x50x128xf32> to vector<10x50x128xf32>
    %55 = arith.mulf %54, %9 : vector<10x50x128xf32>
    %cst_39 = arith.constant dense<0.000000e+00> : vector<10x128xf32>
    %56 = vector.multi_reduction <add>, %55, %cst_39 [1] : vector<10x50x128xf32> to vector<10x128xf32>
    %cst_40 = arith.constant dense<0.000000e+00> : vector<10x128xf32>
    %57 = tpu.matmul %18, %5, %cst_40 {dimension_numbers = #tpu.dot_dimension_numbers<[1], [0], [0], [1], [0, 0, 1, 1], [], []>} : vector<10x10xf32>, vector<10x128xf32>, vector<10x128xf32> -> vector<10x128xf32>
    %cst_41 = arith.constant 5.000000e-01 : f32
    %58 = vector.broadcast %cst_41 : f32 to vector<10x128xf32>
    %59 = arith.mulf %58, %57 : vector<10x128xf32>
    %60 = math.tanh %59 : vector<10x128xf32>
    %cst_42 = arith.constant 1.000000e+00 : f32
    %61 = vector.broadcast %cst_42 : f32 to vector<10x128xf32>
    %62 = arith.addf %60, %61 : vector<10x128xf32>
    %cst_43 = arith.constant 5.000000e-01 : f32
    %63 = vector.broadcast %cst_43 : f32 to vector<10x128xf32>
    %64 = arith.mulf %63, %62 : vector<10x128xf32>
    %cst_44 = arith.constant 5.000000e-01 : f32
    %65 = vector.broadcast %cst_44 : f32 to vector<10x128xf32>
    %66 = arith.mulf %4, %65 : vector<10x128xf32>
    %cst_45 = arith.constant 5.000000e-01 : f32
    %67 = vector.broadcast %cst_45 : f32 to vector<10x128xf32>
    %68 = arith.mulf %67, %64 : vector<10x128xf32>
    %69 = vector.broadcast %13 : vector<10x1xf32> to vector<10x128xf32>
    %70 = arith.addf %56, %69 : vector<10x128xf32>
    %cst_46 = arith.constant 0.000000e+00 : f32
    %71 = vector.broadcast %cst_46 : f32 to vector<10x128xf32>
    %72 = arith.maximumf %70, %71 : vector<10x128xf32>
    %73 = arith.mulf %68, %72 : vector<10x128xf32>
    %74 = arith.addf %66, %73 : vector<10x128xf32>
    %cst_47 = arith.constant dense<0.000000e+00> : vector<10x128xf32>
    %75 = tpu.matmul %19, %74, %cst_47 {dimension_numbers = #tpu.dot_dimension_numbers<[1], [0], [0], [1], [0, 0, 1, 1], [], []>} : vector<10x10xf32>, vector<10x128xf32>, vector<10x128xf32> -> vector<10x128xf32>
    %76 = vector.broadcast %14 : vector<10x1xf32> to vector<10x128xf32>
    %77 = vector.broadcast %1 : vector<1x128xf32> to vector<10x128xf32>
    %78 = arith.mulf %76, %77 : vector<10x128xf32>
    %cst_48 = arith.constant dense<0.000000e+00> : vector<10x128xf32>
    %79 = tpu.matmul %20, %5, %cst_48 {dimension_numbers = #tpu.dot_dimension_numbers<[1], [0], [0], [1], [0, 0, 1, 1], [], []>} : vector<10x10xf32>, vector<10x128xf32>, vector<10x128xf32> -> vector<10x128xf32>
    %cst_49 = arith.constant 5.000000e-01 : f32
    %80 = vector.broadcast %cst_49 : f32 to vector<10x128xf32>
    %81 = arith.mulf %5, %80 : vector<10x128xf32>
    %82 = arith.addf %79, %75 : vector<10x128xf32>
    %83 = arith.addf %82, %78 : vector<10x128xf32>
    %84 = vector.broadcast %15 : vector<10x1xf32> to vector<10x128xf32>
    %85 = arith.addf %83, %84 : vector<10x128xf32>
    %cst_50 = arith.constant 0.000000e+00 : f32
    %86 = vector.broadcast %cst_50 : f32 to vector<10x128xf32>
    %87 = arith.maximumf %85, %86 : vector<10x128xf32>
    %cst_51 = arith.constant 5.000000e-01 : f32
    %88 = vector.broadcast %cst_51 : f32 to vector<10x128xf32>
    %89 = arith.mulf %88, %87 : vector<10x128xf32>
    %90 = arith.addf %81, %89 : vector<10x128xf32>
    %cst_52 = arith.constant 0.0909090936 : f32
    %91 = vector.broadcast %cst_52 : f32 to vector<50x128xf32>
    %92 = arith.mulf %91, %39 : vector<50x128xf32>
    %cst_53 = arith.constant 0.909090936 : f32
    %93 = vector.broadcast %cst_53 : f32 to vector<50x128xf32>
    %94 = arith.mulf %93, %6 : vector<50x128xf32>
    %95 = arith.addf %92, %94 : vector<50x128xf32>
    %cst_54 = arith.constant 0.0909090936 : f32
    %96 = vector.broadcast %cst_54 : f32 to vector<10x128xf32>
    %97 = arith.mulf %96, %90 : vector<10x128xf32>
    %cst_55 = arith.constant 0.909090936 : f32
    %98 = vector.broadcast %cst_55 : f32 to vector<10x128xf32>
    %99 = arith.mulf %98, %7 : vector<10x128xf32>
    %100 = arith.addf %97, %99 : vector<10x128xf32>
    %101 = vector.shape_cast %100 : vector<10x128xf32> to vector<10x1x128xf32>
    %102 = vector.shape_cast %39 : vector<50x128xf32> to vector<1x50x128xf32>
    %103 = vector.broadcast %101 : vector<10x1x128xf32> to vector<10x50x128xf32>
    %104 = vector.broadcast %102 : vector<1x50x128xf32> to vector<10x50x128xf32>
    %105 = arith.mulf %103, %104 : vector<10x50x128xf32>
    %106 = vector.shape_cast %90 : vector<10x128xf32> to vector<10x1x128xf32>
    %107 = vector.shape_cast %95 : vector<50x128xf32> to vector<1x50x128xf32>
    %108 = vector.broadcast %106 : vector<10x1x128xf32> to vector<10x50x128xf32>
    %109 = vector.broadcast %107 : vector<1x50x128xf32> to vector<10x50x128xf32>
    %110 = arith.mulf %108, %109 : vector<10x50x128xf32>
    %111 = arith.subf %105, %110 : vector<10x50x128xf32>
    %cst_56 = arith.constant 5.000000e-01 : f32
    %112 = vector.broadcast %cst_56 : f32 to vector<10x50x128xf32>
    %113 = arith.mulf %112, %111 : vector<10x50x128xf32>
    %114 = arith.addf %8, %113 : vector<10x50x128xf32>
    %c0_57 = arith.constant 0 : index
    %c0_58 = arith.constant 0 : index
    %c0_59 = arith.constant 0 : index
    %115 = vector.load %arg10[%c0_57, %c0_58, %c0_59] : memref<10x50x128xf32, #tpu.memory_space<vmem>>, vector<10x50x128xf32>
    tpu.vector_store %arg10[%c0_57, %c0_58, %c0_59], %114 {strides = array<i32>} : memref<10x50x128xf32, #tpu.memory_space<vmem>>, vector<10x50x128xf32>,
    %cst_60 = arith.constant 7.500000e-01 : f32
    %116 = vector.broadcast %cst_60 : f32 to vector<10x50x128xf32>
    %117 = arith.mulf %9, %116 : vector<10x50x128xf32>
    %cst_61 = arith.constant 2.500000e-01 : f32
    %118 = vector.broadcast %cst_61 : f32 to vector<10x50x128xf32>
    %119 = arith.mulf %118, %8 : vector<10x50x128xf32>
    %120 = arith.addf %117, %119 : vector<10x50x128xf32>
    %c0_62 = arith.constant 0 : index
    %c0_63 = arith.constant 0 : index
    %c0_64 = arith.constant 0 : index
    %121 = vector.load %arg9[%c0_62, %c0_63, %c0_64] : memref<10x50x128xf32, #tpu.memory_space<vmem>>, vector<10x50x128xf32>
    tpu.vector_store %arg9[%c0_62, %c0_63, %c0_64], %120 {strides = array<i32>} : memref<10x50x128xf32, #tpu.memory_space<vmem>>, vector<10x50x128xf32>,
    %cst_65 = arith.constant dense<0.000000e+00> : vector<2x128xf32>
    %122 = tpu.matmul %21, %74, %cst_65 {dimension_numbers = #tpu.dot_dimension_numbers<[1], [0], [0], [1], [0, 0, 1, 1], [], []>} : vector<2x10xf32>, vector<10x128xf32>, vector<2x128xf32> -> vector<2x128xf32>
    %123 = vector.broadcast %16 : vector<2x1xf32> to vector<2x128xf32>
    %124 = arith.addf %122, %123 : vector<2x128xf32>
    %c0_66 = arith.constant 0 : index
    %c0_67 = arith.constant 0 : index
    %125 = vector.load %arg7[%c0_66, %c0_67] : memref<8x128xf32, #tpu.memory_space<vmem>>, vector<2x128xf32>
    tpu.vector_store %arg7[%c0_66, %c0_67], %124 {strides = array<i32>} : memref<8x128xf32, #tpu.memory_space<vmem>>, vector<2x128xf32>,
    %c0_68 = arith.constant 0 : index
    %c0_69 = arith.constant 0 : index
    %126 = vector.load %arg8[%c0_68, %c0_69] : memref<168x128xf32, #tpu.memory_space<vmem>>, vector<50x128xf32>
    tpu.vector_store %arg8[%c0_68, %c0_69], %39 {strides = array<i32>} : memref<168x128xf32, #tpu.memory_space<vmem>>, vector<50x128xf32>,
    %c56_70 = arith.constant 56 : index
    %c0_71 = arith.constant 0 : index
    %127 = vector.load %arg8[%c56_70, %c0_71] : memref<168x128xf32, #tpu.memory_space<vmem>>, vector<1x128xf32>
    tpu.vector_store %arg8[%c56_70, %c0_71], %52 {strides = array<i32>} : memref<168x128xf32, #tpu.memory_space<vmem>>, vector<1x128xf32>,
    %c64_72 = arith.constant 64 : index
    %c0_73 = arith.constant 0 : index
    %128 = vector.load %arg8[%c64_72, %c0_73] : memref<168x128xf32, #tpu.memory_space<vmem>>, vector<10x128xf32>
    tpu.vector_store %arg8[%c64_72, %c0_73], %74 {strides = array<i32>} : memref<168x128xf32, #tpu.memory_space<vmem>>, vector<10x128xf32>,
    %c80_74 = arith.constant 80 : index
    %c0_75 = arith.constant 0 : index
    %129 = vector.load %arg8[%c80_74, %c0_75] : memref<168x128xf32, #tpu.memory_space<vmem>>, vector<10x128xf32>
    tpu.vector_store %arg8[%c80_74, %c0_75], %90 {strides = array<i32>} : memref<168x128xf32, #tpu.memory_space<vmem>>, vector<10x128xf32>,
    %c96_76 = arith.constant 96 : index
    %c0_77 = arith.constant 0 : index
    %130 = vector.load %arg8[%c96_76, %c0_77] : memref<168x128xf32, #tpu.memory_space<vmem>>, vector<50x128xf32>
    tpu.vector_store %arg8[%c96_76, %c0_77], %95 {strides = array<i32>} : memref<168x128xf32, #tpu.memory_space<vmem>>, vector<50x128xf32>,
    %c152_78 = arith.constant 152 : index
    %c0_79 = arith.constant 0 : index
    %131 = vector.load %arg8[%c152_78, %c0_79] : memref<168x128xf32, #tpu.memory_space<vmem>>, vector<10x128xf32>
    tpu.vector_store %arg8[%c152_78, %c0_79], %100 {strides = array<i32>} : memref<168x128xf32, #tpu.memory_space<vmem>>, vector<10x128xf32>,
    return
  }
  func.func @transform_0(%arg0: i32) -> (i32, i32) {
    %c0_i32 = arith.constant 0 : i32
    %c0_i32_0 = arith.constant 0 : i32
    return %c0_i32, %arg0 : i32, i32
  }
  func.func @transform_1(%arg0: i32) -> (i32, i32) {
    %c0_i32 = arith.constant 0 : i32
    %c0_i32_0 = arith.constant 0 : i32
    return %c0_i32, %arg0 : i32, i32
  }
  func.func @transform_2(%arg0: i32) -> (i32, i32, i32) {
    %c0_i32 = arith.constant 0 : i32
    %c0_i32_0 = arith.constant 0 : i32
    %c0_i32_1 = arith.constant 0 : i32
    return %c0_i32, %c0_i32_0, %arg0 : i32, i32, i32
  }
  func.func @transform_3(%arg0: i32) -> (i32, i32, i32) {
    %c0_i32 = arith.constant 0 : i32
    %c0_i32_0 = arith.constant 0 : i32
    %c0_i32_1 = arith.constant 0 : i32
    return %c0_i32, %c0_i32_0, %arg0 : i32, i32, i32
  }
  func.func @transform_4(%arg0: i32) -> (i32, i32, i32) {
    %c0_i32 = arith.constant 0 : i32
    %c0_i32_0 = arith.constant 0 : i32
    %c0_i32_1 = arith.constant 0 : i32
    return %c0_i32, %c0_i32_0, %arg0 : i32, i32, i32
  }
  func.func @transform_5(%arg0: i32) -> (i32, i32) {
    %c0_i32 = arith.constant 0 : i32
    %c0_i32_0 = arith.constant 0 : i32
    %c0_i32_1 = arith.constant 0 : i32
    return %c0_i32, %c0_i32_0 : i32, i32
  }
  func.func @transform_6(%arg0: i32) -> (i32, i32) {
    %c0_i32 = arith.constant 0 : i32
    %c0_i32_0 = arith.constant 0 : i32
    return %c0_i32, %arg0 : i32, i32
  }
  func.func @transform_7(%arg0: i32) -> (i32, i32) {
    %c0_i32 = arith.constant 0 : i32
    %c0_i32_0 = arith.constant 0 : i32
    return %c0_i32, %arg0 : i32, i32
  }
  func.func @transform_8(%arg0: i32) -> (i32, i32, i32) {
    %c0_i32 = arith.constant 0 : i32
    %c0_i32_0 = arith.constant 0 : i32
    %c0_i32_1 = arith.constant 0 : i32
    return %c0_i32, %c0_i32_0, %arg0 : i32, i32, i32
  }
  func.func @transform_9(%arg0: i32) -> (i32, i32, i32) {
    %c0_i32 = arith.constant 0 : i32
    %c0_i32_0 = arith.constant 0 : i32
    %c0_i32_1 = arith.constant 0 : i32
    return %c0_i32, %c0_i32_0, %arg0 : i32, i32, i32
  }
}

</mosaic_0001>

<bundles_post_ra>
// kernel: step.1
= control target key start
LH: loop header
LB: loop body
LE: loop exit
PB: predicated region body
PF: predicated region fallthrough
CT: control target
= control target key end

     0   :  { %15 = vsyncpa [#allocation3], 0  ;;  %s3655_s0 = inlined_call_operand.vmem [shape: f32[16,128], index: 0, kind: input, shape index: {}]   ;;  %s3656_s1 = inlined_call_operand.vmem [shape: f32[168,128], index: 1, kind: input, shape index: {}, may-alias: {1,7}]   ;;  %s3657_s2 = inlined_call_operand.hbm [shape: f32[10,50,128], index: 2, kind: input, shape index: {}, may-alias: {2,9}]   ;;  %s3658_s3 = inlined_call_operand.hbm [shape: f32[10,50,128], index: 3, kind: input, shape index: {}, may-alias: {3,8}]   ;;  %s3659_s4 = inlined_call_operand.vmem [shape: f32[3,50,128], index: 4, kind: input, shape index: {}]   ;;  %s3660_s5 = inlined_call_operand.vmem [shape: f32[288,16], index: 5, kind: input, shape index: {}]   ;;  %s3661_s6 = inlined_call_operand.vmem [shape: f32[8,128], index: 6, kind: output, shape index: {0}]   ;;  %s3662_s7 = inlined_call_operand.vmem [shape: f32[168,128], index: 7, kind: output, shape index: {1}, may-alias: {1,7}]   ;;  %s3663_s8 = inlined_call_operand.hbm [shape: f32[10,50,128], index: 8, kind: output, shape index: {2}, may-alias: {3,8}]   ;;  %s3664_s9 = inlined_call_operand.hbm [shape: f32[10,50,128], index: 9, kind: output, shape index: {3}, may-alias: {2,9}]  }
   0x1   :  { %16 = vsyncpa [#allocation6], 0 }
   0x2   :  { %17 = vsyncpa [#allocation4], 0 }
   0x3   :  { %18 = vsyncpa [#allocation9], 0  ;;  %s27_s11 = sshll.u32 %s3657_s2, 4  ;;  %s2025_s12 = smov [#allocation2]   ;;  %s28_s11 = int_to_ptr.hbm [resolvable:$true] %s27_s11 }
   0x4   :  { %s29_s13 = sshll.u32 %s2025_s12, 4  ;;  %s40_s16 = sshll.u32 %s3658_s3, 4  ;;  %s30_s13 = int_to_ptr.vmem [resolvable:$true] %s29_s13  ;;  %s41_s16 = int_to_ptr.hbm [resolvable:$true] %s40_s16 }
   0x5   :  { %s2026_s17 = smov 128   ;;  %s2027_s18 = smov 8  }
   0x6   :  { %35 = dma.hbm_to_vmem [thread:$0]  %s28_s11, 8960, %s30_s13, [#allocation3], %s2026_s17, %s2026_s17, %s2027_s18  }
   0x7   :  { %s2028_s19 = smov [#allocation5]  }
   0x8   :  { %s42_s20 = sshll.u32 %s2028_s19, 4  ;;  %s43_s20 = int_to_ptr.vmem [resolvable:$true] %s42_s20 }
   0x9   :  { %48 = dma.hbm_to_vmem [thread:$0]  %s41_s16, 8960, %s43_s20, [#allocation6], %s2026_s17, %s2026_s17, %s2027_s18  }
   0xa   :  { %2017 = dma.done.wait [#allocation3], 8960  }
   0xb   :  { %2018 = vsyncadd [#allocation3], 4294958336 }
   0xc   :  { %2019 = dma.done.wait [#allocation6], 8960  }
   0xd   :  { %2020 = vsyncadd [#allocation6], 4294958336  ;;  %v2029_v0 = vmov 0   ;;  %v233_v1 = vld [vmem:[%s3660_s5 + $0x48] sm:$0xff]  ;;  %v231_v2 = vld [vmem:[%s3660_s5 + $0x38] sm:$0xff]  ;;  %vm366_vm0 = vcmask 1041408  }
   0xe   :  { %1843 = vset.pattern.permute.xlu2 %v2029_v0  ;;  %1842 = vset.pattern.permute.xlu1 %v2029_v0  ;;  %v224_v3 = vld [vmem:[%s3660_s5] sm:$0xff]  ;;  %v74_v4 = vld [vmem:[%s3656_s1 + $0x58] sm:$0x3]  ;;  %v73_v5 = vld [vmem:[%s3656_s1 + $0x50] sm:$0xff]  ;;  %vm714_vm1 = vcmask 80896   ;;  %vm816_vm2 = vcmask 1041409  }
   0xf   :  { %1841 = vset.pattern.permute.xlu0 %v2029_v0  ;;  %272 = vperm.xlu1 %1842, %v233_v1   ;;  %v253_v6 = vld [vmem:[%s3660_s5 + $0xe8] sm:$0xff]  ;;  %v234_v7 = vld [vmem:[%s3660_s5 + $0x50] sm:$0xff]  ;;  %v232_v8 = vld [vmem:[%s3660_s5 + $0x40] sm:$0xff]  ;;  %vm819_vm3 = vcmask 1042434   ;;  %vm822_vm4 = vcmask 1043459   ;;  %vm825_vm5 = vcmask 1044484  }
  0x10   :  { %262 = vperm.xlu0 %1841, %v231_v2   ;;  %388 = vperm.xlu2 %1843, %v224_v3   ;;  %v225_v9 = vld [vmem:[%s3660_s5 + $0x8] sm:$0xff]  ;;  %v254_v10 = vld [vmem:[%s3660_s5 + $0xf0] sm:$0x3]  ;;  %v235_v11 = vld [vmem:[%s3660_s5 + $0x58] sm:$0xff]  ;;  %vm828_vm6 = vcmask 1045509   ;;  %vm831_vm7 = vcmask 1046534  }
  0x11   :  { %1823 = vmatpush.msk.msra.mxu0 %vm366_vm0, %v74_v4  ;;  %1829 = vmatpush.msk.msra.mxu2 %vm366_vm0, %v74_v4  ;;  %v226_v12 = vld [vmem:[%s3660_s5 + $0x10] sm:$0xff]  ;;  %v236_v13 = vld [vmem:[%s3660_s5 + $0x60] sm:$0xff]  ;;  %v227_v14 = vld [vmem:[%s3660_s5 + $0x18] sm:$0xff]  ;;  %vm834_vm8 = vcmask 1047559   ;;  %s2030_s15 = smov [#allocation7]  }
  0x12   :  { %v237_v15 = vld [vmem:[%s3660_s5 + $0x68] sm:$0x3]  ;;  %v228_v16 = vld [vmem:[%s3660_s5 + $0x20] sm:$0xff]  ;;  %v230_v18 = vld [vmem:[%s3660_s5 + $0x30] sm:$0x3]  ;;  %s1785_s16 = sshll.u32 %s2030_s15, 4  ;;  %s1786_s16 = int_to_ptr.vmem [resolvable:$true] %s1785_s16 }
  0x13   :  { %739 = vmatpush.msra.mxu0 %v73_v5  ;;  %912 = vmatpush.msra.mxu2 %v73_v5  ;;  %v229_v17 = vld [vmem:[%s3660_s5 + $0x28] sm:$0xff]  ;;  %v246_v20 = vld [vmem:[%s3660_s5 + $0xb0] sm:$0x3]  ;;  %v239_v22 = vld [vmem:[%s3660_s5 + $0x78] sm:$0xff] }
  0x14   :  { %1824 = vmatmul.msk.f32.vlgmr.msra.gmra.mxu0 %vm714_vm1, %v253_v6  ;;  %v245_v19 = vld [vmem:[%s3660_s5 + $0xa8] sm:$0xff]  ;;  %v238_v21 = vld [vmem:[%s3660_s5 + $0x70] sm:$0xff]  ;;  %v240_v23 = vld [vmem:[%s3660_s5 + $0x80] sm:$0xff] }
  0x15   :  { %v241_v24 = vld [vmem:[%s3660_s5 + $0x88] sm:$0xff]  ;;  %v247_v25 = vld [vmem:[%s3660_s5 + $0xb8] sm:$0xff]  ;;  %v248_v26 = vld [vmem:[%s3660_s5 + $0xc0] sm:$0x3] }
  0x16   :  { %v242_v27 = vld [vmem:[%s3660_s5 + $0x90] sm:$0xff]  ;;  %v243_v28 = vld [vmem:[%s3660_s5 + $0x98] sm:$0xff]  ;;  %v244_v29 = vld [vmem:[%s3660_s5 + $0xa0] sm:$0x3] }
  0x17   :  { %277 = vperm.xlu1 %1842, %v234_v7   ;;  %v249_v30 = vld [vmem:[%s3660_s5 + $0xc8] sm:$0xff]  ;;  %v250_v31 = vld [vmem:[%s3660_s5 + $0xd0] sm:$0x3]  ;;  %v252_v32 = vld [vmem:[%s3660_s5 + $0xe0] sm:$0x1] }
  0x18   :  { %267 = vperm.xlu0 %1841, %v232_v8   ;;  %393 = vperm.xlu2 %1843, %v225_v9   ;;  %v251_v33 = vld [vmem:[%s3660_s5 + $0xd8] sm:$0x3]  ;;  %v61_v34 = vld [vmem:[%s3655_s0] sm:$0x7]  ;;  %v320_v45 = vld [vmem:[%s3659_s4 + $0x70] sm:$0xff] }
  0x19   :  { %v304_v35 = vrot.slane %v61_v34, 1  ;;  %v305_v36 = vrot.slane %v61_v34, 2  ;;  %v2200_v37 = vperm.slane %v61_v34, 0  ;;  %v306_v39 = vld [vmem:[%s3659_s4] sm:$0xff]  ;;  %v313_v40 = vld [vmem:[%s3659_s4 + $0x38] sm:$0xff]  ;;  %v307_v48 = vld [vmem:[%s3659_s4 + $0x8] sm:$0xff] }
  0x1a   :  { %v314_v49 = vld [vmem:[%s3659_s4 + $0x40] sm:$0xff]  ;;  %v2227_v50 = vld [vmem:[%s3656_s1 + $0x38] ss:$0 sm:$0xff]  ;;  %v308_v55 = vld [vmem:[%s3659_s4 + $0x10] sm:$0xff] }
  0x1b   :  { %v2202_v38 = vperm.slane %v304_v35, 0  ;;  %v2210_v42 = vperm.slane %v305_v36, 0  ;;  %v333_v43 = vmul.f32 %v2200_v37, %v306_v39  ;;  %v334_v53 = vmul.f32 %v2200_v37, %v307_v48  ;;  %v315_v56 = vld [vmem:[%s3659_s4 + $0x48] sm:$0xff]  ;;  %v321_v59 = vld [vmem:[%s3659_s4 + $0x78] sm:$0xff]  ;;  %v63_v63 = vld [vmem:[%s3656_s1] sm:$0xff] }
  0x1c   :  { %1825 = vmatmul.msk.f32.gmra.mxu0 %vm714_vm1, %v254_v10  ;;  %v335_v61 = vmul.f32 %v2200_v37, %v308_v55  ;;  %v322_v3 = vld [vmem:[%s3659_s4 + $0x80] sm:$0xff]  ;;  %v317_v5 = vld [vmem:[%s3659_s4 + $0x58] sm:$0xff]  ;;  %v372_v7 = vmul.f32 0.5, %v63_v63  ;;  %v311_v39 = vld [vmem:[%s3659_s4 + $0x28] sm:$0xff] }
  0x1d   :  { %v340_v44 = vmul.f32 %v2202_v38, %v313_v40  ;;  %v347_v46 = vmul.f32 %v2210_v42, %v320_v45  ;;  %v341_v54 = vmul.f32 %v2202_v38, %v314_v49  ;;  %v342_v62 = vmul.f32 %v2202_v38, %v315_v56  ;;  %v310_v4 = vld [vmem:[%s3659_s4 + $0x20] sm:$0xff]  ;;  %v309_v10 = vld [vmem:[%s3659_s4 + $0x18] sm:$0xff]  ;;  %v2320_v63 = vld [vmem:[#allocation5 + $0x1c0] sm:$0xff] }
  0x1e   :  { %v348_v1 = vmul.f32 %v2210_v42, %v321_v59  ;;  %v349_v8 = vmul.f32 %v2210_v42, %v322_v3  ;;  %v318_v40 = vld [vmem:[%s3659_s4 + $0x60] sm:$0xff] }
  0x1f   :  { %398 = vperm.xlu1 %1842, %v226_v12   ;;  %v354_v47 = vadd.f32 %v340_v44, %v333_v43  ;;  %v356_v2 = vadd.f32 %v341_v54, %v334_v53  ;;  %v358_v9 = vadd.f32 %v342_v62, %v335_v61  ;;  %v326_v49 = vld [vmem:[%s3659_s4 + $0xa0] sm:$0x3]  ;;  %v338_v53 = vmul.f32 %v2200_v37, %v311_v39 }
  0x20   :  { %282 = vperm.xlu0 %1841, %v235_v11   ;;  %287 = vperm.xlu2 %1843, %v236_v13   ;;  %v316_v11 = vld [vmem:[%s3659_s4 + $0x50] sm:$0xff]  ;;  %v345_v54 = vmul.f32 %v2202_v38, %v318_v40  ;;  %v353_v62 = vmul.f32 %v2210_v42, %v326_v49 }
  0x21   :  { %v355_v52 = vadd.f32 %v354_v47, %v347_v46  ;;  %v357_v13 = vadd.f32 %v356_v2, %v348_v1 }
  0x27   :  { %292 = vperm.xlu1 %1842, %v237_v15   ;;  %v337_v15 = vmul.f32 %v2200_v37, %v310_v4 }
  0x28   :  { %403 = vperm.xlu0 %1841, %v227_v14   ;;  %408 = vperm.xlu2 %1843, %v228_v16   ;;  %v324_v14 = vld [vmem:[%s3659_s4 + $0x90] sm:$0xff]  ;;  %v344_v16 = vmul.f32 %v2202_v38, %v317_v5  ;;  %v2327_v5 = vld [vmem:[#allocation5 + $0x1f8] sm:$0xff] }
  0x2f   :  { %418 = vperm.xlu1 %1842, %v230_v18  }
  0x30   :  { %413 = vperm.xlu0 %1841, %v229_v17   ;;  %761 = vperm.xlu2 %1843, %v245_v19  }
  0x37   :  { %451 = vperm.xlu1 %1842, %v238_v21   ;;  %v336_v21 = vmul.f32 %v2200_v37, %v309_v10  ;;  %v364_v10 = vadd.f32 %v345_v54, %v338_v53  ;;  %v2381_v54 = vld [vmem:[#allocation5 + $0x218] sm:$0xff] }
  0x38   :  { %765 = vperm.xlu0 %1841, %v246_v20   ;;  %456 = vperm.xlu2 %1843, %v239_v22   ;;  %v343_v22 = vmul.f32 %v2202_v38, %v316_v11 }
  0x3a   :  { %v360_v36 = vadd.f32 %v343_v22, %v336_v21 }
  0x3f   :  { %466 = vperm.xlu1 %1842, %v241_v24   ;;  %v351_v24 = vmul.f32 %v2210_v42, %v324_v14 }
  0x40   :  { %461 = vperm.xlu0 %1841, %v240_v23   ;;  %878 = vperm.xlu2 %1843, %v247_v25   ;;  %v359_v25 = vadd.f32 %v358_v9, %v349_v8 }
  0x47   :  { %471 = vperm.xlu1 %1842, %v242_v27  }
  0x48   :  { %883 = vperm.xlu0 %1841, %v248_v26   ;;  %476 = vperm.xlu2 %1843, %v243_v28   ;;  %v323_v26 = vld [vmem:[%s3659_s4 + $0x88] sm:$0xff] }
  0x49   :  { %v350_v35 = vmul.f32 %v2210_v42, %v323_v26 }
  0x4b   :  { %v361_v59 = vadd.f32 %v360_v36, %v350_v35 }
  0x4f   :  { %924 = vperm.xlu1 %1842, %v249_v30   ;;  %v362_v30 = vadd.f32 %v344_v16, %v337_v15  ;;  %v370_v16 = vsel %vm366_vm0, %v353_v62, 0.0 }
  0x50   :  { %481 = vperm.xlu0 %1841, %v244_v29   ;;  %929 = vperm.xlu2 %1843, %v250_v31   ;;  %v312_v31 = vld [vmem:[%s3659_s4 + $0x30] sm:$0x3] }
  0x51   :  { %v363_v46 = vadd.f32 %v362_v30, %v351_v24  ;;  %v2352_v24 = vld [vmem:[#allocation5 + $0x208] sm:$0xff] }
  0x57   :  { %1729 = vperm.xlu1 %1842, %v251_v33   ;;  %v64_v33 = vld [vmem:[%s3656_s1 + $0x8] sm:$0xff] }
  0x58   :  { %507 = vperm.xlu0 %1841, %v252_v32   ;;  %v319_v32 = vld [vmem:[%s3659_s4 + $0x68] sm:$0x3]  ;;  %v373_v44 = vmul.f32 0.5, %v64_v33 }
  0x59   :  { %v346_v43 = vmul.f32 %v2202_v38, %v319_v32 }
  0x5b   :  { %v368_v38 = vsel %vm366_vm0, %v346_v43, 0.0 }
  0x6a   :  { %v389_v41 = vpop.permute.xlu2 %388 }
  0x72   :  { %v394_v51 = vpop.permute.xlu2 %393 }
  0x7a   :  { %v2271_v23 = vpop.permute.xlu2 %287 }
  0x81   :  { %v273_v57 = vpop.permute.xlu1 %272 }
  0x82   :  { %v263_v58 = vpop.permute.xlu0 %262  ;;  %v298_v27 = vmul.f32 %v2227_v50, %v273_v57 }
  0x83   :  { %v296_v60 = vmul.f32 %v2227_v50, %v263_v58 }
  0x84   :  { %v381_v48 = vsub.f32 %v359_v25, %v298_v27 }
  0x85   :  { %v379_v0 = vsub.f32 %v355_v52, %v296_v60  ;;  %v325_v60 = vld [vmem:[%s3659_s4 + $0x98] sm:$0xff]  ;;  %s1787_s4 = sshll.u32 %s3663_s8, 4  ;;  %s1788_s4 = int_to_ptr.hbm [resolvable:$true] %s1787_s4 }
  0x86   :  { %v352_v9 = vmul.f32 %v2210_v42, %v325_v60 }
  0x87   :  { %v421_v6 = vadd.f32 %v389_v41, %v379_v0  ;;  %v339_v41 = vmul.f32 %v2200_v37, %v312_v31  ;;  %v2322_v0 = vld [vmem:[#allocation5 + $0x1c8] sm:$0xff] }
  0x88   :  { %v365_v32 = vadd.f32 %v364_v10, %v352_v9  ;;  %v216_v9 = vld [vmem:[#allocation5 + $0x1f0] sm:$0x3] }
  0x89   :  { %v428_v12 = vmax.f32 %v421_v6, 0.0  ;;  %v278_v17 = vpop.permute.xlu1 %277  ;;  %v367_v37 = vsel %vm366_vm0, %v339_v41, 0.0  ;;  %v2329_v6 = vld [vmem:[#allocation5 + $0x200] sm:$0xff] }
  0x8a   :  { %v268_v18 = vpop.permute.xlu0 %267  ;;  %v299_v1 = vmul.f32 %v2227_v50, %v278_v17  ;;  %v369_v15 = vadd.f32 %v368_v38, %v367_v37  ;;  %v2341_v17 = vld [vmem:[#allocation5 + $0x1d0] sm:$0xff] }
  0x8b   :  { %v435_v19 = vmul.f32 0.5, %v428_v12  ;;  %v297_v20 = vmul.f32 %v2227_v50, %v268_v18 }
  0x8c   :  { %v382_v22 = vsub.f32 %v361_v59, %v299_v1  ;;  %v371_v36 = vadd.f32 %v370_v16, %v369_v15 }
  0x8d   :  { %v2278_v28 = vadd.f32 %v435_v19, %v372_v7  ;;  %v380_v29 = vsub.f32 %v357_v13, %v297_v20  ;;  %v409_v7 = vpop.permute.xlu2 %408 }
  0x8f   :  { %1756 = vst [vmem:[%s3662_s7] sm:$0xff] %v2278_v28  ;;  %v422_v34 = vadd.f32 %v394_v51, %v380_v29  ;;  %v570_v13 = vmul.f32 %v2278_v28, %v2320_v63  ;;  %v577_v42 = vmul.f32 %v2278_v28, %v2327_v5 }
  0x91   :  { %v429_v45 = vmax.f32 %v422_v34, 0.0  ;;  %v399_v52 = vpop.permute.xlu1 %398  ;;  %v301_v34 = vmul.f32 %v2227_v50, %v2271_v23  ;;  %v214_v23 = vld [vmem:[#allocation5 + $0x1e0] sm:$0xff] }
  0x92   :  { %v283_v51 = vpop.permute.xlu0 %282  ;;  %v423_v58 = vadd.f32 %v399_v52, %v381_v48  ;;  %v2371_v48 = vld [vmem:[#allocation5 + $0x210] sm:$0xff] }
  0x93   :  { %v436_v55 = vmul.f32 0.5, %v429_v45  ;;  %v300_v57 = vmul.f32 %v2227_v50, %v283_v51  ;;  %v384_v52 = vsub.f32 %v365_v32, %v301_v34  ;;  %v1507_v32 = vmul.f32 0.75, %v214_v23  ;;  %v146_v34 = vld [vmem:[#allocation2 + $0x1f0] sm:$0x3] }
  0x94   :  { %v430_v4 = vmax.f32 %v423_v58, 0.0 }
  0x95   :  { %v2325_v2 = vadd.f32 %v436_v55, %v373_v44  ;;  %v383_v3 = vsub.f32 %v363_v46, %v300_v57 }
  0x96   :  { %v65_v47 = vld [vmem:[%s3656_s1 + $0x10] sm:$0xff]  ;;  %v67_v56 = vld [vmem:[%s3656_s1 + $0x20] sm:$0xff]  ;;  %v437_v12 = vmul.f32 0.5, %v430_v4 }
  0x97   :  { %v374_v61 = vmul.f32 0.5, %v65_v47  ;;  %v376_v8 = vmul.f32 0.5, %v67_v56  ;;  %1757 = vst [vmem:[%s3662_s7 + $0x8] sm:$0xff] %v2325_v2  ;;  %v425_v11 = vadd.f32 %v409_v7, %v383_v3  ;;  %v571_v14 = vmul.f32 %v2325_v2, %v2322_v0  ;;  %v213_v47 = vld [vmem:[#allocation5 + $0x1d8] sm:$0xff] }
  0x98   :  { %v578_v18 = vmul.f32 %v2325_v2, %v2329_v6 }
  0x99   :  { %v432_v19 = vmax.f32 %v425_v11, 0.0  ;;  %v2347_v20 = vadd.f32 %v437_v12, %v374_v61  ;;  %v688_v25 = vadd.f32 %v571_v14, %v570_v13  ;;  %v293_v27 = vpop.permute.xlu1 %292  ;;  %v140_v12 = vld [vmem:[#allocation2 + $0x1c0] sm:$0xff]  ;;  %v141_v13 = vld [vmem:[#allocation2 + $0x1c8] sm:$0xff]  ;;  %v142_v14 = vld [vmem:[#allocation2 + $0x1d0] sm:$0xff] }
  0x9a   :  { %v404_v26 = vpop.permute.xlu0 %403  ;;  %v701_v29 = vadd.f32 %v578_v18, %v577_v42  ;;  %v302_v43 = vmul.f32 %v2227_v50, %v293_v27  ;;  %v143_v42 = vld [vmem:[#allocation2 + $0x1d8] sm:$0xff]  ;;  %v222_v18 = vld [vmem:[#allocation5 + $0x220] sm:$0xff] }
  0x9b   :  { %v439_v30 = vmul.f32 0.5, %v432_v19  ;;  %v424_v31 = vadd.f32 %v404_v26, %v382_v22  ;;  %v572_v33 = vmul.f32 %v2347_v20, %v2341_v17  ;;  %v579_v39 = vmul.f32 %v2347_v20, %v2352_v24 }
  0x9c   :  { %v385_v53 = vsub.f32 %v371_v36, %v302_v43  ;;  %v1503_v19 = vmul.f32 0.75, %v2320_v63  ;;  %v1505_v22 = vmul.f32 0.75, %v2341_v17  ;;  %v1573_v36 = vmul.f32 0.25, %v140_v12  ;;  %v153_v12 = vld [vmem:[#allocation2 + $0x228] sm:$0x3] }
  0x9d   :  { %v2364_v40 = vadd.f32 %v439_v30, %v376_v8  ;;  %v431_v41 = vmax.f32 %v424_v31, 0.0  ;;  %v689_v44 = vadd.f32 %v688_v25, %v572_v33  ;;  %v702_v45 = vadd.f32 %v701_v29, %v579_v39  ;;  %v215_v8 = vld [vmem:[#allocation5 + $0x1e8] sm:$0xff]  ;;  %v144_v29 = vld [vmem:[#allocation2 + $0x1e0] sm:$0xff]  ;;  %v145_v30 = vld [vmem:[#allocation2 + $0x1e8] sm:$0xff] }
  0x9e   :  { %v66_v21 = vld [vmem:[%s3656_s1 + $0x18] sm:$0xff]  ;;  %v1506_v25 = vmul.f32 0.75, %v213_v47  ;;  %v1508_v33 = vmul.f32 0.75, %v215_v8  ;;  %v1574_v39 = vmul.f32 0.25, %v141_v13  ;;  %v1576_v43 = vmul.f32 0.25, %v143_v42 }
  0x9f   :  { %1758 = vst [vmem:[%s3662_s7 + $0x10] sm:$0xff] %v2347_v20  ;;  %v375_v35 = vmul.f32 0.5, %v66_v21  ;;  %v438_v46 = vmul.f32 0.5, %v431_v41  ;;  %v574_v37 = vmul.f32 %v2364_v40, %v214_v23  ;;  %v581_v38 = vmul.f32 %v2364_v40, %v2381_v54  ;;  %v223_v31 = vld [vmem:[#allocation5 + $0x228] sm:$0x3] }
  0xa0   :  { %1760 = vst [vmem:[%s3662_s7 + $0x20] sm:$0xff] %v2364_v40  ;;  %v1504_v21 = vmul.f32 0.75, %v2322_v0  ;;  %v1575_v41 = vmul.f32 0.25, %v142_v14  ;;  %v1578_v23 = vmul.f32 0.25, %v145_v30  ;;  %v1513_v13 = vmul.f32 0.75, %v2371_v48  ;;  %v2423_v30 = vld [vmem:[#allocation5] sm:$0xff] }
  0xa1   :  { %v2373_v49 = vadd.f32 %v438_v46, %v375_v35  ;;  %v419_v56 = vpop.permute.xlu1 %418  ;;  %v1509_v35 = vmul.f32 0.75, %v216_v9  ;;  %v1510_v46 = vmul.f32 0.75, %v2327_v5 }
  0xa2   :  { %v414_v55 = vpop.permute.xlu0 %413  ;;  %v427_v58 = vadd.f32 %v419_v56, %v385_v53  ;;  %v149_v56 = vld [vmem:[#allocation2 + $0x208] sm:$0xff] }
  0xa3   :  { %v426_v57 = vadd.f32 %v414_v55, %v384_v52  ;;  %v573_v59 = vmul.f32 %v2373_v49, %v213_v47  ;;  %v580_v60 = vmul.f32 %v2373_v49, %v2371_v48  ;;  %v1577_v47 = vmul.f32 0.25, %v144_v29 }
  0xa4   :  { %v434_v3 = vmax.f32 %v427_v58, 0.0  ;;  %v1579_v55 = vmul.f32 0.25, %v146_v34  ;;  %v1643_v58 = vadd.f32 %v1573_v36, %v1503_v19  ;;  %v2431_v34 = vld [vmem:[#allocation5 + $0xe0] sm:$0xff]  ;;  %v196_v36 = vld [vmem:[#allocation5 + $0x150] sm:$0xff] }
  0xa5   :  { %v433_v1 = vmax.f32 %v426_v57, 0.0  ;;  %v690_v4 = vadd.f32 %v689_v44, %v573_v59  ;;  %v703_v7 = vadd.f32 %v702_v45, %v580_v60  ;;  %v147_v44 = vld [vmem:[#allocation2 + $0x1f8] sm:$0xff]  ;;  %v1644_v59 = vadd.f32 %v1574_v39, %v1504_v21  ;;  %3812 = vst [vmem:[#allocation17_spill] sm:$0xff] %v2431_v34 }
  0xa6   :  { %v441_v11 = vmul.f32 0.5, %v434_v3  ;;  %v1645_v60 = vadd.f32 %v1575_v41, %v1505_v22  ;;  %v1580_v5 = vmul.f32 0.25, %v147_v44  ;;  %v1511_v3 = vmul.f32 0.75, %v2329_v6  ;;  %1713 = vst [vmem:[#allocation7 + $0x1c0] sm:$0xff] %v1643_v58  ;;  %v2437_v41 = vld [vmem:[#allocation5 + $0x8] sm:$0xff]  ;;  %v2443_v44 = vld [vmem:[#allocation5 + $0xb0] sm:$0xff] }
  0xa7   :  { %v68_v51 = vld [vmem:[%s3656_s1 + $0x28] sm:$0xff]  ;;  %v69_v50 = vld [vmem:[%s3656_s1 + $0x30] sm:$0x3]  ;;  %v440_v10 = vmul.f32 0.5, %v433_v1  ;;  %v691_v15 = vadd.f32 %v690_v4, %v574_v37  ;;  %v704_v16 = vadd.f32 %v703_v7, %v581_v38  ;;  %v1646_v38 = vadd.f32 %v1576_v43, %v1506_v25  ;;  %v151_v1 = vld [vmem:[#allocation2 + $0x218] sm:$0xff]  ;;  %1714 = vst [vmem:[#allocation7 + $0x1c8] sm:$0xff] %v1644_v59 }
  0xa8   :  { %1759 = vst [vmem:[%s3662_s7 + $0x18] sm:$0xff] %v2373_v49  ;;  %v377_v61 = vmul.f32 0.5, %v68_v51  ;;  %v378_v62 = vmul.f32 0.5, %v69_v50  ;;  %v148_v51 = vld [vmem:[#allocation2 + $0x200] sm:$0xff]  ;;  %v1647_v7 = vadd.f32 %v1577_v47, %v1507_v32  ;;  %v1584_v42 = vmul.f32 0.25, %v151_v1  ;;  %v2425_v32 = vld [vmem:[#allocation5 + $0x38] sm:$0xff] }
  0xa9   :  { %v1581_v4 = vmul.f32 0.25, %v148_v51  ;;  %1715 = vst [vmem:[#allocation7 + $0x1d0] sm:$0xff] %v1645_v60  ;;  %v1650_v19 = vadd.f32 %v1580_v5, %v1510_v46  ;;  %v1515_v6 = vmul.f32 0.75, %v222_v18  ;;  %v1516_v25 = vmul.f32 0.75, %v223_v31  ;;  %v2441_v43 = vld [vmem:[#allocation5 + $0x48] sm:$0xff]  ;;  %v2451_v47 = vld [vmem:[#allocation5 + $0x80] sm:$0xff] }
  0xaa   :  { %v2396_v26 = vadd.f32 %v440_v10, %v377_v61  ;;  %v2398_v27 = vadd.f32 %v441_v11, %v378_v62  ;;  %v150_v61 = vld [vmem:[#allocation2 + $0x210] sm:$0xff]  ;;  %v1582_v10 = vmul.f32 0.25, %v149_v56  ;;  %v1648_v11 = vadd.f32 %v1578_v23, %v1508_v33  ;;  %1716 = vst [vmem:[#allocation7 + $0x1d8] sm:$0xff] %v1646_v38  ;;  %v2427_v33 = vld [vmem:[#allocation5 + $0x70] sm:$0xff]  ;;  %v197_v51 = vld [vmem:[#allocation5 + $0x158] sm:$0xff] }
  0xab   :  { %v1583_v14 = vmul.f32 0.25, %v150_v61  ;;  %v1651_v22 = vadd.f32 %v1581_v4, %v1511_v3  ;;  %1717 = vst [vmem:[#allocation7 + $0x1e0] sm:$0xff] %v1647_v7  ;;  %v2449_v46 = vmul.f32 %v2278_v28, %v2423_v30  ;;  %v2453_v23 = vld [vmem:[#allocation5 + $0x120] sm:$0xff]  ;;  %v2465_v56 = vld [vmem:[#allocation5 + $0x10] sm:$0xff]  ;;  %v2469_v58 = vld [vmem:[#allocation5 + $0xb8] sm:$0xff]  ;;  %v2475_v60 = vmul.f32 %v2278_v28, %v2431_v34 }
  0xac   :  { %3809 = vst [vmem:[#allocation14_spill] sm:$0xff] %v2398_v27  ;;  %v575_v63 = vmul.f32 %v2396_v26, %v215_v8  ;;  %v576_v0 = vmul.f32 %v2398_v27, %v216_v9  ;;  %v582_v17 = vmul.f32 %v2396_v26, %v222_v18  ;;  %v583_v45 = vmul.f32 %v2398_v27, %v223_v31  ;;  %v152_v8 = vld [vmem:[#allocation2 + $0x220] sm:$0xff]  ;;  %v2435_v31 = vld [vmem:[#allocation5 + $0x118] sm:$0xff]  ;;  %v2484_v38 = vld [vmem:[#allocation5 + $0x20] sm:$0xff] }
  0xad   :  { %1761 = vst [vmem:[%s3662_s7 + $0x28] sm:$0xff] %v2396_v26  ;;  %v1512_v9 = vmul.f32 0.75, %v2352_v24  ;;  %v1585_v21 = vmul.f32 0.25, %v152_v8  ;;  %v1586_v24 = vmul.f32 0.25, %v153_v12  ;;  %v1653_v48 = vadd.f32 %v1583_v14, %v1513_v13  ;;  %v2486_v1 = vld [vmem:[#allocation5 + $0x88] sm:$0xff]  ;;  %v2488_v3 = vld [vmem:[#allocation5 + $0xf0] sm:$0xff] }
  0xae   :  { %1762 = vst [vmem:[%s3662_s7 + $0x30] sm:$0x3] %v2398_v27  ;;  %v692_v52 = vadd.f32 %v691_v15, %v575_v63  ;;  %v693_v50 = vsel %vm366_vm0, %v576_v0, 0.0  ;;  %v705_v53 = vadd.f32 %v704_v16, %v582_v17  ;;  %v706_v57 = vsel %vm366_vm0, %v583_v45, 0.0  ;;  %v2439_v63 = vld [vmem:[#allocation5 + $0x78] sm:$0xff]  ;;  %v203_v0 = vld [vmem:[#allocation5 + $0x188] sm:$0xff] }
  0xaf   :  { %v1649_v15 = vadd.f32 %v1579_v55, %v1509_v35  ;;  %v1514_v16 = vmul.f32 0.75, %v2381_v54  ;;  %v1652_v29 = vadd.f32 %v1582_v10, %v1512_v9  ;;  %1718 = vst [vmem:[#allocation7 + $0x1e8] sm:$0xff] %v1648_v11  ;;  %v2429_v54 = vld [vmem:[#allocation5 + $0xa8] sm:$0xff]  ;;  %v2433_v35 = vld [vmem:[#allocation5 + $0x40] sm:$0xff]  ;;  %v1655_v39 = vadd.f32 %v1585_v21, %v1515_v6  ;;  %v2499_v10 = vld [vmem:[#allocation5 + $0x58] sm:$0xff] }
  0xb0   :  { %v2415_v62 = vadd.f32 %v693_v50, %v692_v52  ;;  %v2417_v37 = vadd.f32 %v706_v57, %v705_v53  ;;  %3810 = vst [vmem:[#allocation15_spill] sm:$0xff] %v2427_v33  ;;  %v1656_v17 = vadd.f32 %v1586_v24, %v1516_v25  ;;  %v2445_v45 = vld [vmem:[#allocation5 + $0xe8] sm:$0xff]  ;;  %v521_v52 = vmul.f32 %v2278_v28, %v2425_v32  ;;  %v2467_v57 = vld [vmem:[#allocation5 + $0x50] sm:$0xff]  ;;  %v2518_v6 = vld [vmem:[#allocation5 + $0x100] sm:$0xff] }
  0xb1   :  { %1719 = vst [vmem:[#allocation7 + $0x1f0] sm:$0x3] %v1649_v15  ;;  %v1654_v18 = vadd.f32 %v1584_v42, %v1514_v16  ;;  %v522_v50 = vmul.f32 %v2325_v2, %v2433_v35  ;;  %v528_v53 = vmul.f32 %v2278_v28, %v2427_v33  ;;  %v2463_v55 = vmul.f32 %v2278_v28, %v2429_v54  ;;  %v2501_v11 = vld [vmem:[#allocation5 + $0x90] sm:$0xff]  ;;  %v2503_v12 = vld [vmem:[#allocation5 + $0xc8] sm:$0xff]  ;;  %v2514_v42 = vld [vmem:[#allocation5 + $0x18] sm:$0xff] }
  0xb2   :  { %3811 = vst [vmem:[#allocation16_spill] sm:$0xff] %v2429_v54  ;;  %v529_v59 = vmul.f32 %v2325_v2, %v2439_v63  ;;  %v2479_v61 = vmul.f32 %v2278_v28, %v2435_v31  ;;  %v2482_v5 = vmul.f32 %v2278_v28, %v196_v36  ;;  %v515_v4 = vmul.f32 %v2325_v2, %v2437_v41  ;;  %v2552_v34 = vld [vmem:[#allocation5 + $0xc0] sm:$0xff]  ;;  %v2564_v54 = vld [vmem:[#allocation5 + $0xd0] sm:$0xff] }
  0xb3   :  { %1720 = vst [vmem:[#allocation7 + $0x1f8] sm:$0xff] %v1650_v19  ;;  %v523_v7 = vmul.f32 %v2347_v20, %v2441_v43  ;;  %v536_v8 = vmul.f32 %v2325_v2, %v2443_v44  ;;  %v2497_v9 = vmul.f32 %v2278_v28, %v203_v0  ;;  %v530_v13 = vmul.f32 %v2347_v20, %v2451_v47  ;;  %v2516_v19 = vld [vmem:[#allocation5 + $0x28] sm:$0xff] }
  0xb4   :  { %3813 = vst [vmem:[#allocation18_spill] sm:$0xff] %v2435_v31  ;;  %v543_v14 = vmul.f32 %v2325_v2, %v2445_v45  ;;  %v550_v15 = vmul.f32 %v2325_v2, %v2453_v23  ;;  %v2512_v16 = vmul.f32 %v2325_v2, %v197_v51  ;;  %v516_v21 = vmul.f32 %v2347_v20, %v2465_v56  ;;  %v2540_v51 = vld [vmem:[#allocation5 + $0x98] sm:$0xff] }
  0xb5   :  { %1721 = vst [vmem:[#allocation7 + $0x200] sm:$0xff] %v1651_v22  ;;  %v524_v22 = vmul.f32 %v2373_v49, %v2467_v57  ;;  %v537_v25 = vmul.f32 %v2347_v20, %v2469_v58  ;;  %v597_v24 = vadd.f32 %v522_v50, %v521_v52  ;;  %v531_v36 = vmul.f32 %v2373_v49, %v2486_v1  ;;  %v2542_v52 = vld [vmem:[#allocation5 + $0xa0] sm:$0x3] }
  0xb6   :  { %3814 = vst [vmem:[#allocation19_spill] sm:$0xff] %v2439_v63  ;;  %v610_v0 = vadd.f32 %v529_v59, %v528_v53  ;;  %v525_v50 = vmul.f32 %v2364_v40, %v2499_v10  ;;  %v2550_v31 = vmul.f32 %v2364_v40, %v2503_v12  ;;  %v2554_v53 = vld [vmem:[#allocation5 + $0x128] sm:$0xff]  ;;  %v517_v59 = vmul.f32 %v2373_v49, %v2514_v42  ;;  %v2575_v63 = vld [vmem:[#allocation5 + $0x130] sm:$0xff] }
  0xb7   :  { %1722 = vst [vmem:[#allocation7 + $0x208] sm:$0xff] %v1652_v29  ;;  %v2526_v29 = vld [vmem:[#allocation5 + $0x30] sm:$0x3] }
  0xb8   :  { %3815 = vst [vmem:[#allocation20_spill] sm:$0xff] %v2443_v44  ;;  %v611_v44 = vadd.f32 %v610_v0, %v530_v13  ;;  %v533_v0 = vmul.f32 %v2396_v26, %v2540_v51 }
  0xb9   :  { %3816 = vst [vmem:[#allocation21_spill] sm:$0xff] %v2445_v45  ;;  %v598_v45 = vadd.f32 %v597_v24, %v523_v7  ;;  %v2568_v7 = vld [vmem:[#allocation5 + $0xf8] sm:$0xff]  ;;  %v520_v24 = vmul.f32 %v2398_v27, %v2526_v29 }
  0xba   :  { %1723 = vst [vmem:[#allocation7 + $0x210] sm:$0xff] %v1653_v48  ;;  %v2528_v48 = vld [vmem:[#allocation5 + $0x60] sm:$0xff]  ;;  %v612_v33 = vadd.f32 %v611_v44, %v531_v36  ;;  %v545_v44 = vmul.f32 %v2373_v49, %v2568_v7 }
  0xbb   :  { %3817 = vst [vmem:[#allocation22_spill] sm:$0xff] %v2451_v47  ;;  %v599_v47 = vadd.f32 %v598_v45, %v524_v22  ;;  %v2586_v45 = vld [vmem:[#allocation5 + $0x108] sm:$0xff]  ;;  %v2590_v22 = vld [vmem:[#allocation5 + $0x138] sm:$0xff] }
  0xbc   :  { %3818 = vst [vmem:[#allocation23_spill] sm:$0xff] %v2453_v23  ;;  %v532_v23 = vmul.f32 %v2364_v40, %v2501_v11 }
  0xbd   :  { %1724 = vst [vmem:[#allocation7 + $0x218] sm:$0xff] %v1654_v18  ;;  %v2532_v18 = vmul.f32 %v2364_v40, %v2484_v38 }
  0xbe   :  { %3819 = vst [vmem:[#allocation24_spill] sm:$0xff] %v2467_v57 }
  0xbf   :  { %3820 = vst [vmem:[#allocation25_spill] sm:$0xff] %v2469_v58  ;;  %v2562_v58 = vmul.f32 %v2364_v40, %v2518_v6 }
  0xc0   :  { %1725 = vst [vmem:[#allocation7 + $0x220] sm:$0xff] %v1655_v39  ;;  %v544_v39 = vmul.f32 %v2347_v20, %v2488_v3 }
  0xc1   :  { %3821 = vst [vmem:[#allocation26_spill] sm:$0xff] %v2486_v1  ;;  %v584_v1 = vadd.f32 %v515_v4, %v2449_v46  ;;  %v623_v46 = vadd.f32 %v536_v8, %v2463_v55  ;;  %v2588_v4 = vld [vmem:[#allocation5 + $0x110] sm:$0x3]  ;;  %v552_v55 = vmul.f32 %v2373_v49, %v2575_v63 }
  0xc2   :  { %3822 = vst [vmem:[#allocation27_spill] sm:$0xff] %v2488_v3  ;;  %v519_v3 = vmul.f32 %v2396_v26, %v2516_v19 }
  0xc3   :  { %1726 = vst [vmem:[#allocation7 + $0x228] sm:$0x3] %v1656_v17  ;;  %v2538_v17 = vld [vmem:[#allocation5 + $0x68] sm:$0x3]  ;;  %v585_v57 = vadd.f32 %v584_v1, %v516_v21  ;;  %v2600_v1 = vld [vmem:[#allocation5 + $0x160] sm:$0xff]  ;;  %v624_v36 = vadd.f32 %v623_v46, %v537_v25  ;;  %v2629_v46 = vld [vmem:[#allocation5 + $0x178] sm:$0xff] }
  0xc4   :  { %3823 = vst [vmem:[#allocation28_spill] sm:$0xff] %v2499_v10  ;;  %v527_v13 = vmul.f32 %v2398_v27, %v2538_v17  ;;  %v538_v10 = vmul.f32 %v2373_v49, %v2552_v34  ;;  %v2617_v25 = vld [vmem:[#allocation5 + $0x148] sm:$0x3] }
  0xc5   :  { %3824 = vst [vmem:[#allocation29_spill] sm:$0xff] %v2501_v11  ;;  %v526_v11 = vmul.f32 %v2396_v26, %v2528_v48  ;;  %v586_v8 = vadd.f32 %v585_v57, %v517_v59  ;;  %v553_v57 = vmul.f32 %v2364_v40, %v2590_v22 }
  0xc6   :  { %3825 = vst [vmem:[#allocation30_spill] sm:$0xff] %v2503_v12  ;;  %v2566_v12 = vld [vmem:[#allocation5 + $0xd8] sm:$0x3] }
  0xc7   :  { %3826 = vst [vmem:[#allocation31_spill] sm:$0xff] %v2518_v6  ;;  %v534_v6 = vmul.f32 %v2398_v27, %v2542_v52  ;;  %v587_v59 = vadd.f32 %v586_v8, %v2532_v18 }
  0xc8   :  { %3827 = vst [vmem:[#allocation32_spill] sm:$0xff] %v2528_v48  ;;  %v600_v48 = vadd.f32 %v599_v47, %v525_v50  ;;  %v551_v47 = vmul.f32 %v2347_v20, %v2554_v53  ;;  %v2604_v50 = vld [vmem:[#allocation5 + $0x140] sm:$0xff] }
  0xc9   :  { %3828 = vst [vmem:[#allocation33_spill] sm:$0xff] %v2538_v17  ;;  %v2609_v17 = vld [vmem:[#allocation5 + $0x168] sm:$0xff]  ;;  %v588_v18 = vadd.f32 %v587_v59, %v519_v3 }
  0xca   :  { %3829 = vst [vmem:[#allocation34_spill] sm:$0xff] %v2540_v51  ;;  %v540_v51 = vmul.f32 %v2396_v26, %v2564_v54  ;;  %v601_v21 = vadd.f32 %v600_v48, %v526_v11  ;;  %v625_v11 = vadd.f32 %v624_v36, %v538_v10  ;;  %v2619_v48 = vld [vmem:[#allocation5 + $0x190] sm:$0xff]  ;;  %v615_v10 = vsel %vm366_vm0, %v534_v6, 0.0  ;;  %v2631_v36 = vld [vmem:[#allocation5 + $0x198] sm:$0xff] }
  0xcb   :  { %3830 = vst [vmem:[#allocation35_spill] sm:$0xff] %v2542_v52  ;;  %v541_v52 = vmul.f32 %v2398_v27, %v2566_v12 }
  0xcc   :  { %3831 = vst [vmem:[#allocation36_spill] sm:$0xff] %v2552_v34  ;;  %v613_v34 = vadd.f32 %v612_v33, %v532_v23  ;;  %v558_v33 = vmul.f32 %v2347_v20, %v2600_v1  ;;  %v626_v6 = vadd.f32 %v625_v11, %v2550_v31 }
  0xcd   :  { %3832 = vst [vmem:[#allocation37_spill] sm:$0xff] %v2554_v53  ;;  %v547_v53 = vmul.f32 %v2396_v26, %v2586_v45  ;;  %v628_v31 = vsel %vm366_vm0, %v541_v52, 0.0 }
  0xce   :  { %3833 = vst [vmem:[#allocation38_spill] sm:$0xff] %v2564_v54  ;;  %v602_v54 = vsel %vm366_vm0, %v527_v13, 0.0  ;;  %v614_v23 = vadd.f32 %v613_v34, %v533_v0  ;;  %v2642_v0 = vld [vmem:[#allocation5 + $0x180] sm:$0x3] }
  0xcf   :  { %3834 = vst [vmem:[#allocation39_spill] sm:$0xff] %v2566_v12  ;;  %v636_v12 = vadd.f32 %v543_v14, %v2475_v60  ;;  %v2623_v14 = vld [vmem:[#allocation5 + $0x170] sm:$0xff]  ;;  %v603_v13 = vadd.f32 %v602_v54, %v601_v21  ;;  %v564_v54 = vmul.f32 %v2325_v2, %v2619_v48  ;;  %v565_v21 = vmul.f32 %v2347_v20, %v2631_v36 }
  0xd0   :  { %3835 = vst [vmem:[#allocation40_spill] sm:$0xff] %v2568_v7  ;;  %v649_v7 = vadd.f32 %v550_v15, %v2479_v61  ;;  %v554_v15 = vmul.f32 %v2396_v26, %v2604_v50  ;;  %v616_v8 = vadd.f32 %v615_v10, %v614_v23  ;;  %v2660_v10 = vld [vmem:[#allocation5 + $0x1a8] sm:$0xff] }
  0xd1   :  { %3836 = vst [vmem:[#allocation41_spill] sm:$0xff] %v2575_v63  ;;  %v548_v63 = vmul.f32 %v2398_v27, %v2588_v4  ;;  %v637_v60 = vadd.f32 %v636_v12, %v544_v39  ;;  %v662_v39 = vadd.f32 %v2512_v16, %v2482_v5  ;;  %v561_v16 = vmul.f32 %v2396_v26, %v2629_v46 }
  0xd2   :  { %3837 = vst [vmem:[#allocation42_spill] sm:$0xff] %v2600_v1  ;;  %v650_v61 = vadd.f32 %v649_v7, %v551_v47  ;;  %v559_v1 = vmul.f32 %v2373_v49, %v2609_v17  ;;  %v555_v7 = vmul.f32 %v2398_v27, %v2617_v25  ;;  %v2644_v47 = vld [vmem:[#allocation5 + $0x1a0] sm:$0xff]  ;;  %v604_v3 = vrot.slane %v603_v13, 4 }
  0xd3   :  { %3838 = vst [vmem:[#allocation43_spill] sm:$0xff] %v2619_v48  ;;  %v638_v34 = vadd.f32 %v637_v60, %v545_v44  ;;  %v560_v44 = vmul.f32 %v2364_v40, %v2623_v14  ;;  %v663_v5 = vadd.f32 %v662_v39, %v558_v33  ;;  %v627_v60 = vadd.f32 %v626_v6, %v540_v51 }
  0xd4   :  { %v651_v12 = vadd.f32 %v650_v61, %v552_v55  ;;  %v589_v55 = vsel %vm366_vm0, %v520_v24, 0.0  ;;  %v562_v48 = vmul.f32 %v2398_v27, %v2642_v0  ;;  %v566_v24 = vmul.f32 %v2373_v49, %v2644_v47 }
  0xd5   :  { %v639_v11 = vadd.f32 %v638_v34, %v2562_v58  ;;  %v664_v59 = vadd.f32 %v663_v5, %v559_v1  ;;  %v590_v33 = vadd.f32 %v589_v55, %v588_v18  ;;  %v675_v23 = vadd.f32 %v564_v54, %v2497_v9  ;;  %v2664_v34 = vld [vmem:[#allocation5 + $0x1b0] sm:$0xff]  ;;  %v2666_v5 = vld [vmem:[#allocation5 + $0x1b8] sm:$0x3] }
  0xd6   :  { %v652_v61 = vadd.f32 %v651_v12, %v553_v57  ;;  %v617_v20 = vrot.slane %v616_v8, 4  ;;  %v641_v51 = vsel %vm366_vm0, %v548_v63, 0.0  ;;  %v605_v6 = vadd.f32 %v604_v3, %v603_v13  ;;  %3839 = vst [vmem:[#allocation44_spill] sm:$0xff] %v2664_v34 }
  0xd7   :  { %v640_v39 = vadd.f32 %v639_v11, %v547_v53  ;;  %v629_v58 = vadd.f32 %v628_v31, %v627_v60  ;;  %v654_v1 = vsel %vm366_vm0, %v555_v7, 0.0  ;;  %v676_v57 = vadd.f32 %v675_v23, %v565_v21  ;;  %3840 = vst [vmem:[#allocation45_spill] sm:$0xff] %v2666_v5  ;;  %v2675_v31 = vpop.permute.xlu2 %761 }
  0xd8   :  { %v653_v52 = vadd.f32 %v652_v61, %v554_v15  ;;  %v665_v12 = vadd.f32 %v664_v59, %v560_v44  ;;  %v567_v49 = vmul.f32 %v2364_v40, %v2660_v10  ;;  %v591_v9 = vrot.slane %v590_v33, 4 }
  0xd9   :  { %v677_v54 = vadd.f32 %v676_v57, %v566_v24  ;;  %v618_v18 = vadd.f32 %v617_v20, %v616_v8  ;;  %v642_v53 = vadd.f32 %v641_v51, %v640_v39  ;;  %v568_v15 = vmul.f32 %v2396_v26, %v2664_v34 }
  0xda   :  { %v655_v55 = vadd.f32 %v654_v1, %v653_v52  ;;  %v666_v63 = vadd.f32 %v665_v12, %v561_v16  ;;  %v606_v13 = vrot.slane %v605_v6, 2  ;;  %v630_v7 = vrot.slane %v629_v58, 4 }
  0xdb   :  { %v667_v21 = vsel %vm366_vm0, %v562_v48, 0.0  ;;  %v569_v44 = vmul.f32 %v2398_v27, %v2666_v5  ;;  %v592_v3 = vadd.f32 %v591_v9, %v590_v33  ;;  %v678_v60 = vadd.f32 %v677_v54, %v567_v49 }
  0xdc   :  { %v619_v40 = vrot.slane %v618_v18, 2  ;;  %v643_v11 = vrot.slane %v642_v53, 4  ;;  %v656_v8 = vrot.slane %v655_v55, 4  ;;  %v668_v61 = vadd.f32 %v667_v21, %v666_v63 }
  0xdd   :  { %v607_v59 = vadd.f32 %v606_v13, %v605_v6  ;;  %v631_v16 = vadd.f32 %v630_v7, %v629_v58  ;;  %v679_v24 = vadd.f32 %v678_v60, %v568_v15  ;;  %v680_v23 = vsel %vm366_vm0, %v569_v44, 0.0 }
  0xde   :  { %v695_v20 = vrot.slane %v2415_v62, 4  ;;  %v708_v48 = vrot.slane %v2417_v37, 4  ;;  %v593_v39 = vrot.slane %v592_v3, 2  ;;  %v620_v51 = vadd.f32 %v619_v40, %v618_v18 }
  0xdf   :  { %v644_v52 = vadd.f32 %v643_v11, %v642_v53  ;;  %v657_v33 = vadd.f32 %v656_v8, %v655_v55  ;;  %v669_v1 = vrot.slane %v668_v61, 4  ;;  %v608_v57 = vrot.slane %v607_v59, 1  ;;  %v2682_v60 = vpop.permute.xlu2 %456 }
  0xe0   :  { %v632_v12 = vrot.slane %v631_v16, 2  ;;  %v681_v49 = vadd.f32 %v680_v23, %v679_v24  ;;  %v696_v9 = vadd.f32 %v695_v20, %v2415_v62  ;;  %v709_v6 = vadd.f32 %v708_v48, %v2417_v37 }
  0xe1   :  { %v594_v58 = vadd.f32 %v593_v39, %v592_v3  ;;  %v621_v54 = vrot.slane %v620_v51, 1  ;;  %v645_v63 = vrot.slane %v644_v52, 2  ;;  %v658_v15 = vrot.slane %v657_v33, 2 }
  0xe2   :  { %v670_v13 = vadd.f32 %v669_v1, %v668_v61  ;;  %v609_v7 = vadd.f32 %v608_v57, %v607_v59  ;;  %v633_v21 = vadd.f32 %v632_v12, %v631_v16  ;;  %v682_v44 = vrot.slane %v681_v49, 4 }
  0xe3   :  { %v767_v18 = vrot.slane %v2675_v31, 1  ;;  %v697_v53 = vrot.slane %v696_v9, 2  ;;  %v710_v55 = vrot.slane %v709_v6, 2  ;;  %v595_v40 = vrot.slane %v594_v58, 1 }
  0xe4   :  { %v622_v11 = vadd.f32 %v621_v54, %v620_v51  ;;  %v646_v8 = vadd.f32 %v645_v63, %v644_v52  ;;  %v659_v62 = vadd.f32 %v658_v15, %v657_v33  ;;  %v671_v24 = vrot.slane %v670_v13, 2  ;;  %v741_v52 = vpop.f32.mrf.mxu0 }
  0xe5   :  { %v634_v37 = vrot.slane %v633_v21, 1  ;;  %v683_v3 = vadd.f32 %v682_v44, %v681_v49  ;;  %v786_v23 = vadd.f32 %v767_v18, %v609_v7  ;;  %v768_v20 = vrot.slane %v2675_v31, 2 }
  0xe6   :  { %v698_v61 = vadd.f32 %v697_v53, %v696_v9  ;;  %v711_v59 = vadd.f32 %v710_v55, %v709_v6  ;;  %v596_v16 = vadd.f32 %v595_v40, %v594_v58  ;;  %v647_v48 = vrot.slane %v646_v8, 1  ;;  %v766_v55 = vpop.permute.xlu0 %765 }
  0xe7   :  { %v660_v39 = vrot.slane %v659_v62, 1  ;;  %v672_v1 = vadd.f32 %v671_v24, %v670_v13  ;;  %v787_v57 = vadd.f32 %v768_v20, %v622_v11  ;;  %v635_v12 = vadd.f32 %v634_v37, %v633_v21  ;;  %v2688_v15 = vpop.permute.xlu2 %878  ;;  %v452_v37 = vpop.permute.xlu1 %451 }
  0xe8   :  { %v684_v5 = vrot.slane %v683_v3, 2  ;;  %v796_v34 = vmax.f32 %v786_v23, 0.0  ;;  %v769_v51 = vrot.slane %v2675_v31, 3  ;;  %v699_v33 = vrot.slane %v698_v61, 1 }
  0xe9   :  { %v712_v54 = vrot.slane %v711_v59, 1  ;;  %v747_v63 = vmul.f32 0.5, %v741_v52  ;;  %v785_v49 = vadd.f32 %v2675_v31, %v596_v16  ;;  %v648_v9 = vadd.f32 %v647_v48, %v646_v8 }
  0xea   :  { %v661_v6 = vadd.f32 %v660_v39, %v659_v62  ;;  %v673_v58 = vrot.slane %v672_v1, 1  ;;  %v797_v7 = vmax.f32 %v787_v57, 0.0  ;;  %v685_v44 = vadd.f32 %v684_v5, %v683_v3 }
  0xeb   :  { %v788_v13 = vadd.f32 %v769_v51, %v635_v12  ;;  %v815_v18 = vrot.slane %v796_v34, 7  ;;  %v770_v21 = vrot.slane %v2675_v31, 4  ;;  %v771_v53 = vrot.slane %v2675_v31, 5 }
  0xec   :  { %v700_v40 = vadd.f32 %v699_v33, %v698_v61  ;;  %v713_v11 = vadd.f32 %v712_v54, %v711_v59  ;;  %1846 = vtanh.f32 %v747_v63  ;;  %v795_v24 = vmax.f32 %v785_v49, 0.0 }
  0xed   :  { %v674_v23 = vadd.f32 %v673_v58, %v672_v1  ;;  %v789_v20 = vadd.f32 %v770_v21, %v648_v9  ;;  %v790_v8 = vadd.f32 %v771_v53, %v661_v6  ;;  %v818_v62 = vrot.slane %v797_v7, 6 }
  0xee   :  { %v686_v16 = vrot.slane %v685_v44, 1  ;;  %v798_v48 = vmax.f32 %v788_v13, 0.0  ;;  %v817_v5 = vsel %vm816_vm2, %v815_v18, %v795_v24  ;;  %v772_v34 = vrot.slane %v2675_v31, 6 }
  0xef   :  { %v774_v3 = vrot.slane %v766_v55, 1  ;;  %v2694_v39 = vadd.f32 %v766_v55, %v700_v40  ;;  %v484_v61 = vmul.f32 %v452_v37, %v2278_v28  ;;  %v799_v57 = vmax.f32 %v789_v20, 0.0  ;;  %v477_v49 = vpop.permute.xlu2 %476  ;;  %v86_v40 = vld [vmem:[#allocation2 + $0x10] sm:$0xff]  ;;  %v87_v37 = vld [vmem:[#allocation2 + $0x18] sm:$0xff] }
  0xf0   :  { %v791_v59 = vadd.f32 %v772_v34, %v674_v23  ;;  %v820_v12 = vsel %vm819_vm3, %v818_v62, %v817_v5  ;;  %v687_v52 = vadd.f32 %v686_v16, %v685_v44  ;;  %v800_v33 = vmax.f32 %v790_v8, 0.0  ;;  %v88_v16 = vld [vmem:[#allocation2 + $0x20] sm:$0xff] }
  0xf1   :  { %v2697_v51 = vadd.f32 %v774_v3, %v713_v11  ;;  %v821_v54 = vrot.slane %v798_v48, 5  ;;  %v485_v63 = vmul.f32 %v2682_v60, %v2325_v2  ;;  %v2702_v9 = vmul.f32 %v477_v49, %v2396_v26  ;;  %v2709_v2 = vpop.permute.xlu0 %461  ;;  %v84_v60 = vld [vmem:[#allocation2] sm:$0xff]  ;;  %v85_v26 = vld [vmem:[#allocation2 + $0x8] sm:$0xff] }
  0xf2   :  { %v1847_v1 = vpop.eup %1846  ;;  %v773_v6 = vrot.slane %v2675_v31, 7  ;;  %v801_v13 = vmax.f32 %v791_v59, 0.0  ;;  %v824_v18 = vrot.slane %v799_v57, 4  ;;  %v803_v44 = vmax.f32 %v2694_v39, 0.0  ;;  %v92_v49 = vld [vmem:[#allocation2 + $0x40] sm:$0xff] }
  0xf3   :  { %v823_v28 = vsel %vm822_vm4, %v821_v54, %v820_v12  ;;  %v2705_v58 = vadd.f32 %v485_v63, %v484_v61  ;;  %v751_v7 = vadd.f32 1.0, %v1847_v1  ;;  %v804_v21 = vmax.f32 %v2697_v51, 0.0  ;;  %v89_v61 = vld [vmem:[#allocation2 + $0x28] sm:$0xff]  ;;  %v90_v12 = vld [vmem:[#allocation2 + $0x30] sm:$0x3]  ;;  %v2771_v39 = vld [vmem:[%s3662_s7 + $0x20] sm:$0xff] }
  0xf4   :  { %v792_v53 = vadd.f32 %v773_v6, %v687_v52  ;;  %v827_v55 = vrot.slane %v800_v33, 3  ;;  %v826_v11 = vsel %vm825_vm5, %v824_v18, %v823_v28  ;;  %v1447_v31 = vmul.f32 0.75, %v2423_v30  ;;  %v91_v52 = vld [vmem:[#allocation2 + $0x38] sm:$0xff] }
  0xf5   :  { %v1448_v24 = vmul.f32 0.75, %v2437_v41  ;;  %v1449_v23 = vmul.f32 0.75, %v2465_v56  ;;  %v1517_v20 = vmul.f32 0.25, %v84_v60  ;;  %v1518_v8 = vmul.f32 0.25, %v85_v26 }
  0xf6   :  { %v1519_v62 = vmul.f32 0.25, %v86_v40  ;;  %v753_v48 = vmul.f32 0.5, %v751_v7  ;;  %v830_v5 = vrot.slane %v801_v13, 2  ;;  %v1450_v34 = vmul.f32 0.75, %v2514_v42  ;;  %v93_v7 = vld [vmem:[#allocation2 + $0x48] sm:$0xff] }
  0xf7   :  { %v1520_v3 = vmul.f32 0.25, %v87_v37  ;;  %v802_v59 = vmax.f32 %v792_v53, 0.0  ;;  %v1451_v57 = vmul.f32 0.75, %v2484_v38  ;;  %v1521_v30 = vmul.f32 0.25, %v88_v16  ;;  %v3843_v16 = vld [vmem:[#allocation28_spill] sm:$0xff] }
  0xf8   :  { %v829_v41 = vsel %vm828_vm6, %v827_v55, %v826_v11  ;;  %v1452_v56 = vmul.f32 0.75, %v2516_v19  ;;  %v1453_v1 = vmul.f32 0.75, %v2526_v29  ;;  %v1522_v51 = vmul.f32 0.25, %v89_v61  ;;  %v94_v29 = vld [vmem:[#allocation2 + $0x50] sm:$0xff]  ;;  %v2723_v11 = vpop.permute.xlu1 %466 }
  0xf9   :  { %v1523_v33 = vmul.f32 0.25, %v90_v12  ;;  %v1587_v54 = vadd.f32 %v1517_v20, %v1447_v31  ;;  %v1588_v63 = vadd.f32 %v1518_v8, %v1448_v24  ;;  %v1589_v42 = vadd.f32 %v1519_v62, %v1449_v23  ;;  %v95_v31 = vld [vmem:[#allocation2 + $0x58] sm:$0xff]  ;;  %v3841_v24 = vld [vmem:[#allocation24_spill] sm:$0xff]  ;;  %v96_v8 = vld [vmem:[#allocation2 + $0x60] sm:$0xff] }
  0xfa   :  { %v1454_v6 = vmul.f32 0.75, %v2425_v32  ;;  %v1524_v28 = vmul.f32 0.25, %v91_v52  ;;  %v1590_v38 = vadd.f32 %v1520_v3, %v1450_v34  ;;  %v832_v13 = vsel %vm831_vm7, %v830_v5, %v829_v41  ;;  %v97_v3 = vld [vmem:[#allocation2 + $0x68] sm:$0x3]  ;;  %v98_v12 = vld [vmem:[#allocation2 + $0x70] sm:$0xff]  ;;  %v3845_v41 = vld [vmem:[#allocation33_spill] sm:$0xff] }
  0xfb   :  { %v1455_v18 = vmul.f32 0.75, %v2433_v35  ;;  %v1525_v19 = vmul.f32 0.25, %v92_v49  ;;  %v1591_v53 = vadd.f32 %v1521_v30, %v1451_v57  ;;  %1657 = vst [vmem:[#allocation7] sm:$0xff] %v1587_v54  ;;  %v833_v55 = vrot.slane %v802_v59, 1  ;;  %v2728_v35 = vpop.permute.xlu0 %883  ;;  %v99_v54 = vld [vmem:[#allocation2 + $0x78] sm:$0xff] }
  0xfc   :  { %v1456_v60 = vmul.f32 0.75, %v2441_v43  ;;  %v1526_v26 = vmul.f32 0.25, %v93_v7  ;;  %v1592_v40 = vadd.f32 %v1522_v51, %v1452_v56  ;;  %1658 = vst [vmem:[#allocation7 + $0x8] sm:$0xff] %v1588_v63  ;;  %v2725_v32 = vrot.slane %v804_v21, 7  ;;  %v3844_v21 = vld [vmem:[#allocation32_spill] sm:$0xff] }
  0xfd   :  { %v1457_v37 = vmul.f32 0.75, %v3841_v24  ;;  %v1527_v23 = vmul.f32 0.25, %v94_v29  ;;  %v1593_v20 = vadd.f32 %v1523_v33, %v1453_v1  ;;  %1659 = vst [vmem:[#allocation7 + $0x10] sm:$0xff] %v1589_v42  ;;  %v835_v62 = vsel %vm834_vm8, %v833_v55, %v832_v13  ;;  %v3846_v1 = vld [vmem:[#allocation15_spill] sm:$0xff]  ;;  %v3849_v13 = vld [vmem:[#allocation26_spill] sm:$0xff]  ;;  %v102_v55 = vld [vmem:[#allocation2 + $0x90] sm:$0xff] }
  0xfe   :  { %3842 = vst [vmem:[#allocation24_spill] sm:$0xff] %v2728_v35  ;;  %v1458_v43 = vmul.f32 0.75, %v3843_v16  ;;  %v1528_v5 = vmul.f32 0.25, %v95_v31  ;;  %v1594_v34 = vadd.f32 %v1524_v28, %v1454_v6  ;;  %v757_v61 = vmul.f32 0.5, %v753_v48  ;;  %v3847_v42 = vld [vmem:[#allocation19_spill] sm:$0xff]  ;;  %v100_v28 = vld [vmem:[#allocation2 + $0x80] sm:$0xff] }
  0xff   :  { %1660 = vst [vmem:[#allocation7 + $0x18] sm:$0xff] %v1590_v38  ;;  %v1459_v59 = vmul.f32 0.75, %v3844_v21  ;;  %v1529_v57 = vmul.f32 0.25, %v96_v8  ;;  %v1595_v30 = vadd.f32 %v1525_v19, %v1455_v18  ;;  %v1460_v56 = vmul.f32 0.75, %v3845_v41  ;;  %v3848_v38 = vld [vmem:[#allocation22_spill] sm:$0xff]  ;;  %v101_v29 = vld [vmem:[#allocation2 + $0x88] sm:$0xff] }
 0x100   :  { %1661 = vst [vmem:[#allocation7 + $0x20] sm:$0xff] %v1591_v53  ;;  %v1461_v51 = vmul.f32 0.75, %v3846_v1  ;;  %v1530_v52 = vmul.f32 0.25, %v97_v3  ;;  %v1596_v33 = vadd.f32 %v1526_v26, %v1456_v60  ;;  %v2735_v63 = vmul.f32 %v835_v62, %v757_v61  ;;  %v3850_v60 = vld [vmem:[#allocation29_spill] sm:$0xff]  ;;  %v744_v61 = vpop.f32.mrf.mxu0  ;;  %v104_v21 = vld [vmem:[#allocation2 + $0xa0] sm:$0x3] }
 0x101   :  { %1662 = vst [vmem:[#allocation7 + $0x28] sm:$0xff] %v1592_v40  ;;  %v1462_v49 = vmul.f32 0.75, %v3847_v42  ;;  %v1531_v6 = vmul.f32 0.25, %v98_v12  ;;  %v1597_v48 = vadd.f32 %v1527_v23, %v1457_v37  ;;  %v1463_v7 = vmul.f32 0.75, %v3848_v38  ;;  %v3851_v40 = vld [vmem:[#allocation34_spill] sm:$0xff]  ;;  %v103_v62 = vld [vmem:[#allocation2 + $0x98] sm:$0xff] }
 0x102   :  { %1663 = vst [vmem:[#allocation7 + $0x30] sm:$0x3] %v1593_v20  ;;  %v1464_v18 = vmul.f32 0.75, %v3849_v13  ;;  %v1532_v19 = vmul.f32 0.25, %v99_v54  ;;  %v1598_v53 = vadd.f32 %v1528_v5, %v1458_v43  ;;  %v1465_v26 = vmul.f32 0.75, %v3850_v60  ;;  %v3852_v37 = vld [vmem:[#allocation35_spill] sm:$0xff]  ;;  %v472_v13 = vpop.permute.xlu1 %471 }
 0x103   :  { %1664 = vst [vmem:[#allocation7 + $0x38] sm:$0xff] %v1594_v34  ;;  %v1466_v31 = vmul.f32 0.75, %v3851_v40  ;;  %v1533_v24 = vmul.f32 0.25, %v100_v28  ;;  %v1599_v8 = vadd.f32 %v1529_v57, %v1459_v59  ;;  %v1467_v23 = vmul.f32 0.75, %v3852_v37  ;;  %v3853_v43 = vld [vmem:[#allocation16_spill] sm:$0xff]  ;;  %v3855_v41 = vld [vmem:[#allocation25_spill] sm:$0xff] }
 0x104   :  { %1665 = vst [vmem:[#allocation7 + $0x40] sm:$0xff] %v1595_v30  ;;  %v1534_v20 = vmul.f32 0.25, %v101_v29  ;;  %v1535_v16 = vmul.f32 0.25, %v102_v55  ;;  %v1600_v3 = vadd.f32 %v1530_v52, %v1460_v56  ;;  %v1468_v5 = vmul.f32 0.75, %v3853_v43  ;;  %v3854_v34 = vld [vmem:[#allocation20_spill] sm:$0xff]  ;;  %v105_v42 = vld [vmem:[#allocation2 + $0xa8] sm:$0xff] }
 0x105   :  { %1666 = vst [vmem:[#allocation7 + $0x48] sm:$0xff] %v1596_v33  ;;  %v1469_v12 = vmul.f32 0.75, %v3854_v34  ;;  %v1470_v1 = vmul.f32 0.75, %v3855_v41  ;;  %v1601_v54 = vadd.f32 %v1531_v6, %v1461_v51  ;;  %v3856_v59 = vld [vmem:[#allocation36_spill] sm:$0xff]  ;;  %v1536_v30 = vmul.f32 0.25, %v103_v62  ;;  %v109_v62 = vld [vmem:[#allocation2 + $0xc8] sm:$0xff] }
 0x106   :  { %1667 = vst [vmem:[#allocation7 + $0x50] sm:$0xff] %v1597_v48  ;;  %v1471_v57 = vmul.f32 0.75, %v3856_v59  ;;  %v1537_v28 = vmul.f32 0.25, %v104_v21  ;;  %v1602_v38 = vadd.f32 %v1532_v19, %v1462_v49  ;;  %v106_v56 = vld [vmem:[#allocation2 + $0xb0] sm:$0xff]  ;;  %v1538_v52 = vmul.f32 0.25, %v105_v42  ;;  %v482_v48 = vpop.permute.xlu0 %481  ;;  %v3861_v37 = vld [vmem:[#allocation38_spill] sm:$0xff] }
 0x107   :  { %1668 = vst [vmem:[#allocation7 + $0x58] sm:$0xff] %v1598_v53  ;;  %v1603_v33 = vadd.f32 %v1533_v24, %v1463_v7  ;;  %v2750_v29 = vld [vmem:[%s3662_s7 + $0x10] sm:$0xff]  ;;  %v748_v6 = vmul.f32 0.5, %v744_v61  ;;  %v1539_v55 = vmul.f32 0.25, %v106_v56  ;;  %v1604_v60 = vadd.f32 %v1534_v20, %v1464_v18  ;;  %v107_v7 = vld [vmem:[#allocation2 + $0xb8] sm:$0xff]  ;;  %v3860_v53 = vld [vmem:[#allocation30_spill] sm:$0xff] }
 0x108   :  { %1669 = vst [vmem:[#allocation7 + $0x60] sm:$0xff] %v1599_v8  ;;  %v486_v51 = vmul.f32 %v2750_v29, %v2709_v2  ;;  %v1605_v40 = vadd.f32 %v1535_v16, %v1465_v26  ;;  %v2758_v49 = vsel %vm816_vm2, %v2725_v32, %v803_v44  ;;  %v2764_v2 = vld [vmem:[%s3662_s7 + $0x18] sm:$0xff]  ;;  %v488_v44 = vmul.f32 %v2771_v39, %v472_v13  ;;  %v108_v32 = vld [vmem:[#allocation2 + $0xc0] sm:$0xff]  ;;  %v110_v61 = vld [vmem:[#allocation2 + $0xd0] sm:$0xff] }
 0x109   :  { %3857 = vst [vmem:[#allocation28_spill] sm:$0xff] %v2750_v29  ;;  %v487_v18 = vmul.f32 %v2764_v2, %v2723_v11  ;;  %1848 = vtanh.f32 %v748_v6  ;;  %v1472_v26 = vmul.f32 0.75, %v3860_v53  ;;  %v1606_v24 = vadd.f32 %v1536_v30, %v1466_v31  ;;  %v3862_v21 = vld [vmem:[#allocation39_spill] sm:$0xff]  ;;  %v3863_v34 = vld [vmem:[#allocation17_spill] sm:$0xff] }
 0x10a   :  { %1670 = vst [vmem:[#allocation7 + $0x68] sm:$0x3] %v1600_v3  ;;  %v492_v19 = vadd.f32 %v2705_v58, %v486_v51  ;;  %v1540_v58 = vmul.f32 0.25, %v107_v7  ;;  %v490_v8 = vmul.f32 %v482_v48, %v2398_v27  ;;  %v1473_v20 = vmul.f32 0.75, %v3861_v37  ;;  %v111_v59 = vld [vmem:[#allocation2 + $0xd8] sm:$0x3] }
 0x10b   :  { %1671 = vst [vmem:[#allocation7 + $0x70] sm:$0xff] %v1601_v54  ;;  %v1541_v11 = vmul.f32 0.25, %v108_v32  ;;  %v1607_v16 = vadd.f32 %v1537_v28, %v1467_v23  ;;  %v1474_v43 = vmul.f32 0.75, %v3862_v21  ;;  %v1475_v41 = vmul.f32 0.75, %v3863_v34  ;;  %v3864_v31 = vld [vmem:[#allocation21_spill] sm:$0xff]  ;;  %v112_v51 = vld [vmem:[#allocation2 + $0xe0] sm:$0xff] }
 0x10c   :  { %3858 = vst [vmem:[#allocation32_spill] sm:$0xff] %v2764_v2  ;;  %v493_v3 = vadd.f32 %v492_v19, %v487_v18  ;;  %v1542_v54 = vmul.f32 0.25, %v109_v62  ;;  %v1608_v42 = vadd.f32 %v1538_v52, %v1468_v5  ;;  %v1476_v30 = vmul.f32 0.75, %v3864_v31  ;;  %v3865_v6 = vld [vmem:[#allocation27_spill] sm:$0xff]  ;;  %v3866_v18 = vld [vmem:[#allocation40_spill] sm:$0xff]  ;;  %v3868_v34 = vld [vmem:[#allocation18_spill] sm:$0xff] }
 0x10d   :  { %3859 = vst [vmem:[#allocation33_spill] sm:$0xff] %v2771_v39  ;;  %v1609_v13 = vadd.f32 %v1539_v55, %v1469_v12  ;;  %v1477_v23 = vmul.f32 0.75, %v3865_v6  ;;  %v1544_v28 = vmul.f32 0.25, %v111_v59  ;;  %v496_v48 = vsel %vm366_vm0, %v490_v8, 0.0  ;;  %v113_v19 = vld [vmem:[#allocation2 + $0xe8] sm:$0xff]  ;;  %v114_v12 = vld [vmem:[#allocation2 + $0xf0] sm:$0xff] }
 0x10e   :  { %1672 = vst [vmem:[#allocation7 + $0x78] sm:$0xff] %v1602_v38  ;;  %v1543_v38 = vmul.f32 0.25, %v110_v61  ;;  %v494_v56 = vadd.f32 %v493_v3, %v488_v44  ;;  %v1478_v5 = vmul.f32 0.75, %v3866_v18  ;;  %v1545_v52 = vmul.f32 0.25, %v112_v51  ;;  %v115_v55 = vld [vmem:[#allocation2 + $0xf8] sm:$0xff]  ;;  %v117_v21 = vld [vmem:[#allocation2 + $0x108] sm:$0xff] }
 0x10f   :  { %1673 = vst [vmem:[#allocation7 + $0x80] sm:$0xff] %v1603_v33  ;;  %v1610_v33 = vadd.f32 %v1540_v58, %v1470_v1  ;;  %v1849_v7 = vpop.eup %1848  ;;  %v1546_v53 = vmul.f32 0.25, %v113_v19  ;;  %v1612_v62 = vadd.f32 %v1542_v54, %v1472_v26  ;;  %v116_v58 = vld [vmem:[#allocation2 + $0x100] sm:$0xff]  ;;  %v1547_v8 = vmul.f32 0.25, %v114_v12  ;;  %v257_v59 = vld [vmem:[%s3660_s5 + $0x108] sm:$0xff] }
 0x110   :  { %1674 = vst [vmem:[#allocation7 + $0x88] sm:$0xff] %v1604_v60  ;;  %v1611_v60 = vadd.f32 %v1541_v11, %v1471_v57  ;;  %v495_v32 = vadd.f32 %v494_v56, %v2702_v9  ;;  %v752_v1 = vadd.f32 1.0, %v1849_v7  ;;  %v1613_v37 = vadd.f32 %v1543_v38, %v1473_v20  ;;  %v72_v57 = vld [vmem:[%s3656_s1 + $0x48] sm:$0x3]  ;;  %v118_v9 = vld [vmem:[#allocation2 + $0x110] sm:$0x3]  ;;  %1830 = vmatmul.msk.f32.vlgmr.msra.gmra.mxu2 %vm714_vm1, %v257_v59 }
 0x111   :  { %1675 = vst [vmem:[#allocation7 + $0x90] sm:$0xff] %v1605_v40  ;;  %v3867_v40 = vld [vmem:[#allocation31_spill] sm:$0xff]  ;;  %v1481_v11 = vmul.f32 0.75, %v2588_v4  ;;  %v1614_v61 = vadd.f32 %v1544_v28, %v1474_v43  ;;  %v1482_v54 = vmul.f32 0.75, %v3868_v34  ;;  %v1550_v31 = vmul.f32 0.25, %v117_v21  ;;  %v71_v43 = vld [vmem:[%s3656_s1 + $0x40] sm:$0xff] }
 0x112   :  { %1676 = vst [vmem:[#allocation7 + $0x98] sm:$0xff] %v1606_v24  ;;  %v1479_v44 = vmul.f32 0.75, %v3867_v40  ;;  %v1480_v24 = vmul.f32 0.75, %v2586_v45  ;;  %v497_v3 = vadd.f32 %v496_v48, %v495_v32  ;;  %v754_v26 = vmul.f32 0.5, %v752_v1  ;;  %v119_v56 = vld [vmem:[#allocation2 + $0x118] sm:$0xff]  ;;  %v3869_v48 = vld [vmem:[#allocation23_spill] sm:$0xff] }
 0x113   :  { %1677 = vst [vmem:[#allocation7 + $0xa0] sm:$0x3] %v1607_v16  ;;  %v1548_v16 = vmul.f32 0.25, %v115_v55  ;;  %v1615_v45 = vadd.f32 %v1545_v52, %v1475_v41  ;;  %v1616_v38 = vadd.f32 %v1546_v53, %v1476_v30  ;;  %v756_v4 = vmul.f32 0.5, %v72_v57  ;;  %v121_v52 = vld [vmem:[#allocation2 + $0x128] sm:$0xff]  ;;  %v122_v53 = vld [vmem:[#allocation2 + $0x130] sm:$0xff] }
 0x114   :  { %1678 = vst [vmem:[#allocation7 + $0xa8] sm:$0xff] %v1608_v42  ;;  %v1549_v42 = vmul.f32 0.25, %v116_v58  ;;  %v498_v20 = vrot.slane %v497_v3, 4  ;;  %v1551_v51 = vmul.f32 0.25, %v118_v9  ;;  %v1617_v41 = vadd.f32 %v1547_v8, %v1477_v23  ;;  %v123_v23 = vld [vmem:[#allocation2 + $0x138] sm:$0xff] }
 0x115   :  { %1679 = vst [vmem:[#allocation7 + $0xb0] sm:$0xff] %v1609_v13  ;;  %v758_v13 = vmul.f32 0.5, %v754_v26  ;;  %v755_v28 = vmul.f32 0.5, %v71_v43  ;;  %v1483_v7 = vmul.f32 0.75, %v3869_v48  ;;  %v1552_v19 = vmul.f32 0.25, %v119_v56  ;;  %v1854_v43 = vld [vmem:[#allocation5 + $0x158] sm:$0xff] }
 0x116   :  { %1680 = vst [vmem:[#allocation7 + $0xb8] sm:$0xff] %v1610_v33  ;;  %v499_v6 = vadd.f32 %v498_v20, %v497_v3  ;;  %v120_v33 = vld [vmem:[#allocation2 + $0x120] sm:$0xff]  ;;  %v1618_v30 = vadd.f32 %v1548_v16, %v1478_v5  ;;  %v1619_v55 = vadd.f32 %v1549_v42, %v1479_v44  ;;  %v1620_v1 = vadd.f32 %v1550_v31, %v1480_v24  ;;  %v259_v24 = vld [vmem:[%s3660_s5 + $0x118] sm:$0x3]  ;;  %v258_v34 = vld [vmem:[%s3660_s5 + $0x110] sm:$0x3] }
 0x117   :  { %1681 = vst [vmem:[#allocation7 + $0xc0] sm:$0xff] %v1611_v60  ;;  %v841_v18 = vmul.f32 %v2758_v49, %v758_v13  ;;  %v3870_v60 = vld [vmem:[#allocation37_spill] sm:$0xff]  ;;  %v1553_v12 = vmul.f32 0.25, %v120_v33  ;;  %v2804_v8 = vadd.f32 %v2735_v63, %v755_v28  ;;  %v124_v5 = vld [vmem:[#allocation2 + $0x140] sm:$0xff]  ;;  %v1555_v57 = vmul.f32 0.25, %v122_v53 }
 0x118   :  { %1682 = vst [vmem:[#allocation7 + $0xc8] sm:$0xff] %v1612_v62  ;;  %v1484_v32 = vmul.f32 0.75, %v3870_v60  ;;  %v500_v40 = vrot.slane %v499_v6, 2  ;;  %v1554_v62 = vmul.f32 0.25, %v121_v52  ;;  %v3871_v49 = vld [vmem:[#allocation41_spill] sm:$0xff]  ;;  %v1621_v9 = vadd.f32 %v1551_v51, %v1481_v11  ;;  %1831 = vmatmul.msk.f32.gmra.mxu2 %vm714_vm1, %v258_v34  ;;  %v3875_v28 = vld [vmem:[#allocation42_spill] sm:$0xff] }
 0x119   :  { %1683 = vst [vmem:[#allocation7 + $0xd0] sm:$0xff] %v1613_v37  ;;  %v2801_v58 = vadd.f32 %v841_v18, %v756_v4  ;;  %v125_v37 = vld [vmem:[#allocation2 + $0x148] sm:$0x3]  ;;  %v1485_v3 = vmul.f32 0.75, %v3871_v49  ;;  %v1486_v16 = vmul.f32 0.75, %v2590_v22  ;;  %v1622_v26 = vadd.f32 %v1552_v19, %v1482_v54  ;;  %v255_v63 = vld [vmem:[%s3660_s5 + $0xf8] sm:$0xff] }
 0x11a   :  { %1684 = vst [vmem:[#allocation7 + $0xd8] sm:$0x3] %v1614_v61  ;;  %v501_v44 = vadd.f32 %v500_v40, %v499_v6  ;;  %v1556_v61 = vmul.f32 0.25, %v123_v23  ;;  %v1487_v11 = vmul.f32 0.75, %v2604_v50  ;;  %v1557_v22 = vmul.f32 0.25, %v124_v5  ;;  %v126_v54 = vld [vmem:[#allocation2 + $0x150] sm:$0xff] }
 0x11b   :  { %1685 = vst [vmem:[#allocation7 + $0xe0] sm:$0xff] %v1615_v45  ;;  %1826 = vmatpush.msk.msra.mxu1 %vm366_vm0, %v2801_v58  ;;  %1832 = vmatpush.msk.msra.mxu3 %vm366_vm0, %v2801_v58  ;;  %v1623_v21 = vadd.f32 %v1553_v12, %v1483_v7  ;;  %v1488_v42 = vmul.f32 0.75, %v2617_v25  ;;  %v1558_v45 = vmul.f32 0.25, %v125_v37  ;;  %v1624_v20 = vadd.f32 %v1554_v62, %v1484_v32  ;;  %v2825_v31 = vld [vmem:[#allocation2 + $0x158] sm:$0xff]  ;;  %v1853_v50 = vld [vmem:[#allocation5 + $0x150] sm:$0xff]  ;;  %v2833_v6 = vld [vmem:[#allocation2 + $0x168] sm:$0xff] }
 0x11c   :  { %1686 = vst [vmem:[#allocation7 + $0xe8] sm:$0xff] %v1616_v38  ;;  %v502_v59 = vrot.slane %v501_v44, 1  ;;  %v1489_v38 = vmul.f32 0.75, %v1853_v50  ;;  %v1559_v13 = vmul.f32 0.25, %v126_v54  ;;  %v1625_v4 = vadd.f32 %v1555_v57, %v1485_v3  ;;  %v2829_v25 = vld [vmem:[#allocation2 + $0x160] sm:$0xff]  ;;  %v2837_v19 = vld [vmem:[#allocation2 + $0x170] sm:$0xff]  ;;  %v508_v3 = vpop.permute.xlu0 %507 }
 0x11d   :  { %1687 = vst [vmem:[#allocation7 + $0xf0] sm:$0xff] %v1617_v41  ;;  %868 = vmatpush.msra.mxu1 %v2804_v8  ;;  %1750 = vmatpush.msra.mxu3 %v2804_v8  ;;  %v1490_v56 = vmul.f32 0.75, %v1854_v43  ;;  %v1560_v51 = vmul.f32 0.25, %v2825_v31  ;;  %v1626_v41 = vadd.f32 %v1556_v61, %v1486_v16  ;;  %v1491_v33 = vmul.f32 0.75, %v3875_v28  ;;  %v2841_v32 = vld [vmem:[#allocation2 + $0x178] sm:$0xff]  ;;  %v2852_v5 = vld [vmem:[#allocation2 + $0x188] sm:$0xff] }
 0x11e   :  { %1688 = vst [vmem:[#allocation7 + $0xf8] sm:$0xff] %v1618_v30  ;;  %1827 = vmatmul.msk.f32.vlgmr.msra.gmra.mxu1 %vm714_vm1, %v255_v63  ;;  %1833 = vmatmul.msk.f32.vlgmr.msra.gmra.mxu3 %vm714_vm1, %v259_v24  ;;  %v1561_v48 = vmul.f32 0.25, %v2829_v25  ;;  %v1627_v7 = vadd.f32 %v1557_v22, %v1487_v11  ;;  %v1492_v30 = vmul.f32 0.75, %v2609_v17  ;;  %v1562_v18 = vmul.f32 0.25, %v2833_v6  ;;  %v2843_v12 = vld [vmem:[#allocation2 + $0x180] sm:$0x3] }
 0x11f   :  { %1689 = vst [vmem:[#allocation7 + $0x100] sm:$0xff] %v1619_v55  ;;  %v1628_v52 = vadd.f32 %v1558_v45, %v1488_v42  ;;  %v503_v60 = vadd.f32 %v502_v59, %v501_v44  ;;  %v1493_v55 = vmul.f32 0.75, %v2623_v14  ;;  %v1563_v40 = vmul.f32 0.25, %v2837_v19  ;;  %v2856_v57 = vld [vmem:[#allocation2 + $0x190] sm:$0xff]  ;;  %v3882_v63 = vld [vmem:[#allocation43_spill] sm:$0xff]  ;;  %v2864_v22 = vld [vmem:[#allocation2 + $0x1a0] sm:$0xff] }
 0x120   :  { %1690 = vst [vmem:[#allocation7 + $0x108] sm:$0xff] %v1620_v1  ;;  %v1629_v53 = vadd.f32 %v1559_v13, %v1489_v38  ;;  %v1494_v23 = vmul.f32 0.75, %v2629_v46  ;;  %v1564_v62 = vmul.f32 0.25, %v2841_v32  ;;  %v1630_v17 = vadd.f32 %v1560_v51, %v1490_v56  ;;  %v256_v1 = vld [vmem:[%s3660_s5 + $0x100] sm:$0x3]  ;;  %v1855_v46 = vld [vmem:[#allocation5 + $0x188] sm:$0xff] }
 0x121   :  { %3872 = vst [vmem:[#allocation15_spill] sm:$0xff] %v2825_v31  ;;  %v1495_v37 = vmul.f32 0.75, %v2642_v0  ;;  %v1565_v14 = vmul.f32 0.25, %v2843_v12  ;;  %v1631_v49 = vadd.f32 %v1561_v48, %v1491_v33  ;;  %v1566_v44 = vmul.f32 0.25, %v2852_v5  ;;  %v70_v42 = vld [vmem:[%s3656_s1 + $0x38] sm:$0x1] }
 0x122   :  { %1691 = vst [vmem:[#allocation7 + $0x110] sm:$0x3] %v1621_v9  ;;  %v1496_v9 = vmul.f32 0.75, %v1855_v46  ;;  %v1632_v16 = vadd.f32 %v1562_v18, %v1492_v30  ;;  %v510_v61 = vadd.f32 %v508_v3, %v503_v60  ;;  %v1497_v24 = vmul.f32 0.75, %v3882_v63  ;;  %v2871_v45 = vld [vmem:[#allocation2 + $0x1a8] sm:$0xff]  ;;  %v2875_v38 = vld [vmem:[#allocation2 + $0x1b0] sm:$0xff] }
 0x123   :  { %3873 = vst [vmem:[#allocation19_spill] sm:$0xff] %v2829_v25  ;;  %v1567_v0 = vmul.f32 0.25, %v2856_v57  ;;  %v1633_v11 = vadd.f32 %v1563_v40, %v1493_v55  ;;  %v1634_v54 = vadd.f32 %v1564_v62, %v1494_v23  ;;  %v1569_v59 = vmul.f32 0.25, %v2864_v22  ;;  %v2879_v56 = vld [vmem:[#allocation2 + $0x1b8] sm:$0x3]  ;;  %v3887_v51 = vld [vmem:[#allocation44_spill] sm:$0xff] }
 0x124   :  { %1692 = vst [vmem:[#allocation7 + $0x118] sm:$0xff] %v1622_v26  ;;  %v2859_v26 = vld [vmem:[#allocation2 + $0x198] sm:$0xff]  ;;  %v1635_v50 = vadd.f32 %v1565_v14, %v1495_v37  ;;  %v1570_v13 = vmul.f32 0.25, %v2871_v45  ;;  %v511_v43 = vmax.f32 %v510_v61, 0.0  ;;  %v1571_v28 = vmul.f32 0.25, %v2875_v38  ;;  %v75_v18 = vld [vmem:[%s3656_s1 + $0x60] sm:$0xff] }
 0x125   :  { %3874 = vst [vmem:[#allocation22_spill] sm:$0xff] %v2833_v6  ;;  %v1568_v34 = vmul.f32 0.25, %v2859_v26  ;;  %v3888_v33 = vld [vmem:[#allocation45_spill] sm:$0xff]  ;;  %v504_v60 = vmul.f32 0.5, %v70_v42  ;;  %v76_v40 = vld [vmem:[%s3656_s1 + $0x68] sm:$0xff]  ;;  %v77_v23 = vld [vmem:[%s3656_s1 + $0x70] sm:$0xff] }
 0x126   :  { %1693 = vst [vmem:[#allocation7 + $0x120] sm:$0xff] %v1623_v21  ;;  %1828 = vmatmul.msk.f32.gmra.mxu1 %vm714_vm1, %v256_v1  ;;  %v1498_v21 = vmul.f32 0.75, %v2631_v36  ;;  %v1500_v36 = vmul.f32 0.75, %v2660_v10  ;;  %v1502_v48 = vmul.f32 0.75, %v3888_v33  ;;  %v512_v55 = vmul.f32 0.5, %v511_v43  ;;  %v2900_v1 = vld [vmem:[%s3662_s7] sm:$0xff] }
 0x127   :  { %3876 = vst [vmem:[#allocation26_spill] sm:$0xff] %v2837_v19  ;;  %v940_v37 = vmul.f32 0.09090909, %v2900_v1  ;;  %v947_v14 = vmul.f32 0.90909094, %v75_v18  ;;  %v2912_v46 = vld [vmem:[%s3662_s7 + $0x8] sm:$0xff] }
 0x128   :  { %1694 = vst [vmem:[#allocation7 + $0x128] sm:$0xff] %v1624_v20  ;;  %v1499_v20 = vmul.f32 0.75, %v2644_v47  ;;  %v1637_v47 = vadd.f32 %v1567_v0, %v1497_v24  ;;  %v1638_v30 = vadd.f32 %v1568_v34, %v1498_v21  ;;  %v81_v3 = vld [vmem:[%s3656_s1 + $0x90] sm:$0x3]  ;;  %v80_v61 = vld [vmem:[%s3656_s1 + $0x88] sm:$0xff]  ;;  %s1800_s5 = sshll.u32 %s3664_s9, 4  ;;  %s1801_s5 = int_to_ptr.hbm [resolvable:$true] %s1800_s5 }
 0x129   :  { %3877 = vst [vmem:[#allocation29_spill] sm:$0xff] %v2841_v32  ;;  %v942_v63 = vmul.f32 0.09090909, %v2750_v29  ;;  %v949_v24 = vmul.f32 0.90909094, %v77_v23  ;;  %v2930_v42 = vld [vmem:[%s3662_s7 + $0x28] sm:$0xff] }
 0x12a   :  { %3878 = vst [vmem:[#allocation34_spill] sm:$0xff] %v2843_v12  ;;  %v1639_v10 = vadd.f32 %v1569_v59, %v1499_v20  ;;  %v943_v0 = vmul.f32 0.09090909, %v2764_v2  ;;  %v944_v21 = vmul.f32 0.09090909, %v2771_v39 }
 0x12b   :  { %1695 = vst [vmem:[#allocation7 + $0x130] sm:$0xff] %v1625_v4  ;;  %v1636_v4 = vadd.f32 %v1566_v44, %v1496_v9  ;;  %v941_v9 = vmul.f32 0.09090909, %v2912_v46  ;;  %v948_v44 = vmul.f32 0.90909094, %v76_v40 }
 0x12c   :  { %1696 = vst [vmem:[#allocation7 + $0x138] sm:$0xff] %v1626_v41  ;;  %v1501_v41 = vmul.f32 0.75, %v3887_v51  ;;  %v945_v20 = vmul.f32 0.09090909, %v2930_v42  ;;  %v952_v59 = vmul.f32 0.90909094, %v80_v61 }
 0x12d   :  { %3879 = vst [vmem:[#allocation35_spill] sm:$0xff] %v2852_v5 }
 0x12e   :  { %1697 = vst [vmem:[#allocation7 + $0x140] sm:$0xff] %v1627_v7  ;;  %v1572_v7 = vmul.f32 0.25, %v2879_v56  ;;  %v2953_v51 = vadd.f32 %v952_v59, %v945_v20 }
 0x12f   :  { %3880 = vst [vmem:[#allocation16_spill] sm:$0xff] %v2856_v57 }
 0x130   :  { %1698 = vst [vmem:[#allocation7 + $0x148] sm:$0x3] %v1628_v52  ;;  %v1640_v52 = vadd.f32 %v1570_v13, %v1500_v36  ;;  %v1642_v62 = vadd.f32 %v1572_v7, %v1502_v48  ;;  %v946_v36 = vmul.f32 0.09090909, %v2398_v27  ;;  %v953_v13 = vmul.f32 0.90909094, %v81_v3 }
 0x131   :  { %3881 = vst [vmem:[#allocation20_spill] sm:$0xff] %v2859_v26 }
 0x132   :  { %1699 = vst [vmem:[#allocation7 + $0x150] sm:$0xff] %v1629_v53  ;;  %v1641_v53 = vadd.f32 %v1571_v28, %v1501_v41  ;;  %v2959_v41 = vadd.f32 %v953_v13, %v946_v36 }
 0x133   :  { %3883 = vst [vmem:[#allocation25_spill] sm:$0xff] %v2864_v22 }
 0x134   :  { %1700 = vst [vmem:[#allocation7 + $0x158] sm:$0xff] %v1630_v17  ;;  %v78_v17 = vld [vmem:[%s3656_s1 + $0x78] sm:$0xff] }
 0x135   :  { %3884 = vst [vmem:[#allocation36_spill] sm:$0xff] %v2871_v45 }
 0x136   :  { %1701 = vst [vmem:[#allocation7 + $0x160] sm:$0xff] %v1631_v49  ;;  %v79_v49 = vld [vmem:[%s3656_s1 + $0x80] sm:$0xff] }
 0x137   :  { %3885 = vst [vmem:[#allocation30_spill] sm:$0xff] %v2875_v38  ;;  %v951_v34 = vmul.f32 0.90909094, %v79_v49 }
 0x138   :  { %1702 = vst [vmem:[#allocation7 + $0x168] sm:$0xff] %v1632_v16  ;;  %v513_v16 = vadd.f32 %v512_v55, %v504_v60 }
 0x139   :  { %3886 = vst [vmem:[#allocation38_spill] sm:$0xff] %v2879_v56  ;;  %v2947_v43 = vadd.f32 %v951_v34, %v944_v21 }
 0x13a   :  { %1703 = vst [vmem:[#allocation7 + $0x170] sm:$0xff] %v1633_v11  ;;  %v950_v11 = vmul.f32 0.90909094, %v78_v17 }
 0x13b   :  { %1704 = vst [vmem:[#allocation7 + $0x178] sm:$0xff] %v1634_v54  ;;  %v2921_v54 = vadd.f32 %v947_v14, %v940_v37 }
 0x13c   :  { %1705 = vst [vmem:[#allocation7 + $0x180] sm:$0x3] %v1635_v50  ;;  %v2933_v50 = vadd.f32 %v948_v44, %v941_v9 }
 0x13d   :  { %1706 = vst [vmem:[#allocation7 + $0x188] sm:$0xff] %v1636_v4  ;;  %v2939_v4 = vadd.f32 %v949_v24, %v942_v63 }
 0x13e   :  { %1707 = vst [vmem:[#allocation7 + $0x190] sm:$0xff] %v1637_v47 }
 0x13f   :  { %1708 = vst [vmem:[#allocation7 + $0x198] sm:$0xff] %v1638_v30  ;;  %v925_v30 = vpop.permute.xlu1 %924 }
 0x140   :  { %3889 = vst [vmem:[#allocation39_spill] sm:$0xff] %v2900_v1 }
 0x141   :  { %1709 = vst [vmem:[#allocation7 + $0x1a0] sm:$0xff] %v1639_v10 }
 0x142   :  { %3890 = vst [vmem:[#allocation17_spill] sm:$0xff] %v2912_v46 }
 0x143   :  { %1710 = vst [vmem:[#allocation7 + $0x1a8] sm:$0xff] %v1640_v52 }
 0x144   :  { %1711 = vst [vmem:[#allocation7 + $0x1b0] sm:$0xff] %v1641_v53 }
 0x145   :  { %1712 = vst [vmem:[#allocation7 + $0x1b8] sm:$0x3] %v1642_v62 }
 0x146   :  { %3891 = vst [vmem:[#allocation21_spill] sm:$0xff] %v2921_v54  ;;  %1793 = dma.vmem_to_hbm [thread:$0]  %s1786_s16, 8960, %s1788_s4, [#allocation4], %s2026_s17, %s2026_s17, %s2027_s18  }
 0x147   :  { %1765 = vst [vmem:[%s3662_s7 + $0x48] sm:$0x3] %v2801_v58  ;;  %v2945_v58 = vadd.f32 %v950_v11, %v943_v0 }
 0x148   :  { %3892 = vst [vmem:[#allocation27_spill] sm:$0xff] %v2930_v42 }
 0x149   :  { %3893 = vst [vmem:[#allocation40_spill] sm:$0xff] %v2933_v50 }
 0x14a   :  { %1763 = vst [vmem:[%s3662_s7 + $0x38] sm:$0x1] %v513_v16 }
 0x14b   :  { %3894 = vst [vmem:[#allocation31_spill] sm:$0xff] %v2939_v4 }
 0x14c   :  { %1764 = vst [vmem:[%s3662_s7 + $0x40] sm:$0xff] %v2804_v8  ;;  %v2984_v8 = vld [vmem:[%s3655_s0 + $0x8] ss:$0 sm:$0xff] }
 0x14d   :  { %3895 = vst [vmem:[#allocation18_spill] sm:$0xff] %v2945_v58  ;;  %v887_v33 = vmul.f32 %v2984_v8, %v2688_v15 }
 0x14e   :  { %3896 = vst [vmem:[#allocation23_spill] sm:$0xff] %v2947_v43 }
 0x14f   :  { %1768 = vst [vmem:[%s3662_s7 + $0x60] sm:$0xff] %v2921_v54 }
 0x150   :  { %3897 = vst [vmem:[#allocation37_spill] sm:$0xff] %v2953_v51 }
 0x151   :  { %1769 = vst [vmem:[%s3662_s7 + $0x68] sm:$0xff] %v2933_v50 }
 0x152   :  { %1770 = vst [vmem:[%s3662_s7 + $0x70] sm:$0xff] %v2939_v4 }
 0x153   :  { %1771 = vst [vmem:[%s3662_s7 + $0x78] sm:$0xff] %v2945_v58 }
 0x154   :  { %1772 = vst [vmem:[%s3662_s7 + $0x80] sm:$0xff] %v2947_v43 }
 0x155   :  { %1773 = vst [vmem:[%s3662_s7 + $0x88] sm:$0xff] %v2953_v51 }
 0x156   :  { %1774 = vst [vmem:[%s3662_s7 + $0x90] sm:$0x3] %v2959_v41 }
 0x157   :  { %3898 = vst [vmem:[#allocation41_spill] sm:$0xff] %v2984_v8 }
 0x15d   :  { %v1859_v18 = vld [vmem:[%s3656_s1 + $0x50] sm:$0xff]  ;;  %v82_v55 = vld [vmem:[%s3656_s1 + $0x98] sm:$0xff] }
 0x15e   :  { %v889_v52 = vmul.f32 0.5, %v1859_v18  ;;  %v963_v23 = vmul.f32 0.90909094, %v82_v55 }
 0x193   :  { %v914_v28 = vpop.f32.mrf.mxu2 }
 0x19b   :  { %v870_v47 = vpop.f32.mrf.mxu1 }
 0x19c   :  { %v915_v48 = vadd.f32 %v914_v28, %v870_v47 }
 0x19e   :  { %v920_v7 = vadd.f32 %v915_v48, %v887_v33 }
 0x1a0   :  { %v932_v10 = vadd.f32 %v925_v30, %v920_v7 }
 0x1a2   :  { %v934_v60 = vmax.f32 %v932_v10, 0.0 }
 0x1a4   :  { %v936_v40 = vmul.f32 0.5, %v934_v60 }
 0x1a6   :  { %v2994_v53 = vadd.f32 %v936_v40, %v889_v52 }
 0x1a8   :  { %3899 = vst [vmem:[#allocation42_spill] sm:$0xff] %v2994_v53  ;;  %v961_v15 = vmul.f32 0.09090909, %v2994_v53  ;;  %v1070_v37 = vrot.slane %v2994_v53, 2  ;;  %v1071_v14 = vrot.slane %v2994_v53, 3  ;;  %v1072_v49 = vrot.slane %v2994_v53, 4 }
 0x1a9   :  { %1766 = vst [vmem:[%s3662_s7 + $0x50] sm:$0xff] %v2994_v53  ;;  %v1073_v9 = vrot.slane %v2994_v53, 5  ;;  %v1074_v44 = vrot.slane %v2994_v53, 6  ;;  %v1075_v21 = vrot.slane %v2994_v53, 7 }
 0x1aa   :  { %v3001_v62 = vadd.f32 %v963_v23, %v961_v15  ;;  %v1079_v34 = vperm.slane %v1070_v37, 0  ;;  %v3026_v20 = vperm.slane %v1071_v14, 0  ;;  %v3028_v59 = vperm.slane %v1072_v49, 0 }
 0x1ab   :  { %v3031_v28 = vperm.slane %v1073_v9, 0  ;;  %v3033_v47 = vperm.slane %v1074_v44, 0 }
 0x1ac   :  { %3900 = vst [vmem:[#allocation43_spill] sm:$0xff] %v3001_v62  ;;  %v970_v17 = vrot.slane %v3001_v62, 2  ;;  %v971_v3 = vrot.slane %v3001_v62, 3  ;;  %v972_v16 = vrot.slane %v3001_v62, 4  ;;  %v973_v61 = vrot.slane %v3001_v62, 5 }
 0x1ad   :  { %1775 = vst [vmem:[%s3662_s7 + $0x98] sm:$0xff] %v3001_v62  ;;  %v974_v63 = vrot.slane %v3001_v62, 6  ;;  %v975_v24 = vrot.slane %v3001_v62, 7  ;;  %v3036_v33 = vperm.slane %v3001_v62, 0  ;;  %v3165_v53 = vmul.f32 %v1079_v34, %v2921_v54 }
 0x1ae   :  { %v979_v0 = vperm.slane %v970_v17, 0  ;;  %v980_v13 = vperm.slane %v971_v3, 0  ;;  %v981_v48 = vperm.slane %v972_v16, 0  ;;  %v982_v7 = vperm.slane %v973_v61, 0 }
 0x1af   :  { %3901 = vst [vmem:[#allocation44_spill] sm:$0xff] %v3036_v33  ;;  %v983_v30 = vperm.slane %v974_v63, 0  ;;  %v984_v10 = vperm.slane %v975_v24, 0 }
 0x1b0   :  { %v3039_v18 = vmul.f32 %v2900_v1, %v979_v0  ;;  %v3042_v52 = vmul.f32 %v2912_v46, %v979_v0  ;;  %v3045_v60 = vmul.f32 %v2750_v29, %v979_v0  ;;  %v3048_v55 = vmul.f32 %v2764_v2, %v979_v0 }
 0x1b1   :  { %v3051_v40 = vmul.f32 %v2771_v39, %v979_v0  ;;  %v3054_v23 = vmul.f32 %v2930_v42, %v979_v0  ;;  %v3057_v15 = vmul.f32 %v979_v0, %v2398_v27  ;;  %v3060_v17 = vmul.f32 %v2900_v1, %v980_v13 }
 0x1b2   :  { %v3063_v37 = vmul.f32 %v2912_v46, %v980_v13  ;;  %v3066_v14 = vmul.f32 %v2750_v29, %v980_v13  ;;  %v3069_v49 = vmul.f32 %v2764_v2, %v980_v13  ;;  %v3072_v3 = vmul.f32 %v2771_v39, %v980_v13 }
 0x1b3   :  { %v3075_v9 = vmul.f32 %v2930_v42, %v980_v13  ;;  %v3078_v44 = vmul.f32 %v980_v13, %v2398_v27  ;;  %v3081_v16 = vmul.f32 %v2900_v1, %v981_v48  ;;  %v3084_v61 = vmul.f32 %v2912_v46, %v981_v48 }
 0x1b4   :  { %v3087_v63 = vmul.f32 %v2750_v29, %v981_v48  ;;  %v3090_v24 = vmul.f32 %v2764_v2, %v981_v48  ;;  %v3093_v0 = vmul.f32 %v2771_v39, %v981_v48  ;;  %v3096_v11 = vmul.f32 %v2930_v42, %v981_v48 }
 0x1b5   :  { %3902 = vst [vmem:[#allocation45_spill] sm:$0xff] %v3075_v9  ;;  %v3099_v13 = vmul.f32 %v981_v48, %v2398_v27  ;;  %v3102_v36 = vmul.f32 %v2900_v1, %v982_v7  ;;  %v3105_v56 = vmul.f32 %v2912_v46, %v982_v7  ;;  %v3108_v38 = vmul.f32 %v2750_v29, %v982_v7 }
 0x1b6   :  { %3903 = vst [vmem:[#allocation46_spill] sm:$0xff] %v3078_v44  ;;  %v3111_v45 = vmul.f32 %v2764_v2, %v982_v7  ;;  %v3114_v22 = vmul.f32 %v2771_v39, %v982_v7  ;;  %v3117_v26 = vmul.f32 %v2930_v42, %v982_v7  ;;  %v3120_v48 = vmul.f32 %v982_v7, %v2398_v27 }
 0x1b7   :  { %3904 = vst [vmem:[#allocation47_spill] sm:$0xff] %v3081_v16  ;;  %v3123_v57 = vmul.f32 %v2900_v1, %v983_v30  ;;  %v3126_v5 = vmul.f32 %v2912_v46, %v983_v30  ;;  %v3129_v12 = vmul.f32 %v2750_v29, %v983_v30  ;;  %v3132_v32 = vmul.f32 %v2764_v2, %v983_v30  ;;  %v4008_v16 = vld [vmem:[#allocation37_spill] sm:$0xff] }
 0x1b8   :  { %3905 = vst [vmem:[#allocation48_spill] sm:$0xff] %v3084_v61  ;;  %v3135_v19 = vmul.f32 %v2771_v39, %v983_v30  ;;  %v3138_v6 = vmul.f32 %v2930_v42, %v983_v30  ;;  %v3141_v7 = vmul.f32 %v983_v30, %v2398_v27  ;;  %v3144_v25 = vmul.f32 %v2900_v1, %v984_v10 }
 0x1b9   :  { %3906 = vst [vmem:[#allocation49_spill] sm:$0xff] %v3087_v63  ;;  %v3147_v31 = vmul.f32 %v2912_v46, %v984_v10  ;;  %v3150_v8 = vmul.f32 %v2750_v29, %v984_v10  ;;  %v3153_v35 = vmul.f32 %v2764_v2, %v984_v10  ;;  %v3156_v33 = vmul.f32 %v2771_v39, %v984_v10 }
 0x1ba   :  { %3907 = vst [vmem:[#allocation50_spill] sm:$0xff] %v3090_v24  ;;  %v3159_v62 = vmul.f32 %v2930_v42, %v984_v10  ;;  %v3162_v30 = vmul.f32 %v984_v10, %v2398_v27  ;;  %v1084_v1 = vperm.slane %v1075_v21, 0  ;;  %v3168_v46 = vmul.f32 %v1079_v34, %v2933_v50 }
 0x1bb   :  { %3908 = vst [vmem:[#allocation51_spill] sm:$0xff] %v3093_v0  ;;  %v3171_v29 = vmul.f32 %v1079_v34, %v2939_v4  ;;  %v3174_v2 = vmul.f32 %v1079_v34, %v2945_v58  ;;  %v3177_v39 = vmul.f32 %v1079_v34, %v2947_v43  ;;  %v3180_v42 = vmul.f32 %v1079_v34, %v2953_v51  ;;  %v4002_v0 = vld [vmem:[#allocation40_spill] sm:$0xff] }
 0x1bc   :  { %3909 = vst [vmem:[#allocation52_spill] sm:$0xff] %v3096_v11  ;;  %v3183_v21 = vmul.f32 %v1079_v34, %v2959_v41  ;;  %v3187_v10 = vmul.f32 %v3026_v20, %v2921_v54  ;;  %v3191_v27 = vmul.f32 %v3026_v20, %v2933_v50  ;;  %v3203_v34 = vmul.f32 %v3026_v20, %v2947_v43 }
 0x1bd   :  { %3910 = vst [vmem:[#allocation53_spill] sm:$0xff] %v3099_v13 }
 0x1be   :  { %3911 = vst [vmem:[#allocation54_spill] sm:$0xff] %v3102_v36 }
 0x1bf   :  { %3912 = vst [vmem:[#allocation55_spill] sm:$0xff] %v3105_v56 }
 0x1c0   :  { %3913 = vst [vmem:[#allocation56_spill] sm:$0xff] %v3108_v38 }
 0x1c1   :  { %3914 = vst [vmem:[#allocation57_spill] sm:$0xff] %v3111_v45  ;;  %v3275_v45 = vmul.f32 %v3033_v47, %v2933_v50 }
 0x1c2   :  { %3915 = vst [vmem:[#allocation58_spill] sm:$0xff] %v3114_v22  ;;  %v3271_v22 = vmul.f32 %v3033_v47, %v2921_v54 }
 0x1c3   :  { %3916 = vst [vmem:[#allocation59_spill] sm:$0xff] %v3117_v26  ;;  %v3267_v26 = vmul.f32 %v3031_v28, %v2959_v41 }
 0x1c4   :  { %3917 = vst [vmem:[#allocation60_spill] sm:$0xff] %v3120_v48  ;;  %v3263_v48 = vmul.f32 %v3031_v28, %v2953_v51 }
 0x1c5   :  { %3918 = vst [vmem:[#allocation61_spill] sm:$0xff] %v3123_v57  ;;  %v3255_v57 = vmul.f32 %v3031_v28, %v2945_v58 }
 0x1c6   :  { %3919 = vst [vmem:[#allocation62_spill] sm:$0xff] %v3126_v5  ;;  %v3251_v5 = vmul.f32 %v3031_v28, %v2939_v4 }
 0x1c7   :  { %3920 = vst [vmem:[#allocation63_spill] sm:$0xff] %v3129_v12  ;;  %v3247_v12 = vmul.f32 %v3031_v28, %v2933_v50 }
 0x1c8   :  { %3921 = vst [vmem:[#allocation64_spill] sm:$0xff] %v3132_v32  ;;  %v3243_v32 = vmul.f32 %v3031_v28, %v2921_v54 }
 0x1c9   :  { %3922 = vst [vmem:[#allocation65_spill] sm:$0xff] %v3135_v19  ;;  %v3239_v19 = vmul.f32 %v3028_v59, %v2959_v41 }
 0x1ca   :  { %3923 = vst [vmem:[#allocation66_spill] sm:$0xff] %v3138_v6  ;;  %v3235_v6 = vmul.f32 %v3028_v59, %v2953_v51 }
 0x1cb   :  { %3924 = vst [vmem:[#allocation67_spill] sm:$0xff] %v3141_v7  ;;  %v3227_v7 = vmul.f32 %v3028_v59, %v2945_v58 }
 0x1cc   :  { %3925 = vst [vmem:[#allocation68_spill] sm:$0xff] %v3144_v25  ;;  %v3223_v25 = vmul.f32 %v3028_v59, %v2939_v4 }
 0x1cd   :  { %3926 = vst [vmem:[#allocation69_spill] sm:$0xff] %v3147_v31  ;;  %v3219_v31 = vmul.f32 %v3028_v59, %v2933_v50 }
 0x1ce   :  { %3927 = vst [vmem:[#allocation70_spill] sm:$0xff] %v3150_v8  ;;  %v3215_v8 = vmul.f32 %v3028_v59, %v2921_v54 }
 0x1cf   :  { %3928 = vst [vmem:[#allocation71_spill] sm:$0xff] %v3153_v35  ;;  %v3211_v35 = vmul.f32 %v3026_v20, %v2959_v41 }
 0x1d0   :  { %3929 = vst [vmem:[#allocation72_spill] sm:$0xff] %v3156_v33  ;;  %v3207_v33 = vmul.f32 %v3026_v20, %v2953_v51 }
 0x1d1   :  { %3930 = vst [vmem:[#allocation73_spill] sm:$0xff] %v3159_v62  ;;  %v3199_v62 = vmul.f32 %v3026_v20, %v2945_v58 }
 0x1d2   :  { %3931 = vst [vmem:[#allocation74_spill] sm:$0xff] %v3162_v30  ;;  %v3195_v30 = vmul.f32 %v3026_v20, %v2939_v4  ;;  %v3231_v20 = vmul.f32 %v3028_v59, %v2947_v43  ;;  %v3259_v59 = vmul.f32 %v3031_v28, %v2947_v43  ;;  %v3287_v28 = vmul.f32 %v3033_v47, %v2947_v43 }
 0x1d3   :  { %3932 = vst [vmem:[#allocation75_spill] sm:$0xff] %v3203_v34 }
 0x1d4   :  { %3933 = vst [vmem:[#allocation76_spill] sm:$0xff] %v3207_v33 }
 0x1d5   :  { %3934 = vst [vmem:[#allocation77_spill] sm:$0xff] %v3211_v35 }
 0x1d6   :  { %3935 = vst [vmem:[#allocation78_spill] sm:$0xff] %v3215_v8 }
 0x1d7   :  { %3936 = vst [vmem:[#allocation79_spill] sm:$0xff] %v3219_v31 }
 0x1d8   :  { %3937 = vst [vmem:[#allocation80_spill] sm:$0xff] %v3223_v25  ;;  %v4003_v25 = vld [vmem:[#allocation31_spill] sm:$0xff] }
 0x1d9   :  { %3938 = vst [vmem:[#allocation81_spill] sm:$0xff] %v3227_v7  ;;  %v4005_v7 = vld [vmem:[#allocation14_spill] sm:$0xff] }
 0x1da   :  { %3939 = vst [vmem:[#allocation82_spill] sm:$0xff] %v3231_v20 }
 0x1db   :  { %3940 = vst [vmem:[#allocation83_spill] sm:$0xff] %v3235_v6  ;;  %v4004_v6 = vld [vmem:[#allocation27_spill] sm:$0xff] }
 0x1dc   :  { %3941 = vst [vmem:[#allocation84_spill] sm:$0xff] %v3239_v19  ;;  %v3991_v19 = vld [vmem:[#allocation42_spill] sm:$0xff] }
 0x1dd   :  { %3942 = vst [vmem:[#allocation85_spill] sm:$0xff] %v3243_v32  ;;  %v1077_v13 = vperm.slane %v3991_v19, 0 }
 0x1de   :  { %3943 = vst [vmem:[#allocation86_spill] sm:$0xff] %v3247_v12  ;;  %v3995_v12 = vld [vmem:[#allocation39_spill] sm:$0xff] }
 0x1df   :  { %3944 = vst [vmem:[#allocation87_spill] sm:$0xff] %v3251_v5  ;;  %v1098_v24 = vmul.f32 %v1077_v13, %v4002_v0  ;;  %v1099_v5 = vmul.f32 %v1077_v13, %v4003_v25  ;;  %v1102_v35 = vmul.f32 %v1077_v13, %v4008_v16 }
 0x1e0   :  { %3945 = vst [vmem:[#allocation88_spill] sm:$0xff] %v3255_v57  ;;  %v3279_v57 = vmul.f32 %v3033_v47, %v2939_v4 }
 0x1e1   :  { %3946 = vst [vmem:[#allocation89_spill] sm:$0xff] %v3259_v59  ;;  %v3283_v59 = vmul.f32 %v3033_v47, %v2945_v58 }
 0x1e2   :  { %3947 = vst [vmem:[#allocation90_spill] sm:$0xff] %v3263_v48  ;;  %v3307_v48 = vmul.f32 %v1084_v1, %v2945_v58 }
 0x1e3   :  { %3948 = vst [vmem:[#allocation91_spill] sm:$0xff] %v3267_v26  ;;  %v3291_v26 = vmul.f32 %v3033_v47, %v2953_v51 }
 0x1e4   :  { %3949 = vst [vmem:[#allocation92_spill] sm:$0xff] %v3271_v22  ;;  %v3295_v22 = vmul.f32 %v3033_v47, %v2959_v41  ;;  %v3316_v47 = vmul.f32 %v1084_v1, %v2959_v41 }
 0x1e5   :  { %3950 = vst [vmem:[#allocation93_spill] sm:$0xff] %v3275_v45  ;;  %v3298_v45 = vmul.f32 %v1084_v1, %v2921_v54  ;;  %v4006_v54 = vld [vmem:[#allocation18_spill] sm:$0xff] }
 0x1e6   :  { %3951 = vst [vmem:[#allocation94_spill] sm:$0xff] %v3279_v57  ;;  %v3301_v57 = vmul.f32 %v1084_v1, %v2933_v50 }
 0x1e7   :  { %3952 = vst [vmem:[#allocation95_spill] sm:$0xff] %v3283_v59  ;;  %v3304_v59 = vmul.f32 %v1084_v1, %v2939_v4 }
 0x1e8   :  { %3953 = vst [vmem:[#allocation96_spill] sm:$0xff] %v3287_v28  ;;  %v3310_v28 = vmul.f32 %v1084_v1, %v2947_v43 }
 0x1e9   :  { %3954 = vst [vmem:[#allocation97_spill] sm:$0xff] %v3291_v26  ;;  %v3313_v26 = vmul.f32 %v1084_v1, %v2953_v51 }
 0x1ea   :  { %3955 = vst [vmem:[#allocation98_spill] sm:$0xff] %v3295_v22 }
 0x1eb   :  { %3956 = vst [vmem:[#allocation99_spill] sm:$0xff] %v3298_v45  ;;  %v3992_v45 = vld [vmem:[#allocation43_spill] sm:$0xff] }
 0x1ec   :  { %3957 = vst [vmem:[#allocation100_spill] sm:$0xff] %v3301_v57  ;;  %v3993_v32 = vrot.slane %v3992_v45, 1  ;;  %v3994_v57 = vld [vmem:[#allocation44_spill] sm:$0xff]  ;;  %v4001_v45 = vld [vmem:[#allocation21_spill] sm:$0xff] }
 0x1ed   :  { %3958 = vst [vmem:[#allocation101_spill] sm:$0xff] %v3304_v59  ;;  %v997_v56 = vmul.f32 %v3995_v12, %v3994_v57  ;;  %v3996_v59 = vld [vmem:[#allocation17_spill] sm:$0xff]  ;;  %v1002_v20 = vmul.f32 %v4004_v6, %v3994_v57  ;;  %v1003_v4 = vmul.f32 %v3994_v57, %v4005_v7 }
 0x1ee   :  { %3959 = vst [vmem:[#allocation102_spill] sm:$0xff] %v3307_v48  ;;  %v978_v36 = vperm.slane %v3993_v32, 0  ;;  %v998_v38 = vmul.f32 %v3996_v59, %v3994_v57  ;;  %v3997_v48 = vld [vmem:[#allocation28_spill] sm:$0xff]  ;;  %v1097_v32 = vmul.f32 %v1077_v13, %v4001_v45 }
 0x1ef   :  { %3960 = vst [vmem:[#allocation103_spill] sm:$0xff] %v3310_v28  ;;  %v999_v58 = vmul.f32 %v3997_v48, %v3994_v57  ;;  %v3998_v28 = vld [vmem:[#allocation32_spill] sm:$0xff] }
 0x1f0   :  { %3961 = vst [vmem:[#allocation104_spill] sm:$0xff] %v3313_v26  ;;  %v1000_v43 = vmul.f32 %v3998_v28, %v3994_v57  ;;  %v3999_v26 = vrot.slane %v3991_v19, 1  ;;  %v1004_v50 = vmul.f32 %v3995_v12, %v978_v36  ;;  %v1100_v19 = vmul.f32 %v1077_v13, %v4006_v54 }
 0x1f1   :  { %3962 = vst [vmem:[#allocation105_spill] sm:$0xff] %v3316_v47  ;;  %v4000_v47 = vld [vmem:[#allocation33_spill] sm:$0xff]  ;;  %v1167_v51 = vsub.f32 %v997_v56, %v1097_v32  ;;  %v1168_v63 = vsub.f32 %v998_v38, %v1098_v24  ;;  %v1169_v31 = vsub.f32 %v999_v58, %v1099_v5  ;;  %v1005_v61 = vmul.f32 %v3996_v59, %v978_v36 }
 0x1f2   :  { %v1078_v22 = vperm.slane %v3999_v26, 0  ;;  %v1001_v11 = vmul.f32 %v4000_v47, %v3994_v57  ;;  %v4007_v26 = vld [vmem:[#allocation23_spill] sm:$0xff]  ;;  %v1006_v8 = vmul.f32 %v3997_v48, %v978_v36  ;;  %v1170_v44 = vsub.f32 %v1000_v43, %v1100_v19 }
 0x1f3   :  { %v1101_v1 = vmul.f32 %v1077_v13, %v4007_v26  ;;  %v1007_v33 = vmul.f32 %v3998_v28, %v978_v36  ;;  %v1008_v57 = vmul.f32 %v4000_v47, %v978_v36  ;;  %v1103_v12 = vmul.f32 %v1077_v13, %v2959_v41 }
 0x1f4   :  { %v1009_v34 = vmul.f32 %v4004_v6, %v978_v36  ;;  %v1104_v56 = vmul.f32 %v1078_v22, %v4001_v45  ;;  %v1105_v5 = vmul.f32 %v1078_v22, %v4002_v0  ;;  %v1172_v38 = vsub.f32 %v1002_v20, %v1102_v35 }
 0x1f5   :  { %v1171_v9 = vsub.f32 %v1001_v11, %v1101_v1  ;;  %v1173_v58 = vsub.f32 %v1003_v4, %v1103_v12  ;;  %v1237_v24 = vmul.f32 0.5, %v1167_v51  ;;  %v1238_v48 = vmul.f32 0.5, %v1168_v63  ;;  %v1860_v51 = vld [vmem:[#allocation2] sm:$0xff]  ;;  %v1861_v63 = vld [vmem:[#allocation2 + $0x8] sm:$0xff] }
 0x1f6   :  { %v1239_v32 = vmul.f32 0.5, %v1169_v31  ;;  %v1106_v43 = vmul.f32 %v1078_v22, %v4003_v25  ;;  %v1107_v28 = vmul.f32 %v1078_v22, %v4006_v54  ;;  %v1174_v19 = vsub.f32 %v1004_v50, %v1104_v56  ;;  %v1862_v25 = vld [vmem:[#allocation2 + $0x10] sm:$0xff]  ;;  %v1863_v56 = vld [vmem:[#allocation2 + $0x18] sm:$0xff] }
 0x1f7   :  { %v1240_v47 = vmul.f32 0.5, %v1170_v44  ;;  %v1010_v13 = vmul.f32 %v978_v36, %v4005_v7  ;;  %v1108_v11 = vmul.f32 %v1078_v22, %v4007_v26  ;;  %v1175_v1 = vsub.f32 %v1005_v61, %v1105_v5  ;;  %v1864_v5 = vld [vmem:[#allocation2 + $0x20] sm:$0xff] }
 0x1f8   :  { %v1241_v6 = vmul.f32 0.5, %v1171_v9  ;;  %v1109_v45 = vmul.f32 %v1078_v22, %v4008_v16  ;;  %v1176_v0 = vsub.f32 %v1006_v8, %v1106_v43  ;;  %v1177_v35 = vsub.f32 %v1007_v33, %v1107_v28  ;;  %v1868_v28 = vld [vmem:[#allocation2 + $0x40] sm:$0xff] }
 0x1f9   :  { %v1242_v12 = vmul.f32 0.5, %v1172_v38  ;;  %v1243_v4 = vmul.f32 0.5, %v1173_v58  ;;  %v1307_v31 = vadd.f32 %v1860_v51, %v1237_v24  ;;  %v1308_v20 = vadd.f32 %v1861_v63, %v1238_v48  ;;  %v1865_v38 = vld [vmem:[#allocation2 + $0x28] sm:$0xff]  ;;  %v1866_v48 = vld [vmem:[#allocation2 + $0x30] sm:$0x3] }
 0x1fa   :  { %v1309_v54 = vadd.f32 %v1862_v25, %v1239_v32  ;;  %v1110_v50 = vmul.f32 %v1078_v22, %v2959_v41  ;;  %v1178_v44 = vsub.f32 %v1008_v57, %v1108_v11  ;;  %v1244_v36 = vmul.f32 0.5, %v1174_v19  ;;  %v1867_v22 = vld [vmem:[#allocation2 + $0x38] sm:$0xff] }
 0x1fb   :  { %v1310_v26 = vadd.f32 %v1863_v56, %v1240_v47  ;;  %v1179_v61 = vsub.f32 %v1009_v34, %v1109_v45  ;;  %v1245_v9 = vmul.f32 0.5, %v1175_v1  ;;  %v1311_v16 = vadd.f32 %v1864_v5, %v1241_v6  ;;  %1377 = vst [vmem:[#allocation8] sm:$0xff] %v1307_v31  ;;  %v1869_v6 = vld [vmem:[#allocation2 + $0x48] sm:$0xff]  ;;  %v1876_v56 = vld [vmem:[#allocation2 + $0x80] sm:$0xff] }
 0x1fc   :  { %v1180_v8 = vsub.f32 %v1010_v13, %v1110_v50  ;;  %v1246_v33 = vmul.f32 0.5, %v1176_v0  ;;  %v1312_v58 = vadd.f32 %v1865_v38, %v1242_v12  ;;  %1378 = vst [vmem:[#allocation8 + $0x8] sm:$0xff] %v1308_v20  ;;  %v1247_v24 = vmul.f32 0.5, %v1177_v35  ;;  %v1870_v13 = vld [vmem:[#allocation2 + $0x50] sm:$0xff]  ;;  %v1873_v31 = vld [vmem:[#allocation2 + $0x68] sm:$0x3] }
 0x1fd   :  { %v1313_v43 = vadd.f32 %v1866_v48, %v1243_v4  ;;  %1379 = vst [vmem:[#allocation8 + $0x10] sm:$0xff] %v1309_v54  ;;  %v1248_v25 = vmul.f32 0.5, %v1178_v44  ;;  %v1314_v57 = vadd.f32 %v1867_v22, %v1244_v36  ;;  %v1249_v32 = vmul.f32 0.5, %v1179_v61  ;;  %v1872_v4 = vld [vmem:[#allocation2 + $0x60] sm:$0xff]  ;;  %v1874_v20 = vld [vmem:[#allocation2 + $0x70] sm:$0xff]  ;;  %v1875_v44 = vld [vmem:[#allocation2 + $0x78] sm:$0xff] }
 0x1fe   :  { %1380 = vst [vmem:[#allocation8 + $0x18] sm:$0xff] %v1310_v26  ;;  %v1315_v34 = vadd.f32 %v1868_v28, %v1245_v9  ;;  %v1250_v45 = vmul.f32 0.5, %v1180_v8  ;;  %v1316_v19 = vadd.f32 %v1869_v6, %v1246_v33  ;;  %v4009_v0 = vsub.f32 %v3039_v18, %v3165_v53  ;;  %v1871_v26 = vld [vmem:[#allocation2 + $0x58] sm:$0xff]  ;;  %v1877_v9 = vld [vmem:[#allocation2 + $0x88] sm:$0xff]  ;;  %v1878_v8 = vld [vmem:[#allocation2 + $0x90] sm:$0xff] }
 0x1ff   :  { %1381 = vst [vmem:[#allocation8 + $0x20] sm:$0xff] %v1311_v16  ;;  %v1317_v11 = vadd.f32 %v1870_v13, %v1247_v24  ;;  %v4010_v54 = vsub.f32 %v3042_v52, %v3168_v46  ;;  %v1318_v35 = vadd.f32 %v1871_v26, %v1248_v25  ;;  %v4011_v16 = vsub.f32 %v3045_v60, %v3171_v29  ;;  %v1879_v38 = vld [vmem:[#allocation2 + $0x98] sm:$0xff]  ;;  %v1880_v24 = vld [vmem:[#allocation2 + $0xa0] sm:$0x3]  ;;  %v1881_v25 = vld [vmem:[#allocation2 + $0xa8] sm:$0xff] }
 0x200   :  { %1382 = vst [vmem:[#allocation8 + $0x28] sm:$0xff] %v1312_v58  ;;  %v1251_v47 = vmul.f32 0.5, %v4009_v0  ;;  %v1319_v51 = vadd.f32 %v1872_v4, %v1249_v32  ;;  %v4012_v53 = vsub.f32 %v3048_v55, %v3174_v2  ;;  %v1320_v63 = vadd.f32 %v1873_v31, %v1250_v45  ;;  %v1882_v28 = vld [vmem:[#allocation2 + $0xb0] sm:$0xff]  ;;  %v4025_v45 = vld [vmem:[#allocation46_spill] sm:$0xff]  ;;  %v1885_v4 = vld [vmem:[#allocation2 + $0xc8] sm:$0xff] }
 0x201   :  { %1383 = vst [vmem:[#allocation8 + $0x30] sm:$0x3] %v1313_v43  ;;  %v1252_v1 = vmul.f32 0.5, %v4010_v54  ;;  %v1253_v12 = vmul.f32 0.5, %v4011_v16  ;;  %v4013_v46 = vsub.f32 %v3051_v40, %v3177_v39  ;;  %v4014_v29 = vsub.f32 %v3054_v23, %v3180_v42  ;;  %v1884_v54 = vld [vmem:[#allocation2 + $0xc0] sm:$0xff]  ;;  %v4031_v26 = vld [vmem:[#allocation48_spill] sm:$0xff] }
 0x202   :  { %1384 = vst [vmem:[#allocation8 + $0x38] sm:$0xff] %v1314_v57  ;;  %v1254_v18 = vmul.f32 0.5, %v4012_v53  ;;  %v1321_v50 = vadd.f32 %v1874_v20, %v1251_v47  ;;  %v4015_v2 = vsub.f32 %v3057_v15, %v3183_v21  ;;  %v4016_v39 = vsub.f32 %v3060_v17, %v3187_v10  ;;  %v4022_v57 = vld [vmem:[#allocation45_spill] sm:$0xff]  ;;  %v4028_v47 = vld [vmem:[#allocation47_spill] sm:$0xff]  ;;  %v4037_v20 = vld [vmem:[#allocation50_spill] sm:$0xff] }
 0x203   :  { %1385 = vst [vmem:[#allocation8 + $0x40] sm:$0xff] %v1315_v34  ;;  %v1255_v52 = vmul.f32 0.5, %v4013_v46  ;;  %v1256_v60 = vmul.f32 0.5, %v4014_v29  ;;  %v1322_v36 = vadd.f32 %v1875_v44, %v1252_v1  ;;  %v1323_v61 = vadd.f32 %v1876_v56, %v1253_v12  ;;  %v4034_v53 = vld [vmem:[#allocation49_spill] sm:$0xff]  ;;  %v1886_v46 = vld [vmem:[#allocation2 + $0xd0] sm:$0xff] }
 0x204   :  { %1386 = vst [vmem:[#allocation8 + $0x48] sm:$0xff] %v1316_v19  ;;  %v1257_v55 = vmul.f32 0.5, %v4015_v2  ;;  %v1258_v40 = vmul.f32 0.5, %v4016_v39  ;;  %v1324_v5 = vadd.f32 %v1877_v9, %v1254_v18  ;;  %v4017_v42 = vsub.f32 %v3063_v37, %v3191_v27  ;;  %v4020_v27 = vld [vmem:[#allocation75_spill] sm:$0xff]  ;;  %v1883_v19 = vld [vmem:[#allocation2 + $0xb8] sm:$0xff]  ;;  %v4035_v18 = vld [vmem:[#allocation80_spill] sm:$0xff]  ;;  %v873_v2 = vpop.f32.mrf.mxu1 }
 0x205   :  { %1387 = vst [vmem:[#allocation8 + $0x50] sm:$0xff] %v1317_v11  ;;  %v1325_v33 = vadd.f32 %v1878_v8, %v1255_v52  ;;  %v4018_v15 = vsub.f32 %v3066_v14, %v3195_v30  ;;  %v1326_v58 = vadd.f32 %v1879_v38, %v1256_v60  ;;  %v4019_v17 = vsub.f32 %v3069_v49, %v3199_v62  ;;  %v4023_v14 = vld [vmem:[#allocation76_spill] sm:$0xff]  ;;  %v4026_v62 = vld [vmem:[#allocation77_spill] sm:$0xff]  ;;  %v4043_v9 = vld [vmem:[#allocation82_spill] sm:$0xff] }
 0x206   :  { %1388 = vst [vmem:[#allocation8 + $0x58] sm:$0xff] %v1318_v35  ;;  %v1259_v23 = vmul.f32 0.5, %v4017_v42  ;;  %v1327_v48 = vadd.f32 %v1880_v24, %v1257_v55  ;;  %v4021_v37 = vsub.f32 %v3072_v3, %v4020_v27  ;;  %v1328_v22 = vadd.f32 %v1881_v25, %v1258_v40  ;;  %v4029_v3 = vld [vmem:[#allocation78_spill] sm:$0xff]  ;;  %v4032_v35 = vld [vmem:[#allocation79_spill] sm:$0xff]  ;;  %v1887_v44 = vld [vmem:[#allocation2 + $0xd8] sm:$0x3]  ;;  %v917_v55 = vpop.f32.mrf.mxu2 }
 0x207   :  { %1389 = vst [vmem:[#allocation8 + $0x60] sm:$0xff] %v1319_v51  ;;  %v1260_v21 = vmul.f32 0.5, %v4018_v15  ;;  %v1261_v10 = vmul.f32 0.5, %v4019_v17  ;;  %v4024_v30 = vsub.f32 %v4022_v57, %v4023_v14  ;;  %v4027_v49 = vsub.f32 %v4025_v45, %v4026_v62  ;;  %v4040_v56 = vld [vmem:[#allocation24_spill] sm:$0xff]  ;;  %v4042_v40 = vld [vmem:[#allocation51_spill] sm:$0xff]  ;;  %v4048_v24 = vld [vmem:[#allocation53_spill] sm:$0xff]  ;;  %v930_v57 = vpop.permute.xlu2 %929 }
 0x208   :  { %1390 = vst [vmem:[#allocation8 + $0x68] sm:$0x3] %v1320_v63  ;;  %v1262_v43 = vmul.f32 0.5, %v4021_v37  ;;  %v1329_v34 = vadd.f32 %v1882_v28, %v1259_v23  ;;  %v4030_v13 = vsub.f32 %v4028_v47, %v4029_v3  ;;  %v4033_v16 = vsub.f32 %v4031_v26, %v4032_v35  ;;  %v1888_v23 = vld [vmem:[#allocation2 + $0xe0] sm:$0xff]  ;;  %v4045_v15 = vld [vmem:[#allocation52_spill] sm:$0xff]  ;;  %v1889_v17 = vld [vmem:[#allocation2 + $0xe8] sm:$0xff] }
 0x209   :  { %1391 = vst [vmem:[#allocation8 + $0x70] sm:$0xff] %v1321_v50  ;;  %v1263_v32 = vmul.f32 0.5, %v4024_v30  ;;  %v1264_v6 = vmul.f32 0.5, %v4027_v49  ;;  %v1330_v0 = vadd.f32 %v1883_v19, %v1260_v21  ;;  %v1331_v1 = vadd.f32 %v1884_v54, %v1261_v10  ;;  %v4038_v50 = vld [vmem:[#allocation81_spill] sm:$0xff]  ;;  %v4046_v21 = vld [vmem:[#allocation83_spill] sm:$0xff]  ;;  %v4051_v14 = vld [vmem:[#allocation54_spill] sm:$0xff] }
 0x20a   :  { %1392 = vst [vmem:[#allocation8 + $0x78] sm:$0xff] %v1322_v36  ;;  %v1265_v11 = vmul.f32 0.5, %v4030_v13  ;;  %v1266_v12 = vmul.f32 0.5, %v4033_v16  ;;  %v1332_v51 = vadd.f32 %v1885_v4, %v1262_v43  ;;  %v4036_v31 = vsub.f32 %v4034_v53, %v4035_v18  ;;  %v1890_v43 = vld [vmem:[#allocation2 + $0xf0] sm:$0xff]  ;;  %v4052_v30 = vld [vmem:[#allocation85_spill] sm:$0xff]  ;;  %v4054_v62 = vld [vmem:[#allocation55_spill] sm:$0xff] }
 0x20b   :  { %1393 = vst [vmem:[#allocation8 + $0x80] sm:$0xff] %v1323_v61  ;;  %v1333_v52 = vadd.f32 %v1886_v46, %v1263_v32  ;;  %v4039_v29 = vsub.f32 %v4037_v20, %v4038_v50  ;;  %v1334_v36 = vadd.f32 %v1887_v44, %v1264_v6  ;;  %v4041_v61 = vld [vmem:[#allocation41_spill] sm:$0xff]  ;;  %v4047_v38 = vsub.f32 %v4045_v15, %v4046_v21  ;;  %v4055_v49 = vld [vmem:[#allocation86_spill] sm:$0xff]  ;;  %v4057_v13 = vld [vmem:[#allocation56_spill] sm:$0xff] }
 0x20c   :  { %1394 = vst [vmem:[#allocation8 + $0x88] sm:$0xff] %v1324_v5  ;;  %v1267_v63 = vmul.f32 0.5, %v4036_v31  ;;  %v888_v39 = vmul.f32 %v4041_v61, %v4040_v56  ;;  %v4044_v5 = vsub.f32 %v4042_v40, %v4043_v9  ;;  %v1335_v8 = vadd.f32 %v1888_v23, %v1265_v11  ;;  %v4058_v11 = vld [vmem:[#allocation87_spill] sm:$0xff]  ;;  %v1894_v16 = vld [vmem:[%s3656_s1 + $0x58] sm:$0x3]  ;;  %v4073_v15 = vld [vmem:[#allocation92_spill] sm:$0xff] }
 0x20d   :  { %1395 = vst [vmem:[#allocation8 + $0x90] sm:$0xff] %v1325_v33  ;;  %v1268_v60 = vmul.f32 0.5, %v4039_v29  ;;  %v918_v33 = vadd.f32 %v917_v55, %v873_v2  ;;  %v1336_v10 = vadd.f32 %v1889_v17, %v1266_v12  ;;  %v4053_v32 = vsub.f32 %v4051_v14, %v4052_v30  ;;  %v1893_v26 = vld [vmem:[#allocation2 + $0x108] sm:$0xff]  ;;  %v4060_v4 = vld [vmem:[#allocation57_spill] sm:$0xff]  ;;  %v1895_v31 = vld [vmem:[#allocation2 + $0x110] sm:$0x3] }
 0x20e   :  { %1396 = vst [vmem:[#allocation8 + $0x98] sm:$0xff] %v1326_v58  ;;  %v1269_v42 = vmul.f32 0.5, %v4044_v5  ;;  %v1270_v58 = vmul.f32 0.5, %v4047_v38  ;;  %v1337_v25 = vadd.f32 %v1890_v43, %v1267_v63  ;;  %v4056_v6 = vsub.f32 %v4054_v62, %v4055_v49  ;;  %v4064_v20 = vld [vmem:[#allocation89_spill] sm:$0xff]  ;;  %v4066_v2 = vld [vmem:[#allocation59_spill] sm:$0xff]  ;;  %v4067_v55 = vld [vmem:[#allocation90_spill] sm:$0xff] }
 0x20f   :  { %1397 = vst [vmem:[#allocation8 + $0xa0] sm:$0x3] %v1327_v48  ;;  %v4049_v48 = vld [vmem:[#allocation84_spill] sm:$0xff]  ;;  %v1272_v28 = vmul.f32 0.5, %v4053_v32  ;;  %v4059_v54 = vsub.f32 %v4057_v13, %v4058_v11  ;;  %v890_v12 = vmul.f32 0.5, %v1894_v16  ;;  %v4068_v56 = vsub.f32 %v4066_v2, %v4067_v55  ;;  %v4070_v40 = vld [vmem:[#allocation91_spill] sm:$0xff] }
 0x210   :  { %1398 = vst [vmem:[#allocation8 + $0xa8] sm:$0xff] %v1328_v22  ;;  %v4050_v27 = vsub.f32 %v4048_v24, %v4049_v48  ;;  %v921_v22 = vadd.f32 %v918_v33, %v888_v39  ;;  %v1273_v19 = vmul.f32 0.5, %v4056_v6  ;;  %v1340_v35 = vadd.f32 %v1893_v26, %v1270_v58  ;;  %v4069_v39 = vld [vmem:[#allocation60_spill] sm:$0xff]  ;;  %v4072_v33 = vld [vmem:[#allocation61_spill] sm:$0xff]  ;;  %v4075_v58 = vld [vmem:[#allocation62_spill] sm:$0xff] }
 0x211   :  { %1399 = vst [vmem:[#allocation8 + $0xb0] sm:$0xff] %v1329_v34  ;;  %v1891_v34 = vld [vmem:[#allocation2 + $0xf8] sm:$0xff]  ;;  %v1277_v61 = vmul.f32 0.5, %v4068_v56  ;;  %v4071_v9 = vsub.f32 %v4069_v39, %v4070_v40  ;;  %v4074_v21 = vsub.f32 %v4072_v33, %v4073_v15  ;;  %v4078_v48 = vld [vmem:[#allocation63_spill] sm:$0xff]  ;;  %v4085_v6 = vld [vmem:[#allocation96_spill] sm:$0xff] }
 0x212   :  { %1400 = vst [vmem:[#allocation8 + $0xb8] sm:$0xff] %v1330_v0  ;;  %v1271_v37 = vmul.f32 0.5, %v4050_v27  ;;  %v1338_v45 = vadd.f32 %v1891_v34, %v1268_v60  ;;  %v1892_v0 = vld [vmem:[#allocation2 + $0x100] sm:$0xff]  ;;  %v933_v3 = vadd.f32 %v930_v57, %v921_v22  ;;  %v1896_v60 = vld [vmem:[#allocation2 + $0x118] sm:$0xff]  ;;  %v4081_v57 = vld [vmem:[#allocation64_spill] sm:$0xff] }
 0x213   :  { %1401 = vst [vmem:[#allocation8 + $0xc0] sm:$0xff] %v1331_v1  ;;  %v1339_v47 = vadd.f32 %v1892_v0, %v1269_v42  ;;  %v1274_v1 = vmul.f32 0.5, %v4059_v54  ;;  %v1342_v44 = vadd.f32 %v1896_v60, %v1272_v28  ;;  %v1278_v5 = vmul.f32 0.5, %v4071_v9  ;;  %v1897_v42 = vld [vmem:[#allocation2 + $0x120] sm:$0xff]  ;;  %v4076_v17 = vld [vmem:[#allocation93_spill] sm:$0xff]  ;;  %v4082_v14 = vld [vmem:[#allocation95_spill] sm:$0xff] }
 0x214   :  { %1402 = vst [vmem:[#allocation8 + $0xc8] sm:$0xff] %v1332_v51  ;;  %v4061_v51 = vld [vmem:[#allocation88_spill] sm:$0xff]  ;;  %v1341_v63 = vadd.f32 %v1895_v31, %v1271_v37  ;;  %v935_v46 = vmax.f32 %v933_v3, 0.0  ;;  %v1343_v23 = vadd.f32 %v1897_v42, %v1273_v19  ;;  %v1279_v38 = vmul.f32 0.5, %v4074_v21  ;;  %v4079_v27 = vld [vmem:[#allocation94_spill] sm:$0xff]  ;;  %v4084_v49 = vld [vmem:[#allocation65_spill] sm:$0xff] }
 0x215   :  { %1403 = vst [vmem:[#allocation8 + $0xd0] sm:$0xff] %v1333_v52  ;;  %v4062_v53 = vsub.f32 %v4060_v4, %v4061_v51  ;;  %v4063_v52 = vld [vmem:[#allocation58_spill] sm:$0xff]  ;;  %v4080_v37 = vsub.f32 %v4078_v48, %v4079_v27  ;;  %v4083_v30 = vsub.f32 %v4081_v57, %v4082_v14  ;;  %v1899_v28 = vld [vmem:[#allocation2 + $0x130] sm:$0xff]  ;;  %v4086_v19 = vsub.f32 %v4084_v49, %v4085_v6  ;;  %v4088_v3 = vld [vmem:[#allocation97_spill] sm:$0xff] }
 0x216   :  { %1404 = vst [vmem:[#allocation8 + $0xd8] sm:$0x3] %v1334_v36  ;;  %v4065_v50 = vsub.f32 %v4063_v52, %v4064_v20  ;;  %v83_v36 = vld [vmem:[%s3656_s1 + $0xa0] sm:$0x3]  ;;  %v4090_v54 = vld [vmem:[#allocation67_spill] sm:$0xff]  ;;  %v1900_v16 = vld [vmem:[#allocation2 + $0x138] sm:$0xff] }
 0x217   :  { %1405 = vst [vmem:[#allocation8 + $0xe0] sm:$0xff] %v1335_v8  ;;  %v1275_v18 = vmul.f32 0.5, %v4062_v53  ;;  %v937_v8 = vmul.f32 0.5, %v935_v46  ;;  %v1281_v43 = vmul.f32 0.5, %v4080_v37  ;;  %v1282_v32 = vmul.f32 0.5, %v4083_v30  ;;  %v4093_v51 = vld [vmem:[#allocation68_spill] sm:$0xff] }
 0x218   :  { %1406 = vst [vmem:[#allocation8 + $0xe8] sm:$0xff] %v1336_v10  ;;  %v1276_v29 = vmul.f32 0.5, %v4065_v50  ;;  %v4077_v10 = vsub.f32 %v4075_v58, %v4076_v17  ;;  %v964_v62 = vmul.f32 0.90909094, %v83_v36  ;;  %v1283_v0 = vmul.f32 0.5, %v4086_v19  ;;  %v4094_v53 = vld [vmem:[#allocation99_spill] sm:$0xff] }
 0x219   :  { %1407 = vst [vmem:[#allocation8 + $0xf0] sm:$0xff] %v1337_v25  ;;  %v1898_v25 = vld [vmem:[#allocation2 + $0x128] sm:$0xff]  ;;  %v1345_v34 = vadd.f32 %v1899_v28, %v1275_v18  ;;  %v4096_v31 = vld [vmem:[#allocation69_spill] sm:$0xff]  ;;  %v1901_v20 = vld [vmem:[#allocation2 + $0x140] sm:$0xff] }
 0x21a   :  { %1408 = vst [vmem:[#allocation8 + $0xf8] sm:$0xff] %v1338_v45  ;;  %v1280_v24 = vmul.f32 0.5, %v4077_v10  ;;  %v1344_v22 = vadd.f32 %v1898_v25, %v1274_v1  ;;  %v3546_v45 = vadd.f32 %v937_v8, %v890_v12  ;;  %v4091_v1 = vld [vmem:[#allocation98_spill] sm:$0xff]  ;;  %v1346_v4 = vadd.f32 %v1900_v16, %v1276_v29  ;;  %v4100_v2 = vld [vmem:[#allocation101_spill] sm:$0xff]  ;;  %v4102_v39 = vld [vmem:[#allocation71_spill] sm:$0xff] }
 0x21b   :  { %1409 = vst [vmem:[#allocation8 + $0x100] sm:$0xff] %v1339_v47  ;;  %v4087_v47 = vld [vmem:[#allocation66_spill] sm:$0xff]  ;;  %v4092_v26 = vsub.f32 %v4090_v54, %v4091_v1  ;;  %v4095_v12 = vsub.f32 %v4093_v51, %v4094_v53  ;;  %v1347_v50 = vadd.f32 %v1901_v20, %v1277_v61  ;;  %v4105_v9 = vld [vmem:[#allocation72_spill] sm:$0xff]  ;;  %v4106_v42 = vld [vmem:[#allocation103_spill] sm:$0xff] }
 0x21c   :  { %1410 = vst [vmem:[#allocation8 + $0x108] sm:$0xff] %v1340_v35  ;;  %v4089_v13 = vsub.f32 %v4087_v47, %v4088_v3  ;;  %v962_v60 = vmul.f32 0.09090909, %v3546_v45  ;;  %v4099_v36 = vld [vmem:[#allocation70_spill] sm:$0xff]  ;;  %v4107_v8 = vsub.f32 %v4105_v9, %v4106_v42  ;;  %v1902_v15 = vld [vmem:[#allocation2 + $0x148] sm:$0x3] }
 0x21d   :  { %1411 = vst [vmem:[#allocation8 + $0x110] sm:$0x3] %v1341_v63  ;;  %v1285_v35 = vmul.f32 0.5, %v4092_v26  ;;  %v1286_v18 = vmul.f32 0.5, %v4095_v12  ;;  %v4097_v63 = vld [vmem:[#allocation100_spill] sm:$0xff]  ;;  %v4101_v55 = vsub.f32 %v4099_v36, %v4100_v2  ;;  %v4103_v29 = vld [vmem:[#allocation102_spill] sm:$0xff]  ;;  %v1348_v21 = vadd.f32 %v1902_v15, %v1278_v5  ;;  %v1752_v12 = vpop.f32.mrf.mxu3  ;;  %v1730_v36 = vpop.permute.xlu1 %1729 }
 0x21e   :  { %v1284_v11 = vmul.f32 0.5, %v4089_v13  ;;  %1412 = vst [vmem:[#allocation8 + $0x118] sm:$0xff] %v1342_v44  ;;  %v4098_v46 = vsub.f32 %v4096_v31, %v4097_v63  ;;  %v4104_v44 = vsub.f32 %v4102_v39, %v4103_v29  ;;  %v1290_v33 = vmul.f32 0.5, %v4107_v8  ;;  %v4108_v58 = vld [vmem:[#allocation73_spill] sm:$0xff]  ;;  %v4109_v61 = vld [vmem:[#allocation104_spill] sm:$0xff]  ;;  %v4111_v10 = vld [vmem:[#allocation74_spill] sm:$0xff] }
 0x21f   :  { %1413 = vst [vmem:[#allocation8 + $0x120] sm:$0xff] %v1343_v23  ;;  %v1288_v56 = vmul.f32 0.5, %v4101_v55  ;;  %v4110_v23 = vsub.f32 %v4108_v58, %v4109_v61  ;;  %v4112_v48 = vld [vmem:[#allocation105_spill] sm:$0xff]  ;;  %v1903_v25 = vld [vmem:[#allocation2 + $0x150] sm:$0xff]  ;;  %v3579_v14 = vadd.f32 %v964_v62, %v962_v60  ;;  %v4114_v30 = vld [vmem:[#allocation15_spill] sm:$0xff]  ;;  %v1753_v8 = vadd.f32 %v1752_v12, %v1730_v36 }
 0x220   :  { %v1287_v52 = vmul.f32 0.5, %v4098_v46  ;;  %v1289_v40 = vmul.f32 0.5, %v4104_v44  ;;  %1414 = vst [vmem:[#allocation8 + $0x128] sm:$0xff] %v1344_v22  ;;  %v4113_v27 = vsub.f32 %v4111_v10, %v4112_v48  ;;  %v1349_v57 = vadd.f32 %v1903_v25, %v1279_v38  ;;  %v4115_v49 = vld [vmem:[#allocation19_spill] sm:$0xff]  ;;  %v4116_v19 = vld [vmem:[#allocation22_spill] sm:$0xff]  ;;  %v4121_v16 = vld [vmem:[#allocation16_spill] sm:$0xff] }
 0x221   :  { %v1291_v17 = vmul.f32 0.5, %v4110_v23  ;;  %1415 = vst [vmem:[#allocation8 + $0x130] sm:$0xff] %v1345_v34  ;;  %v1350_v28 = vadd.f32 %v1280_v24, %v4114_v30  ;;  %v1351_v6 = vadd.f32 %v1281_v43, %v4115_v49  ;;  %v1352_v5 = vadd.f32 %v1282_v32, %v4116_v19  ;;  %v4117_v47 = vld [vmem:[#allocation26_spill] sm:$0xff]  ;;  %v4118_v34 = vld [vmem:[#allocation29_spill] sm:$0xff]  ;;  %v4120_v26 = vld [vmem:[#allocation35_spill] sm:$0xff] }
 0x222   :  { %v1292_v37 = vmul.f32 0.5, %v4113_v27  ;;  %1416 = vst [vmem:[#allocation8 + $0x138] sm:$0xff] %v1346_v4  ;;  %v1076_v22 = vrot.slane %v3546_v45, 1  ;;  %v1353_v3 = vadd.f32 %v1283_v0, %v4117_v47  ;;  %v976_v13 = vrot.slane %v3579_v14, 1  ;;  %v4119_v1 = vld [vmem:[#allocation34_spill] sm:$0xff]  ;;  %v4122_v4 = vld [vmem:[#allocation20_spill] sm:$0xff] }
 0x223   :  { %1417 = vst [vmem:[#allocation8 + $0x140] sm:$0xff] %v1347_v50  ;;  %v985_v54 = vperm.slane %v3579_v14, 0  ;;  %v1085_v38 = vperm.slane %v3546_v45, 0  ;;  %v1354_v62 = vadd.f32 %v1284_v11, %v4118_v34  ;;  %v1355_v24 = vadd.f32 %v1285_v35, %v4119_v1  ;;  %v4123_v53 = vld [vmem:[#allocation25_spill] sm:$0xff]  ;;  %v4124_v31 = vld [vmem:[#allocation39_spill] sm:$0xff]  ;;  %v4125_v20 = vld [vmem:[#allocation36_spill] sm:$0xff] }
 0x224   :  { %v1356_v43 = vadd.f32 %v1286_v18, %v4120_v26  ;;  %v1357_v32 = vadd.f32 %v1287_v52, %v4121_v16  ;;  %1418 = vst [vmem:[#allocation8 + $0x148] sm:$0x3] %v1348_v21  ;;  %v1358_v51 = vadd.f32 %v1288_v56, %v4122_v4  ;;  %v1359_v0 = vadd.f32 %v1289_v40, %v4123_v53  ;;  %v4126_v11 = vld [vmem:[#allocation30_spill] sm:$0xff]  ;;  %v1904_v35 = vld [vmem:[%s3662_s7 + $0x10] sm:$0xff]  ;;  %v1905_v55 = vld [vmem:[%s3662_s7 + $0x18] sm:$0xff] }
 0x225   :  { %1419 = vst [vmem:[#allocation8 + $0x150] sm:$0xff] %v1349_v57  ;;  %v1053_v63 = vmul.f32 %v4124_v31, %v985_v54  ;;  %v1054_v46 = vmul.f32 %v3996_v59, %v985_v54  ;;  %v1360_v50 = vadd.f32 %v1290_v33, %v4125_v20  ;;  %v1361_v60 = vadd.f32 %v1291_v17, %v4126_v11  ;;  %v4127_v39 = vld [vmem:[#allocation21_spill] sm:$0xff]  ;;  %v4128_v44 = vld [vmem:[#allocation40_spill] sm:$0xff]  ;;  %v4129_v9 = vld [vmem:[#allocation38_spill] sm:$0xff] }
 0x226   :  { %1420 = vst [vmem:[#allocation8 + $0x158] sm:$0xff] %v1350_v28  ;;  %v1055_v18 = vmul.f32 %v1904_v35, %v985_v54  ;;  %v3602_v52 = vperm.slane %v1076_v22, 0  ;;  %v986_v2 = vperm.slane %v976_v13, 0  ;;  %v1056_v56 = vmul.f32 %v1905_v55, %v985_v54  ;;  %v1906_v33 = vld [vmem:[%s3662_s7 + $0x20] sm:$0xff]  ;;  %v4130_v21 = vld [vmem:[#allocation31_spill] sm:$0xff]  ;;  %v4134_v30 = vld [vmem:[#allocation37_spill] sm:$0xff] }
 0x227   :  { %1421 = vst [vmem:[#allocation8 + $0x160] sm:$0xff] %v1351_v6  ;;  %v1153_v29 = vmul.f32 %v1085_v38, %v4127_v39  ;;  %v1154_v40 = vmul.f32 %v1085_v38, %v4128_v44  ;;  %v1362_v42 = vadd.f32 %v1292_v37, %v4129_v9  ;;  %v1057_v15 = vmul.f32 %v1906_v33, %v985_v54  ;;  %v4131_v61 = vld [vmem:[#allocation27_spill] sm:$0xff]  ;;  %v4132_v17 = vld [vmem:[#allocation18_spill] sm:$0xff] }
 0x228   :  { %1422 = vst [vmem:[#allocation8 + $0x168] sm:$0xff] %v1352_v5  ;;  %v1155_v58 = vmul.f32 %v1085_v38, %v4130_v21  ;;  %v1058_v23 = vmul.f32 %v4131_v61, %v985_v54  ;;  %v1156_v10 = vmul.f32 %v1085_v38, %v4132_v17  ;;  %v1059_v25 = vmul.f32 %v985_v54, %v4005_v7  ;;  %v4133_v37 = vld [vmem:[#allocation23_spill] sm:$0xff] }
 0x229   :  { %1423 = vst [vmem:[#allocation8 + $0x170] sm:$0xff] %v1353_v3  ;;  %v1223_v48 = vsub.f32 %v1053_v63, %v1153_v29  ;;  %v1224_v27 = vsub.f32 %v1054_v46, %v1154_v40  ;;  %v1157_v57 = vmul.f32 %v1085_v38, %v4133_v37  ;;  %v1158_v28 = vmul.f32 %v1085_v38, %v4134_v30  ;;  %v1907_v46 = vld [vmem:[#allocation2 + $0x1c0] sm:$0xff]  ;;  %v1910_v29 = vld [vmem:[#allocation2 + $0x1d8] sm:$0xff] }
 0x22a   :  { %1424 = vst [vmem:[#allocation8 + $0x178] sm:$0xff] %v1354_v62  ;;  %v1225_v49 = vsub.f32 %v1055_v18, %v1155_v58  ;;  %v1060_v6 = vmul.f32 %v4124_v31, %v986_v2  ;;  %v1159_v19 = vmul.f32 %v1085_v38, %v2959_v41  ;;  %v1160_v5 = vmul.f32 %v3602_v52, %v4127_v39  ;;  %v1908_v18 = vld [vmem:[#allocation2 + $0x1c8] sm:$0xff] }
 0x22b   :  { %1425 = vst [vmem:[#allocation8 + $0x180] sm:$0x3] %v1355_v24  ;;  %v1226_v22 = vsub.f32 %v1056_v56, %v1156_v10  ;;  %v1061_v47 = vmul.f32 %v3996_v59, %v986_v2  ;;  %v1161_v3 = vmul.f32 %v3602_v52, %v4128_v44  ;;  %v1227_v13 = vsub.f32 %v1057_v15, %v1157_v57  ;;  %v1912_v58 = vld [vmem:[#allocation2 + $0x1e8] sm:$0xff] }
 0x22c   :  { %1426 = vst [vmem:[#allocation8 + $0x188] sm:$0xff] %v1356_v43  ;;  %v1293_v54 = vmul.f32 0.5, %v1223_v48  ;;  %v1062_v34 = vmul.f32 %v1904_v35, %v986_v2  ;;  %v1162_v62 = vmul.f32 %v3602_v52, %v4130_v21  ;;  %v1228_v1 = vsub.f32 %v1058_v23, %v1158_v28  ;;  %v1916_v57 = vld [vmem:[#allocation2 + $0x208] sm:$0xff]  ;;  %v1917_v28 = vld [vmem:[#allocation2 + $0x210] sm:$0xff] }
 0x22d   :  { %1427 = vst [vmem:[#allocation8 + $0x190] sm:$0xff] %v1357_v32  ;;  %v1294_v24 = vmul.f32 0.5, %v1224_v27  ;;  %v1063_v38 = vmul.f32 %v1905_v55, %v986_v2  ;;  %v1163_v26 = vmul.f32 %v3602_v52, %v4132_v17  ;;  %v1229_v43 = vsub.f32 %v1059_v25, %v1159_v19  ;;  %v1913_v17 = vld [vmem:[#allocation2 + $0x1f0] sm:$0x3]  ;;  %v1915_v27 = vld [vmem:[#allocation2 + $0x200] sm:$0xff] }
 0x22e   :  { %1428 = vst [vmem:[#allocation8 + $0x198] sm:$0xff] %v1358_v51  ;;  %v1295_v16 = vmul.f32 0.5, %v1225_v49  ;;  %v1064_v59 = vmul.f32 %v1906_v33, %v986_v2  ;;  %v1164_v4 = vmul.f32 %v3602_v52, %v4133_v37  ;;  %v1230_v53 = vsub.f32 %v1060_v6, %v1160_v5  ;;  %v1918_v6 = vld [vmem:[#allocation2 + $0x218] sm:$0xff]  ;;  %v1919_v5 = vld [vmem:[#allocation2 + $0x220] sm:$0xff] }
 0x22f   :  { %1429 = vst [vmem:[#allocation8 + $0x1a0] sm:$0xff] %v1359_v0  ;;  %v1296_v32 = vmul.f32 0.5, %v1226_v22  ;;  %v1065_v12 = vmul.f32 %v4131_v61, %v986_v2  ;;  %v1231_v31 = vsub.f32 %v1061_v47, %v1161_v3  ;;  %v1297_v63 = vmul.f32 0.5, %v1227_v13  ;;  %v1920_v47 = vld [vmem:[#allocation2 + $0x228] sm:$0x3] }
 0x230   :  { %1430 = vst [vmem:[#allocation8 + $0x1a8] sm:$0xff] %v1360_v50  ;;  %v1363_v51 = vadd.f32 %v1907_v46, %v1293_v54  ;;  %v1066_v20 = vmul.f32 %v986_v2, %v4005_v7  ;;  %v1232_v11 = vsub.f32 %v1062_v34, %v1162_v62  ;;  %v1298_v35 = vmul.f32 0.5, %v1228_v1  ;;  %v1909_v50 = vld [vmem:[#allocation2 + $0x1d0] sm:$0xff] }
 0x231   :  { %1431 = vst [vmem:[#allocation8 + $0x1b0] sm:$0xff] %v1361_v60  ;;  %v1364_v0 = vadd.f32 %v1908_v18, %v1294_v24  ;;  %v1165_v36 = vmul.f32 %v3602_v52, %v4134_v30  ;;  %v1233_v55 = vsub.f32 %v1063_v38, %v1163_v26  ;;  %v1299_v56 = vmul.f32 0.5, %v1229_v43 }
 0x232   :  { %1432 = vst [vmem:[#allocation8 + $0x1b8] sm:$0x3] %v1362_v42  ;;  %v1365_v39 = vadd.f32 %v1909_v50, %v1295_v16  ;;  %v1166_v60 = vmul.f32 %v3602_v52, %v2959_v41  ;;  %v1234_v7 = vsub.f32 %v1064_v59, %v1164_v4  ;;  %v1300_v2 = vmul.f32 0.5, %v1230_v53  ;;  %v1911_v42 = vld [vmem:[#allocation2 + $0x1e0] sm:$0xff]  ;;  %v1914_v41 = vld [vmem:[#allocation2 + $0x1f8] sm:$0xff] }
 0x233   :  { %1755 = vst [vmem:[%s3661_s6] sm:$0x3] %v1753_v8  ;;  %v1366_v44 = vadd.f32 %v1910_v29, %v1296_v32  ;;  %v1235_v40 = vsub.f32 %v1065_v12, %v1165_v36  ;;  %v1301_v9 = vmul.f32 0.5, %v1231_v31  ;;  %v1367_v33 = vadd.f32 %v1911_v42, %v1297_v63  ;;  %s2031_s6 = smov [#allocation8]  }
 0x234   :  { %1433 = vst [vmem:[#allocation8 + $0x1c0] sm:$0xff] %v1363_v51  ;;  %v1236_v15 = vsub.f32 %v1066_v20, %v1166_v60  ;;  %v1302_v21 = vmul.f32 0.5, %v1232_v11  ;;  %v1368_v61 = vadd.f32 %v1912_v58, %v1298_v35  ;;  %v1303_v23 = vmul.f32 0.5, %v1233_v55  ;;  %s1798_s27 = sshll.u32 %s2031_s6, 4  ;;  %s1799_s27 = int_to_ptr.vmem [resolvable:$true] %s1798_s27 }
 0x235   :  { %1434 = vst [vmem:[#allocation8 + $0x1c8] sm:$0xff] %v1364_v0  ;;  %v1369_v8 = vadd.f32 %v1913_v17, %v1299_v56  ;;  %v1304_v10 = vmul.f32 0.5, %v1234_v7  ;;  %v1370_v52 = vadd.f32 %v1914_v41, %v1300_v2  ;;  %v1305_v48 = vmul.f32 0.5, %v1235_v40 }
 0x236   :  { %1435 = vst [vmem:[#allocation8 + $0x1d0] sm:$0xff] %v1365_v39  ;;  %v1371_v25 = vadd.f32 %v1915_v27, %v1301_v9  ;;  %v1306_v37 = vmul.f32 0.5, %v1236_v15  ;;  %v1372_v30 = vadd.f32 %v1916_v57, %v1302_v21  ;;  %v1373_v49 = vadd.f32 %v1917_v28, %v1303_v23 }
 0x237   :  { %1436 = vst [vmem:[#allocation8 + $0x1d8] sm:$0xff] %v1366_v44  ;;  %v1374_v19 = vadd.f32 %v1918_v6, %v1304_v10  ;;  %v1375_v22 = vadd.f32 %v1919_v5, %v1305_v48 }
 0x238   :  { %1437 = vst [vmem:[#allocation8 + $0x1e0] sm:$0xff] %v1367_v33  ;;  %v1376_v3 = vadd.f32 %v1920_v47, %v1306_v37 }
 0x239   :  { %1438 = vst [vmem:[#allocation8 + $0x1e8] sm:$0xff] %v1368_v61 }
 0x23a   :  { %1439 = vst [vmem:[#allocation8 + $0x1f0] sm:$0x3] %v1369_v8 }
 0x23b   :  { %1440 = vst [vmem:[#allocation8 + $0x1f8] sm:$0xff] %v1370_v52 }
 0x23c   :  { %1441 = vst [vmem:[#allocation8 + $0x200] sm:$0xff] %v1371_v25 }
 0x23d   :  { %1442 = vst [vmem:[#allocation8 + $0x208] sm:$0xff] %v1372_v30 }
 0x23e   :  { %1443 = vst [vmem:[#allocation8 + $0x210] sm:$0xff] %v1373_v49 }
 0x23f   :  { %1444 = vst [vmem:[#allocation8 + $0x218] sm:$0xff] %v1374_v19 }
 0x240   :  { %1445 = vst [vmem:[#allocation8 + $0x220] sm:$0xff] %v1375_v22 }
 0x241   :  { %1446 = vst [vmem:[#allocation8 + $0x228] sm:$0x3] %v1376_v3 }
 0x242   :  { %1767 = vst [vmem:[%s3662_s7 + $0x58] sm:$0x3] %v3546_v45 }
 0x243   :  { %1776 = vst [vmem:[%s3662_s7 + $0xa0] sm:$0x3] %v3579_v14 }
 0x244   :  { %1806 = dma.vmem_to_hbm [thread:$0]  %s1799_s27, 8960, %s1801_s5, [#allocation9], %s2026_s17, %s2026_s17, %s2027_s18  }
 0x245   :  { %2021 = dma.done.wait [#allocation4], 8960  }
 0x246   :  { %2022 = vsyncadd [#allocation4], 4294958336 }
 0x247   :  { %2023 = dma.done.wait [#allocation9], 8960  }
 0x248   :  { %2024 = vsyncadd [#allocation9], 4294958336 }
 0x249   :  { %1819 = vsyncpa [#allocation3], 1 }
 0x24a   :  { %1820 = vsyncpa [#allocation6], 1 }
 0x24b   :  { %1821 = vsyncpa [#allocation4], 1 }
 0x24c   :  { %1822 = vsyncpa [#allocation9], 1 }

</bundles_post_ra>
